<compile_context>
chip_gen: v7x
topology: tpu7x:2x2x1
jax: 0.10.0
libtpu: 0.0.40
codegen_flags: <defaults>
</compile_context>

<pallas_src>
import jax
import jax.numpy as jnp
import numpy as np
from jax.experimental import pallas as pl
from jax.experimental.pallas import tpu as pltpu

NUM_CLASSES = 10
C_IN = 1024
C_MID = 512
OUT_HW = 14
BN_EPS = 1e-5
TN = 256            # N tile: lane-dense, multiple of 256 keeps the MXU full


# --------------------------- Pallas kernels ---------------------------------

def _conv1_stats_kernel(x_ref, w1_ref, h_ref, sum_ref, sumsq_ref):
    """h = W1 @ x (bf16 operands, f32 acc) + per-tile BN partial statistics.

    conv1 bias is intentionally omitted: it is exactly cancelled by the
    training-mode BatchNorm mean subtraction (mathematical no-op).
    """
    h = jnp.dot(w1_ref[...], x_ref[...], preferred_element_type=jnp.float32)
    h_ref[...] = h
    s = jnp.sum(h, axis=1, keepdims=True)            # (C_MID, 1)   XLU reduce
    sq = jnp.sum(h * h, axis=1, keepdims=True)       # (C_MID, 1)
    sum_ref[...] = s[None, :, :]
    sumsq_ref[...] = sq[None, :, :]


def _bn_relu_conv2_kernel(h_ref, scale_ref, shift_ref, w2_ref, b2_ref, o_ref):
    """out = W2 @ relu(scale*h + shift) + b2   (BN folded into scale/shift)."""
    hn = scale_ref[...] * h_ref[...] + shift_ref[...]         # f32 elementwise
    r = jnp.maximum(hn, 0.0).astype(jnp.bfloat16)             # bf16 MXU operand
    out = jnp.dot(w2_ref[...], r, preferred_element_type=jnp.float32)
    o_ref[...] = (out + b2_ref[...]).astype(o_ref.dtype)


# ------------------------------ wrapper --------------------------------------

def _adaptive_pool_matrix(in_size, out_size):
    """(out_size, in_size) averaging matrix matching nn.AdaptiveAvgPool2d bins."""
    i = np.arange(out_size)
    starts = (i * in_size) // out_size                       # floor(i*H/O)
    ends = -((-(i + 1) * in_size) // out_size)               # ceil((i+1)*H/O)
    idx = np.arange(in_size)
    mask = (idx[None, :] >= starts[:, None]) & (idx[None, :] < ends[:, None])
    counts = (ends - starts).astype(np.float32)
    return jnp.asarray(mask.astype(np.float32) / counts[:, None])


def f_confidence(x, params):
    B, C, H, W = x.shape
    assert C == C_IN
    ph = _adaptive_pool_matrix(H, OUT_HW)   # (14, H)
    pw = _adaptive_pool_matrix(W, OUT_HW)   # (14, W)

    # TODO(synk): AdaptiveAvgPool2d (data-dependent bin sizes) stays as plain
    # JAX glue via dense pooling matrices; emitted directly in kernel layout
    # (C, B, 14, 14) so no extra transpose pass is needed.
    pooled = jnp.einsum('bchw,ih,jw->cbij', x, ph, pw)        # (1024, B, 14, 14)

    n_true = B * OUT_HW * OUT_HW
    n_pad = ((n_true + TN - 1) // TN) * TN
    num_tiles = n_pad // TN

    xm = pooled.reshape(C_IN, n_true).astype(jnp.bfloat16)
    xm = jnp.pad(xm, ((0, 0), (0, n_pad - n_true)))           # zero pad columns

    w1 = params['w1'].astype(jnp.bfloat16)
    w2 = params['w2'].astype(jnp.bfloat16)

    # --- kernel A: 1x1 conv #1 + per-tile BN partial sums (parallel over N) --
    h, psum, psumsq = pl.pallas_call(
        _conv1_stats_kernel,
        out_shape=(
            jax.ShapeDtypeStruct((C_MID, n_pad), jnp.float32),
            jax.ShapeDtypeStruct((num_tiles, C_MID, 1), jnp.float32),
            jax.ShapeDtypeStruct((num_tiles, C_MID, 1), jnp.float32),
        ),
        grid_spec=pltpu.PrefetchScalarGridSpec(
            num_scalar_prefetch=0,
            grid=(num_tiles,),
            in_specs=[
                pl.BlockSpec((C_IN, TN), lambda i: (0, i)),
                pl.BlockSpec((C_MID, C_IN), lambda i: (0, 0)),      # resident
            ],
            out_specs=(
                pl.BlockSpec((C_MID, TN), lambda i: (0, i)),
                pl.BlockSpec((1, C_MID, 1), lambda i: (i, 0, 0)),
                pl.BlockSpec((1, C_MID, 1), lambda i: (i, 0, 0)),
            ),
        ),
        compiler_params=pltpu.CompilerParams(
            dimension_semantics=("parallel",)),
    )(xm, w1)

    # --- tiny XLA epilogue: fold batch stats into per-channel scale/shift ----
    # (pad columns of h are exactly zero -> they contribute nothing to the
    #  sums; only the divisor uses the true N)
    inv_n = jnp.float32(1.0 / n_true)
    mean = jnp.sum(psum, axis=0) * inv_n                        # (C_MID, 1)
    var = jnp.sum(psumsq, axis=0) * inv_n - mean * mean         # biased variance
    scale = params['gamma'] / jnp.sqrt(var + BN_EPS)            # (C_MID, 1)
    shift = params['beta'] - scale * mean                       # (C_MID, 1)

    # --- kernel B: BN(scale/shift) + ReLU + 1x1 conv #2 (parallel over N) ----
    out_pad = pl.pallas_call(
        _bn_relu_conv2_kernel,
        out_shape=jax.ShapeDtypeStruct((NUM_CLASSES, n_pad), jnp.float32),
        grid_spec=pltpu.PrefetchScalarGridSpec(
            num_scalar_prefetch=0,
            grid=(num_tiles,),
            in_specs=[
                pl.BlockSpec((C_MID, TN), lambda i: (0, i)),
                pl.BlockSpec((C_MID, 1), lambda i: (0, 0)),         # resident
                pl.BlockSpec((C_MID, 1), lambda i: (0, 0)),         # resident
                pl.BlockSpec((NUM_CLASSES, C_MID), lambda i: (0, 0)),
                pl.BlockSpec((NUM_CLASSES, 1), lambda i: (0, 0)),
            ],
            out_specs=pl.BlockSpec((NUM_CLASSES, TN), lambda i: (0, i)),
        ),
        compiler_params=pltpu.CompilerParams(
            dimension_semantics=("parallel",)),
    )(h, scale, shift, w2, params['b2'])

    # drop pad columns, back to NCHW: (num_classes, B*196) -> (B, C, 14, 14)
    out = out_pad[:, :n_true].reshape(NUM_CLASSES, B, OUT_HW, OUT_HW)
    return out.transpose(1, 0, 2, 3)


# ------------------------------ reference ------------------------------------

def f_confidence_ref(x, params):
    """Pure-JAX f32 reference (mirrors the PyTorch forward, training-mode BN)."""
    B, C, H, W = x.shape
    ph = _adaptive_pool_matrix(H, OUT_HW)
    pw = _adaptive_pool_matrix(W, OUT_HW)
    pooled = jnp.einsum('bchw,ih,jw->bcij', x, ph, pw,
                        precision=jax.lax.Precision.HIGHEST)
    h = jnp.einsum('oc,bchw->bohw', params['w1'], pooled,
                   precision=jax.lax.Precision.HIGHEST) \
        + params['b1'].reshape(1, -1, 1, 1)
    mean = jnp.mean(h, axis=(0, 2, 3), keepdims=True)
    var = jnp.mean((h - mean) ** 2, axis=(0, 2, 3), keepdims=True)
    hn = params['gamma'].reshape(1, -1, 1, 1) * (h - mean) / jnp.sqrt(var + BN_EPS) \
        + params['beta'].reshape(1, -1, 1, 1)
    r = jnp.maximum(hn, 0.0)
    return jnp.einsum('oc,bchw->bohw', params['w2'], r,
                      precision=jax.lax.Precision.HIGHEST) \
        + params['b2'].reshape(1, -1, 1, 1)


def init_params(key):
    # init_conv_gaussian(x, fill_bias=0): gaussian conv weights, zero biases.
    k1, k2 = jax.random.split(key)
    return {
        'w1': 0.01 * jax.random.normal(k1, (C_MID, C_IN), jnp.float32),
        'b1': jnp.zeros((C_MID, 1), jnp.float32),     # no-op under training BN
        'gamma': jnp.ones((C_MID, 1), jnp.float32),   # BatchNorm2d default weight
        'beta': jnp.zeros((C_MID, 1), jnp.float32),   # BatchNorm2d default bias
        'w2': 0.01 * jax.random.normal(k2, (NUM_CLASSES, C_MID), jnp.float32),
        'b2': jnp.zeros((NUM_CLASSES, 1), jnp.float32),
    }


if __name__ == "__main__":
    key = jax.random.PRNGKey(0)
    kx, kp = jax.random.split(key)
    # valid input per module docstring: one spatial dim must be 14
    B, H, W = 2, 14, 16
    x = jax.random.normal(kx, (B, C_IN, H, W), jnp.float32)
    params = init_params(kp)

    out = f_confidence(x, params)
    out = jax.block_until_ready(out)

    ref = f_confidence_ref(x, params)
    assert out.shape == (B, NUM_CLASSES, OUT_HW, OUT_HW), out.shape
    assert np.allclose(np.asarray(out), np.asarray(ref), atol=1e-2, rtol=1e-2), \
        f"max abs diff {np.max(np.abs(np.asarray(out) - np.asarray(ref)))}"

    print("KERNEL_OK")
</pallas_src>

<mosaic_0001>
module attributes {stable_mosaic.version = 11 : i64} {
  func.func @_conv1_stats_kernel(%arg0: i32, %arg1: memref<1024x256xbf16, #tpu.memory_space<vmem>>, %arg2: memref<512x1024xbf16, #tpu.memory_space<vmem>>, %arg3: memref<512x256xf32, #tpu.memory_space<vmem>>, %arg4: memref<1x512x1xf32, #tpu.memory_space<vmem>>, %arg5: memref<1x512x1xf32, #tpu.memory_space<vmem>>) attributes {dimension_semantics = [#tpu.dimension_semantics<parallel>], iteration_bounds = array<i64: 2>, scalar_prefetch = 0 : i64, scratch_operands = 0 : i64, tpu.core_type = #tpu.core_type<tc>, window_params = [{transform_indices = @transform_0, window_bounds = array<i64: 1024, 256>}, {pipeline_mode = #tpu.pipeline_mode<synchronous>, transform_indices = @transform_1, window_bounds = array<i64: 512, 1024>}, {transform_indices = @transform_2, window_bounds = array<i64: 512, 256>}, {transform_indices = @transform_3, window_bounds = array<i64: 1, 512, 1>}, {transform_indices = @transform_4, window_bounds = array<i64: 1, 512, 1>}]} {
    %c0 = arith.constant 0 : index
    %c0_0 = arith.constant 0 : index
    %0 = vector.load %arg2[%c0, %c0_0] : memref<512x1024xbf16, #tpu.memory_space<vmem>>, vector<512x1024xbf16>
    %c0_1 = arith.constant 0 : index
    %c0_2 = arith.constant 0 : index
    %1 = vector.load %arg1[%c0_1, %c0_2] : memref<1024x256xbf16, #tpu.memory_space<vmem>>, vector<1024x256xbf16>
    %cst = arith.constant dense<0.000000e+00> : vector<512x256xf32>
    %2 = tpu.matmul %0, %1, %cst {dimension_numbers = #tpu.dot_dimension_numbers<[1], [0], [0], [1], [0, 0, 1, 1], [], []>} : vector<512x1024xbf16>, vector<1024x256xbf16>, vector<512x256xf32> -> vector<512x256xf32>
    %c0_3 = arith.constant 0 : index
    %c0_4 = arith.constant 0 : index
    %3 = vector.load %arg3[%c0_3, %c0_4] : memref<512x256xf32, #tpu.memory_space<vmem>>, vector<512x256xf32>
    tpu.vector_store %arg3[%c0_3, %c0_4], %2 {strides = array<i32>} : memref<512x256xf32, #tpu.memory_space<vmem>>, vector<512x256xf32>,
    %cst_5 = arith.constant dense<0.000000e+00> : vector<512xf32>
    %4 = vector.multi_reduction <add>, %2, %cst_5 [1] : vector<512x256xf32> to vector<512xf32>
    %5 = vector.shape_cast %4 : vector<512xf32> to vector<512x1xf32>
    %6 = arith.mulf %2, %2 : vector<512x256xf32>
    %cst_6 = arith.constant dense<0.000000e+00> : vector<512xf32>
    %7 = vector.multi_reduction <add>, %6, %cst_6 [1] : vector<512x256xf32> to vector<512xf32>
    %8 = vector.shape_cast %7 : vector<512xf32> to vector<512x1xf32>
    %9 = vector.shape_cast %5 : vector<512x1xf32> to vector<1x512x1xf32>
    %c0_7 = arith.constant 0 : index
    %c0_8 = arith.constant 0 : index
    %c0_9 = arith.constant 0 : index
    %10 = vector.load %arg4[%c0_7, %c0_8, %c0_9] : memref<1x512x1xf32, #tpu.memory_space<vmem>>, vector<1x512x1xf32>
    tpu.vector_store %arg4[%c0_7, %c0_8, %c0_9], %9 {strides = array<i32>} : memref<1x512x1xf32, #tpu.memory_space<vmem>>, vector<1x512x1xf32>,
    %11 = vector.shape_cast %8 : vector<512x1xf32> to vector<1x512x1xf32>
    %c0_10 = arith.constant 0 : index
    %c0_11 = arith.constant 0 : index
    %c0_12 = arith.constant 0 : index
    %12 = vector.load %arg5[%c0_10, %c0_11, %c0_12] : memref<1x512x1xf32, #tpu.memory_space<vmem>>, vector<1x512x1xf32>
    tpu.vector_store %arg5[%c0_10, %c0_11, %c0_12], %11 {strides = array<i32>} : memref<1x512x1xf32, #tpu.memory_space<vmem>>, vector<1x512x1xf32>,
    return
  }
  func.func @transform_0(%arg0: i32) -> (i32, i32) {
    %c0_i32 = arith.constant 0 : i32
    %c0_i32_0 = arith.constant 0 : i32
    return %c0_i32, %arg0 : i32, i32
  }
  func.func @transform_1(%arg0: i32) -> (i32, i32) {
    %c0_i32 = arith.constant 0 : i32
    %c0_i32_0 = arith.constant 0 : i32
    %c0_i32_1 = arith.constant 0 : i32
    return %c0_i32, %c0_i32_0 : i32, i32
  }
  func.func @transform_2(%arg0: i32) -> (i32, i32) {
    %c0_i32 = arith.constant 0 : i32
    %c0_i32_0 = arith.constant 0 : i32
    return %c0_i32, %arg0 : i32, i32
  }
  func.func @transform_3(%arg0: i32) -> (i32, i32, i32) {
    %c0_i32 = arith.constant 0 : i32
    %c0_i32_0 = arith.constant 0 : i32
    %c0_i32_1 = arith.constant 0 : i32
    return %arg0, %c0_i32, %c0_i32_0 : i32, i32, i32
  }
  func.func @transform_4(%arg0: i32) -> (i32, i32, i32) {
    %c0_i32 = arith.constant 0 : i32
    %c0_i32_0 = arith.constant 0 : i32
    %c0_i32_1 = arith.constant 0 : i32
    return %arg0, %c0_i32, %c0_i32_0 : i32, i32, i32
  }
}

</mosaic_0001>

<bundles_post_ra>
// kernel: tpu_custom_call.1
= control target key start
LH: loop header
LB: loop body
LE: loop exit
PB: predicated region body
PF: predicated region fallthrough
CT: control target
= control target key end

     0   :  { %10 = vsyncpa [#allocation3], 0  ;;  %s6905_s0 = inlined_call_operand.hbm [shape: bf16[1024,512], index: 0, kind: input, shape index: {}]   ;;  %s6906_s1 = inlined_call_operand.hbm [shape: bf16[512,1024], index: 1, kind: input, shape index: {}]   ;;  %s6907_s2 = inlined_call_operand.hbm [shape: f32[512,512], index: 2, kind: output, shape index: {0}]   ;;  %s6908_s3 = inlined_call_operand.vmem [shape: f32[2,512,1], index: 3, kind: output, shape index: {1}]   ;;  %s6909_s4 = inlined_call_operand.vmem [shape: f32[2,512,1], index: 4, kind: output, shape index: {2}]  }
   0x1   :  { %12 = vsyncpa [#allocation3 + $0x1], 0 }
   0x2   :  { %13 = vsyncpa [#allocation6], 0 }
   0x3   :  { %14 = vsyncpa [#allocation4], 0 }
   0x4   :  { %16 = vsyncpa [#allocation4 + $0x1], 0  ;;  %s6121_s15 = smov 0   ;;  %s6123_s16 = smov 0  }
   0x5   :  { %s6125_s17 = smov 0   ;;  %s6127_s18 = smov 0  }
   0x6 LB: > { %s6142_s19 = sadd.s32 4294967295, %s6083_s18   ;;  %s4906_s20 = sadd.s32 4294967294, %s6083_s18   ;;  %s6083_s18 = sphi %s6127_s18, %s6933_s18   ;;  %s6079_s17 = sphi %s6125_s17, %s6932_s17   ;;  %s6075_s16 = sphi %s6123_s16, %s6931_s16   ;;  %s6071_s15 = sphi %s6121_s15, %s6930_s15  }
   0x7   : > { %s6146_s21 = sadd.s32 1, %s6083_s18   ;;  %s29_s22 = sadd.s32 1, %s6079_s17 }
   0x8   : > { %s26_s23 = ssub.s32 %s6083_s18, %s6146_s21  ;;  %p36_p0 = scmp.ne.s32.totalorder %s6079_s17, %s6075_s16 }
   0x9   : > { %p27_p1 = scmp.eq.s32.totalorder %s26_s23, 0  ;;  %p37_p2 = scmp.eq.s32.totalorder %s6083_s18, 0 }
   0xa   : > { %p42_p3 = scmp.ne.s32.totalorder %s6075_s16, %s6071_s15  ;;  %p6910_p4 = scmp.eq.s32.totalorder %s6142_s19, 0 }
   0xb   : > { %s6158_s24 = scalar_select %p27_p1, %s6079_s17, %s29_s22  }
   0xc   : > { %p6160_p5 = por %p37_p2, %p36_p0  ;;  %p6166_p6 = por %p6910_p4, %p42_p3 }
   0xd   : > { %p87_p7 = scmp.eq.s32.totalorder %s6142_s19, 1  ;;  %p93_p8 = scmp.eq.s32.totalorder %s4906_s20, 1 }
   0xe   : > { %s6914_s25 = scalar_select %p6160_p5, 1, 0 }
   0xf   : > { %s6915_s26 = scalar_select %p6166_p6, 1, 0 }
  0x10   : > { %p4907_p9 = scmp.ge.s32.totalorder %s6083_s18, 1  ;;  %p152_p10 = scmp.lt.s32.totalorder %s6083_s18, 3 }
  0x11   : > { %p6173_p11 = por %p87_p7, %p36_p0  ;;  %p6177_p12 = por %p93_p8, %p42_p3 }
  0x12   : > { %p6181_p13 = pnand %p4907_p9, %p152_p10  ;;  %s6085_s30 = smov [#allocation5]  }
  0x13   : > { %s6916_s27 = scalar_select %p6173_p11, 1, 0 }
  0x14   : > { %s6917_s28 = scalar_select %p6177_p12, 1, 0 }
  0x15   : > { %s6918_s29 = scalar_select %p6181_p13, 1, 0 }
  0x16   : > { %p5706_p1 = pneg %p6181_p13  ;;  %s164_s5 = sshll.u32 %s6085_s30, 4  ;;  %s165_s5 = int_to_ptr.vmem [resolvable:$true] %s164_s5 }
  0x17   : > { %s178_s7 = sand.u32 1, %s6079_s17   ;;  %s5955_s10 = scalar_lea.hbm %s6906_s1, 32768 }
  0x18   : > { %p6189_p2 = pnand %p5706_p1, %p6910_p4  ;;  %p5956_p7 = scmp.ne.s32.totalorder %s6906_s1, %s5955_s10 }
  0x19   : > { %p5962_p1 = scmp.lt.u32.totalorder %s5955_s10, %s6906_s1 }
  0x1a   : > { %p5957_p8 = pneg %p6189_p2 }
  0x1c   : > { %p5958_p9 = pnand %p5957_p8, %p5956_p7 }
  0x1e   : > { %p5959_p10 = pneg %p5958_p9 }
  0x20   : > { %p5964_p4 = pnand %p5962_p1, %p5959_p10 }
  0x22   : > { %5967 = shalt.err (!%p5964_p4)
}
  0x23   : > { %s5968_s20 = scalar_lea.vmem %s165_s5, 32768  ;;  %p5976_p11 = scmp.lt.s32.totalorder %s165_s5, %s165_s5 }
  0x24   : > { %p5969_p0 = scmp.ne.s32.totalorder %s165_s5, %s5968_s20  ;;  %p5977_p6 = scmp.lt.s32.totalorder %s5968_s20, %s5968_s20 }
  0x26   : > { %p5971_p3 = pnand %p5969_p0, %p5957_p8  ;;  %p5978_p13 = por %p5977_p6, %p5976_p11 }
  0x28   : > { %p5972_p12 = pneg %p5971_p3 }
  0x2a   : > { %p5979_p5 = pnand %p5978_p13, %p5972_p12 }
  0x2c   : > { %5982 = shalt.err (!%p5979_p5)
}
  0x2d   : > { %s6086_s22 = smov 512   ;;  %s6087_s23 = smov 32  }
  0x2e   : > { %5709 = dma.hbm_to_vmem [thread:$0]  (!%p6189_p2), %s6906_s1, 32768, %s165_s5, [#allocation6], %s6086_s22, %s6086_s22, %s6087_s23  }
  0x2f   : > { %p6920_p4 = scmp.ne.s32.totalorder %s6914_s25, 0  ;;  %p6921_p7 = scmp.lt.s32.totalorder %s6083_s18, 2 }
  0x30   : > { %s4910_s10 = sshll.u32 %s178_s7, 10  ;;  %s5310_s11 = sshll.u32 %s6083_s18, 7 }
  0x31   : > { %p6216_p0 = pnand %p6921_p7, %p6920_p4  ;;  %s6224_s14 = scalar_lea.hbm %s6905_s0, %s5310_s11 }
  0x32   : > { %s182_s5 = scalar_lea.vmem [#allocation2], %s4910_s10  ;;  %s6228_s6 = scalar_lea.sflag [#allocation3], %s178_s7 }
  0x33   : > { %s189_s25 = sshll.u32 %s182_s5, 4  ;;  %s5983_s20 = scalar_lea.hbm %s6224_s14, 16384  ;;  %s6226_s25 = int_to_ptr.vmem [resolvable:$true] %s189_s25 }
  0x34   : > { %p5984_p5 = scmp.ne.s32.totalorder %s6224_s14, %s5983_s20  ;;  %p5985_p6 = pneg %p6216_p0 }
  0x35   : > { %s5988_s30 = scalar_lea.hbm %s6905_s0, 32768  ;;  %p5989_p13 = scmp.lt.u32.totalorder %s6224_s14, %s6905_s0 }
  0x36   : > { %p5986_p11 = pnand %p5985_p6, %p5984_p5  ;;  %p5990_p2 = scmp.lt.u32.totalorder %s5988_s30, %s5983_s20 }
  0x37   : > { %p5992_p8 = scmp.lt.u32.totalorder %s5983_s20, %s6224_s14 }
  0x38   : > { %p5987_p12 = pneg %p5986_p11  ;;  %p5991_p3 = por %p5990_p2, %p5989_p13 }
  0x3a   : > { %p5993_p9 = por %p5992_p8, %p5991_p3 }
  0x3c   : > { %p5994_p10 = pnand %p5993_p9, %p5987_p12 }
  0x3e   : > { %5997 = shalt.err (!%p5994_p10)
}
  0x3f   : > { %s5998_s7 = scalar_lea.vmem %s6226_s25, 16384  ;;  %s6088_s10 = smov [#allocation2]  }
  0x40   : > { %p5999_p1 = scmp.ne.s32.totalorder %s6226_s25, %s5998_s7  ;;  %s6003_s12 = sshll.u32 %s6088_s10, 4  ;;  %s6004_s12 = int_to_ptr.vmem [resolvable:$false] %s6003_s12 }
  0x41   : > { %s6005_s13 = scalar_lea.vmem %s6004_s12, 32768  ;;  %p6006_p5 = scmp.lt.s32.totalorder %s6226_s25, %s6004_s12 }
  0x42   : > { %p6001_p4 = pnand %p5999_p1, %p5985_p6  ;;  %p6007_p11 = scmp.lt.s32.totalorder %s6005_s13, %s5998_s7 }
  0x44   : > { %p6002_p7 = pneg %p6001_p4  ;;  %p6008_p13 = por %p6007_p11, %p6006_p5 }
  0x46   : > { %p6009_p2 = pnand %p6008_p13, %p6002_p7 }
  0x48   : > { %6012 = shalt.err (!%p6009_p2)
}
  0x49   : > { %s6089_s5 = smov 256   ;;  %s6090_s20 = smov 128  }
  0x4a   : > { %s6091_s22 = smov 8   ;;  %p6923_p6 = scmp.ne.s32.totalorder %s6918_s29, 0 }
  0x4b   : > { %5713 = dma.hbm_to_vmem [thread:$0]  (!%p6216_p0), %s6224_s14, 16384, %s6226_s25, %s6228_s6, %s6089_s5, %s6090_s20, %s6091_s22  }
  0x4c   : > { %201 = sbr.rel (%p6923_p6) target bundleno = 1035 (0x40b), region = 28  ;;  %s6259_s23 = sand.u32 (!%p6923_p6), 1, %s6075_s16  }
  0x4d   : > { %s4914_s30 = sshll.u32 (!%p6923_p6), %s6259_s23, 10  ;;  %s204_s8 = scalar_lea.sflag (!%p6923_p6), [#allocation3], %s6259_s23 }
  0x4e   : > { %s6265_s11 = scalar_lea.vmem (!%p6923_p6), [#allocation2], %s4914_s30  ;;  %p6924_p12 = scmp.ne.s32.totalorder (!%p6923_p6), %s6915_s26, 0 }
  0x53   : > { %6058 = dma.done.wait (%p6924_p12), %s204_s8, 16384  }
  0x54   : > { %6060 = vsyncadd (%p6924_p12), %s204_s8, 4294950912  ;;  %p6925_p0 = scmp.eq.s32.totalorder %s6142_s19, 0 }
  0x56   : > { %6062 = dma.done.wait (%p6925_p0), [#allocation6], 32768   ;;  %p6926_p3 = pmov %p6925_p0 }
  0x57   : > { %v5763_v0 = vld [vmem:[%s6265_s11 + $0x4] ss:$8 sps:$4 sm:$0xff]   ;;  %v5767_v2 = vld [vmem:[%s6265_s11] ss:$8 sps:$4 sm:$0xff]   ;;  %v5769_v4 = vld [vmem:[%s6265_s11 + $0x14] ss:$8 sps:$4 sm:$0xff]  }
  0x58   : > { %6064 = vsyncadd (%p6926_p3), [#allocation6], 4294934528  ;;  %v5765_v1 = vld [vmem:[%s6265_s11 + $0x204] ss:$8 sps:$4 sm:$0xff]   ;;  %2562 = vmatprep.subr.bf16.mxu1 %v5763_v0  ;;  %v5768_v3 = vld [vmem:[%s6265_s11 + $0x200] ss:$8 sps:$4 sm:$0xff]  }
  0x59   : > { %3268 = vmatprep.subr.bf16.mxu0 %v5765_v1  ;;  %2563 = vmatpush1.bf16.msra.mxu1 %v5767_v2  ;;  %v5771_v5 = vld [vmem:[%s6265_s11 + $0x214] ss:$8 sps:$4 sm:$0xff]   ;;  %v5773_v6 = vld [vmem:[%s6265_s11 + $0x10] ss:$8 sps:$4 sm:$0xff]   ;;  %v5775_v8 = vld [vmem:[%s6265_s11 + $0x24] ss:$8 sps:$4 sm:$0xff]  }
  0x5a   : > { %3269 = vmatpush1.bf16.msra.mxu0 %v5768_v3  ;;  %2564 = vmatprep.subr.bf16.mxu1 %v5769_v4  ;;  %v5774_v7 = vld [vmem:[%s6265_s11 + $0x210] ss:$8 sps:$4 sm:$0xff]   ;;  %v5777_v9 = vld [vmem:[%s6265_s11 + $0x224] ss:$8 sps:$4 sm:$0xff]   ;;  %v5779_v10 = vld [vmem:[%s6265_s11 + $0x20] ss:$8 sps:$4 sm:$0xff]  }
  0x5b   : > { %3270 = vmatprep.subr.bf16.mxu0 %v5771_v5  ;;  %v5780_v11 = vld [vmem:[%s6265_s11 + $0x220] ss:$8 sps:$4 sm:$0xff]   ;;  %v5781_v12 = vld [vmem:[%s6265_s11 + $0x34] ss:$8 sps:$4 sm:$0xff]   ;;  %v5785_v14 = vld [vmem:[%s6265_s11 + $0x30] ss:$8 sps:$4 sm:$0xff]  }
  0x5c   : > { %v5783_v13 = vld [vmem:[%s6265_s11 + $0x234] ss:$8 sps:$4 sm:$0xff]   ;;  %v5786_v15 = vld [vmem:[%s6265_s11 + $0x230] ss:$8 sps:$4 sm:$0xff]   ;;  %v5787_v16 = vld [vmem:[%s6265_s11 + $0x44] ss:$8 sps:$4 sm:$0xff]  }
  0x5d   : > { %2565 = vmatpush1.bf16.msra.mxu1 %v5773_v6  ;;  %v5789_v17 = vld [vmem:[%s6265_s11 + $0x244] ss:$8 sps:$4 sm:$0xff]   ;;  %v5791_v18 = vld [vmem:[%s6265_s11 + $0x40] ss:$8 sps:$4 sm:$0xff]   ;;  %v5793_v20 = vld [vmem:[%s6265_s11 + $0x54] ss:$8 sps:$4 sm:$0xff]  }
  0x5e   : > { %3271 = vmatpush1.bf16.msra.mxu0 %v5774_v7  ;;  %2566 = vmatprep.subr.bf16.mxu1 %v5775_v8  ;;  %v5792_v19 = vld [vmem:[%s6265_s11 + $0x240] ss:$8 sps:$4 sm:$0xff]   ;;  %v5795_v21 = vld [vmem:[%s6265_s11 + $0x254] ss:$8 sps:$4 sm:$0xff]   ;;  %v5797_v22 = vld [vmem:[%s6265_s11 + $0x50] ss:$8 sps:$4 sm:$0xff]  }
  0x5f   : > { %3272 = vmatprep.subr.bf16.mxu0 %v5777_v9  ;;  %v5798_v23 = vld [vmem:[%s6265_s11 + $0x250] ss:$8 sps:$4 sm:$0xff]   ;;  %v5799_v24 = vld [vmem:[%s6265_s11 + $0x64] ss:$8 sps:$4 sm:$0xff]   ;;  %v5803_v26 = vld [vmem:[%s6265_s11 + $0x60] ss:$8 sps:$4 sm:$0xff]  }
  0x60   : > { %v5801_v25 = vld [vmem:[%s6265_s11 + $0x264] ss:$8 sps:$4 sm:$0xff]   ;;  %v5804_v27 = vld [vmem:[%s6265_s11 + $0x260] ss:$8 sps:$4 sm:$0xff]   ;;  %v5805_v28 = vld [vmem:[%s6265_s11 + $0x74] ss:$8 sps:$4 sm:$0xff]  }
  0x61   : > { %2567 = vmatpush1.bf16.msra.mxu1 %v5779_v10  ;;  %v5807_v29 = vld [vmem:[%s6265_s11 + $0x274] ss:$8 sps:$4 sm:$0xff]   ;;  %v5809_v30 = vld [vmem:[%s6265_s11 + $0x70] ss:$8 sps:$4 sm:$0xff]   ;;  %v5811_v32 = vld [vmem:[%s6265_s11 + $0x84] ss:$8 sps:$4 sm:$0xff]  }
  0x62   : > { %3273 = vmatpush1.bf16.msra.mxu0 %v5780_v11  ;;  %2568 = vmatprep.subr.bf16.mxu1 %v5781_v12  ;;  %v5810_v31 = vld [vmem:[%s6265_s11 + $0x270] ss:$8 sps:$4 sm:$0xff]   ;;  %v5813_v33 = vld [vmem:[%s6265_s11 + $0x284] ss:$8 sps:$4 sm:$0xff]   ;;  %v5815_v34 = vld [vmem:[%s6265_s11 + $0x80] ss:$8 sps:$4 sm:$0xff]  }
  0x63   : > { %3274 = vmatprep.subr.bf16.mxu0 %v5783_v13  ;;  %v5816_v35 = vld [vmem:[%s6265_s11 + $0x280] ss:$8 sps:$4 sm:$0xff]   ;;  %v5817_v36 = vld [vmem:[%s6265_s11 + $0x94] ss:$8 sps:$4 sm:$0xff]   ;;  %v5821_v38 = vld [vmem:[%s6265_s11 + $0x90] ss:$8 sps:$4 sm:$0xff]  }
  0x64   : > { %v5819_v37 = vld [vmem:[%s6265_s11 + $0x294] ss:$8 sps:$4 sm:$0xff]   ;;  %v5822_v39 = vld [vmem:[%s6265_s11 + $0x290] ss:$8 sps:$4 sm:$0xff]   ;;  %v5823_v40 = vld [vmem:[%s6265_s11 + $0xa4] ss:$8 sps:$4 sm:$0xff]  }
  0x65   : > { %2569 = vmatpush1.bf16.msra.mxu1 %v5785_v14  ;;  %v5825_v41 = vld [vmem:[%s6265_s11 + $0x2a4] ss:$8 sps:$4 sm:$0xff]   ;;  %v5827_v42 = vld [vmem:[%s6265_s11 + $0xa0] ss:$8 sps:$4 sm:$0xff]   ;;  %v5829_v44 = vld [vmem:[%s6265_s11 + $0xb4] ss:$8 sps:$4 sm:$0xff]  }
  0x66   : > { %3275 = vmatpush1.bf16.msra.mxu0 %v5786_v15  ;;  %2570 = vmatprep.subr.bf16.mxu1 %v5787_v16  ;;  %v5828_v43 = vld [vmem:[%s6265_s11 + $0x2a0] ss:$8 sps:$4 sm:$0xff]   ;;  %v5831_v45 = vld [vmem:[%s6265_s11 + $0x2b4] ss:$8 sps:$4 sm:$0xff]   ;;  %v5833_v46 = vld [vmem:[%s6265_s11 + $0xb0] ss:$8 sps:$4 sm:$0xff]  }
  0x67   : > { %3276 = vmatprep.subr.bf16.mxu0 %v5789_v17  ;;  %v5834_v47 = vld [vmem:[%s6265_s11 + $0x2b0] ss:$8 sps:$4 sm:$0xff]   ;;  %v258_v48 = vld [vmem:[#allocation5] sm:$0xff]  ;;  %v5841_v58 = vld [vmem:[%s6265_s11 + $0xd4] ss:$8 sps:$4 sm:$0xff]   ;;  %s6413_s26 = scalar_lea.vmem [#allocation7], %s4914_s30 }
  0x68   : > { %v262_v49 = vld [vmem:[#allocation5 + $0x20] sm:$0xff]  ;;  %v260_v50 = vld [vmem:[#allocation5 + $0x10] sm:$0xff]  ;;  %p248_p8 = scmp.lt.s32.totalorder %s6142_s19, 1  ;;  %vm4614_vm0 = vcmask 7168   ;;  %s5313_s13 = sshll.u32 %s6142_s19, 8 }
  0x69   : > { %2571 = vmatpush1.bf16.msra.mxu1 %v5791_v18  ;;  %v264_v51 = vld [vmem:[#allocation5 + $0x30] sm:$0xff]  ;;  %v5835_v52 = vld [vmem:[%s6265_s11 + $0xc4] ss:$8 sps:$4 sm:$0xff]   ;;  %v4922_v53 = vcombine.high %v258_v48, %v262_v49  ;;  %v5839_v56 = vld [vmem:[%s6265_s11 + $0xc0] ss:$8 sps:$4 sm:$0xff]   ;;  %v4921_v12 = vcombine.low %v258_v48, %v262_v49  ;;  %s4767_s5 = sshll.u32 %s6413_s26, 4  ;;  %s6733_s30 = scalar_lea.hbm %s6907_s2, %s5313_s13  ;;  %s6735_s5 = int_to_ptr.vmem [resolvable:$true] %s4767_s5 }
  0x6a   : > { %3277 = vmatpush1.bf16.msra.mxu0 %v5792_v19  ;;  %2572 = vmatprep.subr.bf16.mxu1 %v5793_v20  ;;  %v5837_v54 = vld [vmem:[%s6265_s11 + $0x2c4] ss:$8 sps:$4 sm:$0xff]   ;;  %v4926_v55 = vcombine.high %v260_v50, %v264_v51  ;;  %v5840_v57 = vld [vmem:[%s6265_s11 + $0x2c0] ss:$8 sps:$4 sm:$0xff]   ;;  %v5843_v59 = vld [vmem:[%s6265_s11 + $0x2d4] ss:$8 sps:$4 sm:$0xff]   ;;  %v4925_v13 = vcombine.low %v260_v50, %v264_v51 }
  0x6b   : > { %3278 = vmatprep.subr.bf16.mxu0 %v5795_v21  ;;  %2594 = vmatprep.mubr.bf16.mxu1 %v4922_v53  ;;  %v5845_v60 = vld [vmem:[%s6265_s11 + $0xd0] ss:$8 sps:$4 sm:$0xff]   ;;  %v5847_v62 = vld [vmem:[%s6265_s11 + $0xe4] ss:$8 sps:$4 sm:$0xff]   ;;  %v5851_v0 = vld [vmem:[%s6265_s11 + $0xe0] ss:$8 sps:$4 sm:$0xff]  }
  0x6c   : > { %3300 = vmatprep.mubr.bf16.mxu0 %v4926_v55  ;;  %v5846_v61 = vld [vmem:[%s6265_s11 + $0x2d0] ss:$8 sps:$4 sm:$0xff]   ;;  %v5849_v63 = vld [vmem:[%s6265_s11 + $0x2e4] ss:$8 sps:$4 sm:$0xff]   ;;  %v5852_v1 = vld [vmem:[%s6265_s11 + $0x2e0] ss:$8 sps:$4 sm:$0xff]  }
  0x6d   : > { %2573 = vmatpush1.bf16.msra.mxu1 %v5797_v22  ;;  %v5853_v2 = vld [vmem:[%s6265_s11 + $0xf4] ss:$8 sps:$4 sm:$0xff]   ;;  %v5857_v4 = vld [vmem:[%s6265_s11 + $0xf0] ss:$8 sps:$4 sm:$0xff]   ;;  %v5861_v6 = vld [vmem:[%s6265_s11 + $0x104] ss:$8 sps:$4 sm:$0xff]  }
  0x6e   : > { %3279 = vmatpush1.bf16.msra.mxu0 %v5798_v23  ;;  %2574 = vmatprep.subr.bf16.mxu1 %v5799_v24  ;;  %v5855_v3 = vld [vmem:[%s6265_s11 + $0x2f4] ss:$8 sps:$4 sm:$0xff]   ;;  %v5858_v5 = vld [vmem:[%s6265_s11 + $0x2f0] ss:$8 sps:$4 sm:$0xff]   ;;  %v5864_v7 = vld [vmem:[%s6265_s11 + $0x304] ss:$8 sps:$4 sm:$0xff]  }
  0x6f   : > { %3280 = vmatprep.subr.bf16.mxu0 %v5801_v25  ;;  %v266_v8 = vld [vmem:[#allocation5 + $0x40] sm:$0xff]  ;;  %v268_v10 = vld [vmem:[#allocation5 + $0x50] sm:$0xff]  ;;  %s6525_s29 = scalar_select %p248_p8, %s6142_s19, 1 }
  0x70   : > { %v270_v9 = vld [vmem:[#allocation5 + $0x60] sm:$0xff]  ;;  %v272_v11 = vld [vmem:[#allocation5 + $0x70] sm:$0xff]  ;;  %s4744_s8 = scalar_lea.sflag [#allocation4], %s6259_s23  ;;  %p6927_p10 = scmp.ne.s32.totalorder %s6916_s27, 0 }
  0x71   : > { %2575 = vmatpush1.bf16.msra.mxu1 %v5803_v26  ;;  %v5859_v14 = vld [vmem:[%s6265_s11 + $0x100] ss:$8 sps:$4 sm:$0xff]   ;;  %v4930_v16 = vcombine.high %v266_v8, %v270_v9  ;;  %v4934_v17 = vcombine.high %v268_v10, %v272_v11  ;;  %v5867_v18 = vld [vmem:[%s6265_s11 + $0x114] ss:$8 sps:$4 sm:$0xff]   ;;  %v5865_v23 = vld [vmem:[%s6265_s11 + $0x110] ss:$8 sps:$4 sm:$0xff]  }
  0x72   : > { %3281 = vmatpush1.bf16.msra.mxu0 %v5804_v27  ;;  %2576 = vmatprep.subr.bf16.mxu1 %v5805_v28  ;;  %v5862_v15 = vld [vmem:[%s6265_s11 + $0x300] ss:$8 sps:$4 sm:$0xff]   ;;  %v5870_v19 = vld [vmem:[%s6265_s11 + $0x314] ss:$8 sps:$4 sm:$0xff]   ;;  %v5868_v24 = vld [vmem:[%s6265_s11 + $0x310] ss:$8 sps:$4 sm:$0xff]   ;;  %v4929_v28 = vcombine.low %v266_v8, %v270_v9 }
  0x73   : > { %3282 = vmatprep.subr.bf16.mxu0 %v5807_v29  ;;  %v274_v20 = vld [vmem:[#allocation5 + $0x80] sm:$0xff]  ;;  %v276_v22 = vld [vmem:[#allocation5 + $0x90] sm:$0xff]  ;;  %v4933_v29 = vcombine.low %v268_v10, %v272_v11  ;;  %s5311_s9 = sshll.u32 %s6525_s29, 9  ;;  %s6092_s19 = smov [#allocation7]  }
  0x74   : > { %v278_v21 = vld [vmem:[#allocation5 + $0xa0] sm:$0xff]  ;;  %v280_v25 = vld [vmem:[#allocation5 + $0xb0] sm:$0xff]  ;;  %s6535_s6 = scalar_lea.vmem %s6908_s3, %s5311_s9  ;;  %s6545_s12 = scalar_lea.vmem %s6909_s4, %s5311_s9 }
  0x75   : > { %2577 = vmatpush1.bf16.msra.mxu1 %v5809_v30  ;;  %v5873_v26 = vld [vmem:[%s6265_s11 + $0x124] ss:$8 sps:$4 sm:$0xff]   ;;  %v4938_v30 = vcombine.high %v274_v20, %v278_v21  ;;  %v5883_v48 = vld [vmem:[%s6265_s11 + $0x140] ss:$8 sps:$4 sm:$0xff]   ;;  %v5891_v50 = vld [vmem:[%s6265_s11 + $0x154] ss:$8 sps:$4 sm:$0xff]  }
  0x76   : > { %3283 = vmatpush1.bf16.msra.mxu0 %v5810_v31  ;;  %2578 = vmatprep.subr.bf16.mxu1 %v5811_v32  ;;  %v5876_v27 = vld [vmem:[%s6265_s11 + $0x324] ss:$8 sps:$4 sm:$0xff]   ;;  %v4942_v31 = vcombine.high %v276_v22, %v280_v25  ;;  %v5871_v32 = vld [vmem:[%s6265_s11 + $0x120] ss:$8 sps:$4 sm:$0xff]   ;;  %v5894_v51 = vld [vmem:[%s6265_s11 + $0x354] ss:$8 sps:$4 sm:$0xff]  }
  0x77   : > { %3284 = vmatprep.subr.bf16.mxu0 %v5813_v33  ;;  %v5874_v33 = vld [vmem:[%s6265_s11 + $0x320] ss:$8 sps:$4 sm:$0xff]   ;;  %v296_v55 = vld [vmem:[#allocation5 + $0x130] sm:$0xff]  ;;  %v5909_v10 = vld [vmem:[%s6265_s11 + $0x184] ss:$8 sps:$4 sm:$0xff]  }
  0x78   : > { %v5886_v49 = vld [vmem:[%s6265_s11 + $0x340] ss:$8 sps:$4 sm:$0xff]   ;;  %v5901_v8 = vld [vmem:[%s6265_s11 + $0x170] ss:$8 sps:$4 sm:$0xff]   ;;  %v5912_v11 = vld [vmem:[%s6265_s11 + $0x384] ss:$8 sps:$4 sm:$0xff]  }
  0x79   : > { %2579 = vmatpush1.bf16.msra.mxu1 %v5815_v34  ;;  %v5879_v34 = vld [vmem:[%s6265_s11 + $0x134] ss:$8 sps:$4 sm:$0xff]   ;;  %v294_v53 = vld [vmem:[#allocation5 + $0x120] sm:$0xff]  ;;  %v5904_v9 = vld [vmem:[%s6265_s11 + $0x370] ss:$8 sps:$4 sm:$0xff]  }
  0x7a   : > { %3285 = vmatpush1.bf16.msra.mxu0 %v5816_v35  ;;  %2580 = vmatprep.subr.bf16.mxu1 %v5817_v36  ;;  %v5882_v35 = vld [vmem:[%s6265_s11 + $0x334] ss:$8 sps:$4 sm:$0xff]   ;;  %v282_v36 = vld [vmem:[#allocation5 + $0xc0] sm:$0xff] }
  0x7b   : > { %3286 = vmatprep.subr.bf16.mxu0 %v5819_v37  ;;  %v286_v37 = vld [vmem:[#allocation5 + $0xe0] sm:$0xff] }
  0x7d   : > { %2581 = vmatpush1.bf16.msra.mxu1 %v5821_v38  ;;  %v284_v38 = vld [vmem:[#allocation5 + $0xd0] sm:$0xff] }
  0x7e   : > { %3287 = vmatpush1.bf16.msra.mxu0 %v5822_v39  ;;  %2582 = vmatprep.subr.bf16.mxu1 %v5823_v40  ;;  %v288_v39 = vld [vmem:[#allocation5 + $0xf0] sm:$0xff] }
  0x7f   : > { %3288 = vmatprep.subr.bf16.mxu0 %v5825_v41  ;;  %v5877_v40 = vld [vmem:[%s6265_s11 + $0x130] ss:$8 sps:$4 sm:$0xff]  }
  0x80   : > { %v5880_v41 = vld [vmem:[%s6265_s11 + $0x330] ss:$8 sps:$4 sm:$0xff]  }
  0x81   : > { %2583 = vmatpush1.bf16.msra.mxu1 %v5827_v42  ;;  %v5885_v42 = vld [vmem:[%s6265_s11 + $0x144] ss:$8 sps:$4 sm:$0xff]  }
  0x82   : > { %3289 = vmatpush1.bf16.msra.mxu0 %v5828_v43  ;;  %2584 = vmatprep.subr.bf16.mxu1 %v5829_v44  ;;  %v5888_v43 = vld [vmem:[%s6265_s11 + $0x344] ss:$8 sps:$4 sm:$0xff]   ;;  %v4937_v44 = vcombine.low %v274_v20, %v278_v21 }
  0x83   : > { %3290 = vmatprep.subr.bf16.mxu0 %v5831_v45  ;;  %v4941_v45 = vcombine.low %v276_v22, %v280_v25  ;;  %v306_v20 = vld [vmem:[#allocation5 + $0x180] sm:$0xff]  ;;  %v308_v22 = vld [vmem:[#allocation5 + $0x190] sm:$0xff] }
  0x84   : > { %v310_v21 = vld [vmem:[#allocation5 + $0x1a0] sm:$0xff]  ;;  %v5916_v25 = vld [vmem:[%s6265_s11 + $0x390] ss:$8 sps:$4 sm:$0xff]  }
  0x85   : > { %2585 = vmatpush1.bf16.msra.mxu1 %v5833_v46  ;;  %v4946_v46 = vcombine.high %v282_v36, %v286_v37 }
  0x86   : > { %3291 = vmatpush1.bf16.msra.mxu0 %v5834_v47  ;;  %2586 = vmatprep.subr.bf16.mxu1 %v5835_v52  ;;  %v4950_v47 = vcombine.high %v284_v38, %v288_v39  ;;  %v290_v52 = vld [vmem:[#allocation5 + $0x100] sm:$0xff] }
  0x87   : > { %3292 = vmatprep.subr.bf16.mxu0 %v5837_v54  ;;  %v292_v54 = vld [vmem:[#allocation5 + $0x110] sm:$0xff] }
  0x89   : > { %2587 = vmatpush1.bf16.msra.mxu1 %v5839_v56  ;;  %v5889_v56 = vld [vmem:[%s6265_s11 + $0x150] ss:$8 sps:$4 sm:$0xff]  }
  0x8a   : > { %3293 = vmatpush1.bf16.msra.mxu0 %v5840_v57  ;;  %2588 = vmatprep.subr.bf16.mxu1 %v5841_v58  ;;  %v5892_v57 = vld [vmem:[%s6265_s11 + $0x350] ss:$8 sps:$4 sm:$0xff]   ;;  %v5897_v58 = vld [vmem:[%s6265_s11 + $0x164] ss:$8 sps:$4 sm:$0xff]  }
  0x8b   : > { %3294 = vmatprep.subr.bf16.mxu0 %v5843_v59  ;;  %v5900_v59 = vld [vmem:[%s6265_s11 + $0x364] ss:$8 sps:$4 sm:$0xff]  }
  0x8d   : > { %2589 = vmatpush1.bf16.msra.mxu1 %v5845_v60  ;;  %v4945_v60 = vcombine.low %v282_v36, %v286_v37  ;;  %v316_v36 = vld [vmem:[#allocation5 + $0x1d0] sm:$0xff] }
  0x8e   : > { %3295 = vmatpush1.bf16.msra.mxu0 %v5846_v61  ;;  %2590 = vmatprep.subr.bf16.mxu1 %v5847_v62  ;;  %v4949_v61 = vcombine.low %v284_v38, %v288_v39  ;;  %v4954_v62 = vcombine.high %v290_v52, %v294_v53  ;;  %v320_v37 = vld [vmem:[#allocation5 + $0x1f0] sm:$0xff]  ;;  %v4969_v38 = vcombine.low %v306_v20, %v310_v21 }
  0x8f   : > { %3296 = vmatprep.subr.bf16.mxu0 %v5849_v63  ;;  %v4958_v63 = vcombine.high %v292_v54, %v296_v55 }
  0x91   : > { %2591 = vmatpush1.bf16.msra.mxu1 %v5851_v0  ;;  %v5895_v0 = vld [vmem:[%s6265_s11 + $0x160] ss:$8 sps:$4 sm:$0xff]  }
  0x92   : > { %3297 = vmatpush1.bf16.msra.mxu0 %v5852_v1  ;;  %2592 = vmatprep.subr.bf16.mxu1 %v5853_v2  ;;  %v5898_v1 = vld [vmem:[%s6265_s11 + $0x360] ss:$8 sps:$4 sm:$0xff]   ;;  %v5903_v2 = vld [vmem:[%s6265_s11 + $0x174] ss:$8 sps:$4 sm:$0xff]  }
  0x93   : > { %3298 = vmatprep.subr.bf16.mxu0 %v5855_v3  ;;  %v5906_v3 = vld [vmem:[%s6265_s11 + $0x374] ss:$8 sps:$4 sm:$0xff]  }
  0x95   : > { %2593 = vmatpush1.bf16.msra.mxu1 %v5857_v4  ;;  %v298_v4 = vld [vmem:[#allocation5 + $0x140] sm:$0xff] }
  0x96   : > { %3299 = vmatpush1.bf16.msra.mxu0 %v5858_v5  ;;  %2915 = vmatprep.subr.bf16.mxu1 %v5861_v6  ;;  %v302_v5 = vld [vmem:[#allocation5 + $0x160] sm:$0xff]  ;;  %v300_v6 = vld [vmem:[#allocation5 + $0x150] sm:$0xff] }
  0x97   : > { %3621 = vmatprep.subr.bf16.mxu0 %v5864_v7  ;;  %v304_v7 = vld [vmem:[#allocation5 + $0x170] sm:$0xff] }
  0x98   : > { %2595 = vmatmul.mubr.bf16.vlgmr.msra.gmra.mrb[0].mxu1 %v4921_v12  ;;  %v4953_v12 = vcombine.low %v290_v52, %v294_v53 }
  0x99   : > { %3301 = vmatmul.mubr.bf16.vlgmr.msra.gmra.mrb[0].mxu0 %v4925_v13  ;;  %2916 = vmatpush1.bf16.msra.mxu1 %v5859_v14  ;;  %v4957_v13 = vcombine.low %v292_v54, %v296_v55  ;;  %v4962_v14 = vcombine.high %v298_v4, %v302_v5  ;;  %v330_v54 = vld [vmem:[#allocation5 + $0x240] sm:$0xff] }
  0x9a   : > { %3622 = vmatpush1.bf16.msra.mxu0 %v5862_v15  ;;  %2604 = vmatprep.mubr.bf16.mxu1 %v4930_v16  ;;  %v4966_v15 = vcombine.high %v300_v6, %v304_v7  ;;  %v5907_v16 = vld [vmem:[%s6265_s11 + $0x180] ss:$8 sps:$4 sm:$0xff]  }
  0x9b   : > { %3310 = vmatprep.mubr.bf16.mxu0 %v4934_v17  ;;  %2917 = vmatprep.subr.bf16.mxu1 %v5867_v18  ;;  %v5910_v17 = vld [vmem:[%s6265_s11 + $0x380] ss:$8 sps:$4 sm:$0xff]   ;;  %v5915_v18 = vld [vmem:[%s6265_s11 + $0x194] ss:$8 sps:$4 sm:$0xff]  }
  0x9c   : > { %3623 = vmatprep.subr.bf16.mxu0 %v5870_v19  ;;  %v5918_v19 = vld [vmem:[%s6265_s11 + $0x394] ss:$8 sps:$4 sm:$0xff]   ;;  %v334_v55 = vld [vmem:[#allocation5 + $0x260] sm:$0xff] }
  0x9d   : > { %2918 = vmatpush1.bf16.msra.mxu1 %v5865_v23  ;;  %v312_v23 = vld [vmem:[#allocation5 + $0x1b0] sm:$0xff] }
  0x9e   : > { %3624 = vmatpush1.bf16.msra.mxu0 %v5868_v24  ;;  %2919 = vmatprep.subr.bf16.mxu1 %v5873_v26  ;;  %v5913_v24 = vld [vmem:[%s6265_s11 + $0x190] ss:$8 sps:$4 sm:$0xff]   ;;  %v5921_v26 = vld [vmem:[%s6265_s11 + $0x1a4] ss:$8 sps:$4 sm:$0xff]   ;;  %v4973_v39 = vcombine.low %v308_v22, %v312_v23 }
  0x9f   : > { %3625 = vmatprep.subr.bf16.mxu0 %v5876_v27  ;;  %v5924_v27 = vld [vmem:[%s6265_s11 + $0x3a4] ss:$8 sps:$4 sm:$0xff]  }
  0xa0   : > { %2605 = vmatmul.mubr.bf16.gmra.mrb[4].mxu1 %v4929_v28  ;;  %v4961_v28 = vcombine.low %v298_v4, %v302_v5  ;;  %v340_v4 = vld [vmem:[#allocation5 + $0x290] sm:$0xff] }
  0xa1   : > { %3311 = vmatmul.mubr.bf16.gmra.mrb[4].mxu0 %v4933_v29  ;;  %2614 = vmatprep.mubr.bf16.mxu1 %v4938_v30  ;;  %v4965_v29 = vcombine.low %v300_v6, %v304_v7  ;;  %v5919_v30 = vld [vmem:[%s6265_s11 + $0x1a0] ss:$8 sps:$4 sm:$0xff]   ;;  %v344_v5 = vld [vmem:[#allocation5 + $0x2b0] sm:$0xff]  ;;  %v4993_v6 = vcombine.low %v330_v54, %v334_v55 }
  0xa2   : > { %3320 = vmatprep.mubr.bf16.mxu0 %v4942_v31  ;;  %2920 = vmatpush1.bf16.msra.mxu1 %v5871_v32  ;;  %v5922_v31 = vld [vmem:[%s6265_s11 + $0x3a0] ss:$8 sps:$4 sm:$0xff]   ;;  %v4970_v32 = vcombine.high %v306_v20, %v310_v21  ;;  %v5940_v20 = vld [vmem:[%s6265_s11 + $0x3d0] ss:$8 sps:$4 sm:$0xff]  }
  0xa3   : > { %3626 = vmatpush1.bf16.msra.mxu0 %v5874_v33  ;;  %2921 = vmatprep.subr.bf16.mxu1 %v5879_v34  ;;  %v4974_v33 = vcombine.high %v308_v22, %v312_v23  ;;  %v314_v34 = vld [vmem:[#allocation5 + $0x1c0] sm:$0xff]  ;;  %v5942_v22 = vld [vmem:[%s6265_s11 + $0x3d4] ss:$8 sps:$4 sm:$0xff]  }
  0xa4   : > { %3627 = vmatprep.subr.bf16.mxu0 %v5882_v35  ;;  %v318_v35 = vld [vmem:[#allocation5 + $0x1e0] sm:$0xff] }
  0xa5   : > { %v354_v21 = vld [vmem:[#allocation5 + $0x300] sm:$0xff] }
  0xa6   : > { %2922 = vmatpush1.bf16.msra.mxu1 %v5877_v40  ;;  %v4978_v40 = vcombine.high %v314_v34, %v318_v35  ;;  %v358_v23 = vld [vmem:[#allocation5 + $0x320] sm:$0xff] }
  0xa7   : > { %3628 = vmatpush1.bf16.msra.mxu0 %v5880_v41  ;;  %2923 = vmatprep.subr.bf16.mxu1 %v5885_v42  ;;  %v4982_v41 = vcombine.high %v316_v36, %v320_v37  ;;  %v5925_v42 = vld [vmem:[%s6265_s11 + $0x1b0] ss:$8 sps:$4 sm:$0xff]  }
  0xa8   : > { %3629 = vmatprep.subr.bf16.mxu0 %v5888_v43  ;;  %2615 = vmatmul.mubr.bf16.gmra.mrb[8].mxu1 %v4937_v44  ;;  %v5927_v43 = vld [vmem:[%s6265_s11 + $0x1b4] ss:$8 sps:$4 sm:$0xff]   ;;  %v5928_v44 = vld [vmem:[%s6265_s11 + $0x3b0] ss:$8 sps:$4 sm:$0xff]  }
  0xa9   : > { %3321 = vmatmul.mubr.bf16.gmra.mrb[8].mxu0 %v4941_v45  ;;  %2624 = vmatprep.mubr.bf16.mxu1 %v4946_v46  ;;  %v322_v45 = vld [vmem:[#allocation5 + $0x200] sm:$0xff]  ;;  %v5930_v46 = vld [vmem:[%s6265_s11 + $0x3b4] ss:$8 sps:$4 sm:$0xff]  }
  0xaa   : > { %3330 = vmatprep.mubr.bf16.mxu0 %v4950_v47  ;;  %2924 = vmatpush1.bf16.msra.mxu1 %v5883_v48  ;;  %v326_v47 = vld [vmem:[#allocation5 + $0x220] sm:$0xff]  ;;  %v324_v48 = vld [vmem:[#allocation5 + $0x210] sm:$0xff] }
  0xab   : > { %3630 = vmatpush1.bf16.msra.mxu0 %v5886_v49  ;;  %2925 = vmatprep.subr.bf16.mxu1 %v5891_v50  ;;  %v328_v49 = vld [vmem:[#allocation5 + $0x230] sm:$0xff]  ;;  %v4977_v50 = vcombine.low %v314_v34, %v318_v35  ;;  %v4986_v52 = vcombine.high %v322_v45, %v326_v47  ;;  %v5017_v34 = vcombine.low %v354_v21, %v358_v23 }
  0xac   : > { %3631 = vmatprep.subr.bf16.mxu0 %v5894_v51  ;;  %v4981_v51 = vcombine.low %v316_v36, %v320_v37  ;;  %v4990_v53 = vcombine.high %v324_v48, %v328_v49 }
  0xae   : > { %2926 = vmatpush1.bf16.msra.mxu1 %v5889_v56  ;;  %v332_v56 = vld [vmem:[#allocation5 + $0x250] sm:$0xff] }
  0xaf   : > { %3632 = vmatpush1.bf16.msra.mxu0 %v5892_v57  ;;  %2927 = vmatprep.subr.bf16.mxu1 %v5897_v58  ;;  %v336_v57 = vld [vmem:[#allocation5 + $0x270] sm:$0xff]  ;;  %v4985_v58 = vcombine.low %v322_v45, %v326_v47 }
  0xb0   : > { %3633 = vmatprep.subr.bf16.mxu0 %v5900_v59  ;;  %2625 = vmatmul.mubr.bf16.gmra.mrb[12].mxu1 %v4945_v60  ;;  %v4989_v59 = vcombine.low %v324_v48, %v328_v49  ;;  %v4994_v60 = vcombine.high %v330_v54, %v334_v55  ;;  %v4997_v7 = vcombine.low %v332_v56, %v336_v57  ;;  %v376_v45 = vld [vmem:[#allocation5 + $0x3b0] sm:$0xff] }
  0xb1   : > { %3331 = vmatmul.mubr.bf16.gmra.mrb[12].mxu0 %v4949_v61  ;;  %2634 = vmatprep.mubr.bf16.mxu1 %v4954_v62  ;;  %v4998_v61 = vcombine.high %v332_v56, %v336_v57  ;;  %v5931_v62 = vld [vmem:[%s6265_s11 + $0x1c0] ss:$8 sps:$4 sm:$0xff]  }
  0xb2   : > { %3340 = vmatprep.mubr.bf16.mxu0 %v4958_v63  ;;  %2928 = vmatpush1.bf16.msra.mxu1 %v5895_v0  ;;  %v5933_v63 = vld [vmem:[%s6265_s11 + $0x1c4] ss:$8 sps:$4 sm:$0xff]   ;;  %v5934_v0 = vld [vmem:[%s6265_s11 + $0x3c0] ss:$8 sps:$4 sm:$0xff]  }
  0xb3   : > { %3634 = vmatpush1.bf16.msra.mxu0 %v5898_v1  ;;  %2929 = vmatprep.subr.bf16.mxu1 %v5903_v2  ;;  %v338_v1 = vld [vmem:[#allocation5 + $0x280] sm:$0xff] }
  0xb4   : > { %3635 = vmatprep.subr.bf16.mxu0 %v5906_v3  ;;  %v5936_v2 = vld [vmem:[%s6265_s11 + $0x3c4] ss:$8 sps:$4 sm:$0xff]  }
  0xb5   : > { %v342_v3 = vld [vmem:[#allocation5 + $0x2a0] sm:$0xff] }
  0xb6   : > { %2930 = vmatpush1.bf16.msra.mxu1 %v5901_v8  ;;  %v5002_v8 = vcombine.high %v338_v1, %v342_v3 }
  0xb7   : > { %3636 = vmatpush1.bf16.msra.mxu0 %v5904_v9  ;;  %2931 = vmatprep.subr.bf16.mxu1 %v5909_v10  ;;  %v5006_v9 = vcombine.high %v340_v4, %v344_v5  ;;  %v346_v10 = vld [vmem:[#allocation5 + $0x2c0] sm:$0xff] }
  0xb8   : > { %3637 = vmatprep.subr.bf16.mxu0 %v5912_v11  ;;  %2635 = vmatmul.mubr.bf16.gmra.mrb[16].mxu1 %v4953_v12  ;;  %v350_v11 = vld [vmem:[#allocation5 + $0x2e0] sm:$0xff]  ;;  %v348_v12 = vld [vmem:[#allocation5 + $0x2d0] sm:$0xff] }
  0xb9   : > { %3341 = vmatmul.mubr.bf16.gmra.mrb[16].mxu0 %v4957_v13  ;;  %2644 = vmatprep.mubr.bf16.mxu1 %v4962_v14  ;;  %v352_v13 = vld [vmem:[#allocation5 + $0x2f0] sm:$0xff]  ;;  %v5001_v14 = vcombine.low %v338_v1, %v342_v3 }
  0xba   : > { %3350 = vmatprep.mubr.bf16.mxu0 %v4966_v15  ;;  %2932 = vmatpush1.bf16.msra.mxu1 %v5907_v16  ;;  %v5005_v15 = vcombine.low %v340_v4, %v344_v5  ;;  %v5010_v16 = vcombine.high %v346_v10, %v350_v11  ;;  %v392_v1 = vld [vmem:[#allocation5 + $0x430] sm:$0xff] }
  0xbb   : > { %3638 = vmatpush1.bf16.msra.mxu0 %v5910_v17  ;;  %2933 = vmatprep.subr.bf16.mxu1 %v5915_v18  ;;  %v5014_v17 = vcombine.high %v348_v12, %v352_v13  ;;  %v5937_v18 = vld [vmem:[%s6265_s11 + $0x1d0] ss:$8 sps:$4 sm:$0xff]  }
  0xbc   : > { %3639 = vmatprep.subr.bf16.mxu0 %v5918_v19  ;;  %v5939_v19 = vld [vmem:[%s6265_s11 + $0x1d4] ss:$8 sps:$4 sm:$0xff]  }
  0xbe   : > { %2934 = vmatpush1.bf16.msra.mxu1 %v5913_v24  ;;  %v356_v24 = vld [vmem:[#allocation5 + $0x310] sm:$0xff] }
  0xbf   : > { %3640 = vmatpush1.bf16.msra.mxu0 %v5916_v25  ;;  %2935 = vmatprep.subr.bf16.mxu1 %v5921_v26  ;;  %v360_v25 = vld [vmem:[#allocation5 + $0x330] sm:$0xff]  ;;  %v5009_v26 = vcombine.low %v346_v10, %v350_v11 }
  0xc0   : > { %3641 = vmatprep.subr.bf16.mxu0 %v5924_v27  ;;  %2645 = vmatmul.mubr.bf16.gmra.mrb[20].mxu1 %v4961_v28  ;;  %v5013_v27 = vcombine.low %v348_v12, %v352_v13  ;;  %v5018_v28 = vcombine.high %v354_v21, %v358_v23  ;;  %v5021_v35 = vcombine.low %v356_v24, %v360_v25  ;;  %v414_v23 = vld [vmem:[#allocation5 + $0x4e0] sm:$0xff] }
  0xc1   : > { %3351 = vmatmul.mubr.bf16.gmra.mrb[20].mxu0 %v4965_v29  ;;  %2654 = vmatprep.mubr.bf16.mxu1 %v4970_v32  ;;  %v5022_v29 = vcombine.high %v356_v24, %v360_v25  ;;  %v364_v32 = vld [vmem:[#allocation5 + $0x350] sm:$0xff] }
  0xc2   : > { %3360 = vmatprep.mubr.bf16.mxu0 %v4974_v33  ;;  %2936 = vmatpush1.bf16.msra.mxu1 %v5919_v30  ;;  %v362_v30 = vld [vmem:[#allocation5 + $0x340] sm:$0xff]  ;;  %v368_v33 = vld [vmem:[#allocation5 + $0x370] sm:$0xff] }
  0xc3   : > { %3642 = vmatpush1.bf16.msra.mxu0 %v5922_v31  ;;  %2937 = vmatprep.subr.bf16.mxu1 %v5927_v43  ;;  %v366_v31 = vld [vmem:[#allocation5 + $0x360] sm:$0xff]  ;;  %v5030_v37 = vcombine.high %v364_v32, %v368_v33  ;;  %v5029_v47 = vcombine.low %v364_v32, %v368_v33  ;;  %v412_v24 = vld [vmem:[#allocation5 + $0x4d0] sm:$0xff] }
  0xc4   : > { %3643 = vmatprep.subr.bf16.mxu0 %v5930_v46  ;;  %v5026_v36 = vcombine.high %v362_v30, %v366_v31  ;;  %v374_v43 = vld [vmem:[#allocation5 + $0x3a0] sm:$0xff]  ;;  %v5025_v46 = vcombine.low %v362_v30, %v366_v31  ;;  %v416_v25 = vld [vmem:[#allocation5 + $0x4f0] sm:$0xff] }
  0xc5   : > { %v418_v30 = vld [vmem:[#allocation5 + $0x500] sm:$0xff]  ;;  %v420_v32 = vld [vmem:[#allocation5 + $0x510] sm:$0xff] }
  0xc6   : > { %2938 = vmatpush1.bf16.msra.mxu1 %v5925_v42  ;;  %v5948_v42 = vld [vmem:[%s6265_s11 + $0x3e4] ss:$8 sps:$4 sm:$0xff]   ;;  %v424_v33 = vld [vmem:[#allocation5 + $0x530] sm:$0xff] }
  0xc7   : > { %3644 = vmatpush1.bf16.msra.mxu0 %v5928_v44  ;;  %2939 = vmatprep.subr.bf16.mxu1 %v5933_v63  ;;  %v372_v44 = vld [vmem:[#allocation5 + $0x390] sm:$0xff]  ;;  %v390_v63 = vld [vmem:[#allocation5 + $0x420] sm:$0xff] }
  0xc8   : > { %2655 = vmatmul.mubr.bf16.gmra.mrb[24].mxu1 %v4969_v38  ;;  %3645 = vmatprep.subr.bf16.mxu0 %v5936_v2  ;;  %v5943_v38 = vld [vmem:[%s6265_s11 + $0x1e0] ss:$8 sps:$4 sm:$0xff]   ;;  %v5038_v49 = vcombine.high %v372_v44, %v376_v45  ;;  %v5037_v55 = vcombine.low %v372_v44, %v376_v45 }
  0xc9   : > { %3361 = vmatmul.mubr.bf16.gmra.mrb[24].mxu0 %v4973_v39  ;;  %2664 = vmatprep.mubr.bf16.mxu1 %v4978_v40  ;;  %v5945_v39 = vld [vmem:[%s6265_s11 + $0x1e4] ss:$8 sps:$4 sm:$0xff]   ;;  %v5946_v40 = vld [vmem:[%s6265_s11 + $0x3e0] ss:$8 sps:$4 sm:$0xff]  }
  0xca   : > { %3370 = vmatprep.mubr.bf16.mxu0 %v4982_v41  ;;  %2940 = vmatpush1.bf16.msra.mxu1 %v5931_v62  ;;  %v370_v41 = vld [vmem:[#allocation5 + $0x380] sm:$0xff]  ;;  %v5954_v62 = vld [vmem:[%s6265_s11 + $0x3f4] ss:$8 sps:$4 sm:$0xff]  }
  0xcb   : > { %3646 = vmatpush1.bf16.msra.mxu0 %v5934_v0  ;;  %2941 = vmatprep.subr.bf16.mxu1 %v5939_v19  ;;  %v5034_v48 = vcombine.high %v370_v41, %v374_v43  ;;  %v5033_v54 = vcombine.low %v370_v41, %v374_v43  ;;  %v388_v0 = vld [vmem:[#allocation5 + $0x410] sm:$0xff]  ;;  %v422_v31 = vld [vmem:[#allocation5 + $0x520] sm:$0xff]  ;;  %v5085_v43 = vcombine.low %v420_v32, %v424_v33 }
  0xcc   : > { %3647 = vmatprep.subr.bf16.mxu0 %v5942_v22  ;;  %v5054_v5 = vcombine.high %v388_v0, %v392_v1  ;;  %v5053_v11 = vcombine.low %v388_v0, %v392_v1  ;;  %v410_v22 = vld [vmem:[#allocation5 + $0x4c0] sm:$0xff]  ;;  %v432_v41 = vld [vmem:[#allocation5 + $0x570] sm:$0xff] }
  0xcd   : > { %v452_v0 = vld [vmem:[#allocation5 + $0x610] sm:$0xff] }
  0xce   : > { %2942 = vmatpush1.bf16.msra.mxu1 %v5937_v18  ;;  %v456_v1 = vld [vmem:[#allocation5 + $0x630] sm:$0xff] }
  0xcf   : > { %3648 = vmatpush1.bf16.msra.mxu0 %v5940_v20  ;;  %2943 = vmatprep.subr.bf16.mxu1 %v5945_v39  ;;  %v430_v39 = vld [vmem:[#allocation5 + $0x560] sm:$0xff] }
  0xd0   : > { %2665 = vmatmul.mubr.bf16.gmra.mrb[28].mxu1 %v4977_v50  ;;  %3649 = vmatprep.subr.bf16.mxu0 %v5948_v42  ;;  %v378_v50 = vld [vmem:[#allocation5 + $0x3c0] sm:$0xff]  ;;  %v5081_v42 = vcombine.low %v418_v30, %v422_v31 }
  0xd1   : > { %3371 = vmatmul.mubr.bf16.gmra.mrb[28].mxu0 %v4981_v51  ;;  %2674 = vmatprep.mubr.bf16.mxu1 %v4986_v52  ;;  %v382_v51 = vld [vmem:[#allocation5 + $0x3e0] sm:$0xff]  ;;  %v380_v52 = vld [vmem:[#allocation5 + $0x3d0] sm:$0xff] }
  0xd2   : > { %3380 = vmatprep.mubr.bf16.mxu0 %v4990_v53  ;;  %2944 = vmatpush1.bf16.msra.mxu1 %v5943_v38  ;;  %v384_v53 = vld [vmem:[#allocation5 + $0x3f0] sm:$0xff]  ;;  %v5042_v56 = vcombine.high %v378_v50, %v382_v51  ;;  %v5041_v2 = vcombine.low %v378_v50, %v382_v51  ;;  %v426_v38 = vld [vmem:[#allocation5 + $0x540] sm:$0xff] }
  0xd3   : > { %3650 = vmatpush1.bf16.msra.mxu0 %v5946_v40  ;;  %v5046_v57 = vcombine.high %v380_v52, %v384_v53  ;;  %v5045_v3 = vcombine.low %v380_v52, %v384_v53  ;;  %v428_v40 = vld [vmem:[#allocation5 + $0x550] sm:$0xff]  ;;  %v5090_v44 = vcombine.high %v426_v38, %v430_v39  ;;  %v5089_v50 = vcombine.low %v426_v38, %v430_v39  ;;  %v490_v38 = vld [vmem:[#allocation5 + $0x740] sm:$0xff] }
  0xd4   : > { %3651 = vmatprep.subr.bf16.mxu0 %v5954_v62  ;;  %v5094_v45 = vcombine.high %v428_v40, %v432_v41  ;;  %v5093_v51 = vcombine.low %v428_v40, %v432_v41  ;;  %v450_v62 = vld [vmem:[#allocation5 + $0x600] sm:$0xff]  ;;  %v492_v40 = vld [vmem:[#allocation5 + $0x750] sm:$0xff] }
  0xd5   : > { %v494_v39 = vld [vmem:[#allocation5 + $0x760] sm:$0xff]  ;;  %v496_v41 = vld [vmem:[#allocation5 + $0x770] sm:$0xff] }
  0xd8   : > { %2675 = vmatmul.mubr.bf16.gmra.mrb[32].mxu1 %v4985_v58  ;;  %v5949_v58 = vld [vmem:[%s6265_s11 + $0x1f0] ss:$8 sps:$4 sm:$0xff]  }
  0xd9   : > { %3381 = vmatmul.mubr.bf16.gmra.mrb[32].mxu0 %v4989_v59  ;;  %2684 = vmatprep.mubr.bf16.mxu1 %v4994_v60  ;;  %v5951_v59 = vld [vmem:[%s6265_s11 + $0x1f4] ss:$8 sps:$4 sm:$0xff]   ;;  %v5952_v60 = vld [vmem:[%s6265_s11 + $0x3f0] ss:$8 sps:$4 sm:$0xff]   ;;  %s6013_s11 = scalar_lea.vmem %s6735_s5, 16384 }
  0xda   : > { %3390 = vmatprep.mubr.bf16.mxu0 %v4998_v61  ;;  %v386_v61 = vld [vmem:[#allocation5 + $0x400] sm:$0xff]  ;;  %2945 = vmatprep.subr.bf16.mxu1 %v5951_v59  ;;  %p6014_p9 = scmp.ne.s32.totalorder %s6735_s5, %s6013_s11 }
  0xdb   : > { %2946 = vmatpush1.bf16.msra.mxu1 %v5949_v58  ;;  %3652 = vmatpush1.bf16.msra.mxu0 %v5952_v60  ;;  %v5050_v4 = vcombine.high %v386_v61, %v390_v63  ;;  %v5049_v10 = vcombine.low %v386_v61, %v390_v63  ;;  %v454_v63 = vld [vmem:[#allocation5 + $0x620] sm:$0xff] }
  0xdc   : > { %p6015_p1 = pnand %p6014_p9, %p6927_p10 }
  0xde   : > { %p6016_p4 = pneg %p6015_p1 }
  0xe0   : > { %2685 = vmatmul.mubr.bf16.gmra.mrb[36].mxu1 %v4993_v6  ;;  %v394_v6 = vld [vmem:[#allocation5 + $0x440] sm:$0xff] }
  0xe1   : > { %3391 = vmatmul.mubr.bf16.gmra.mrb[36].mxu0 %v4997_v7  ;;  %2694 = vmatprep.mubr.bf16.mxu1 %v5002_v8  ;;  %v398_v7 = vld [vmem:[#allocation5 + $0x460] sm:$0xff]  ;;  %v396_v8 = vld [vmem:[#allocation5 + $0x450] sm:$0xff] }
  0xe2   : > { %3400 = vmatprep.mubr.bf16.mxu0 %v5006_v9  ;;  %v400_v9 = vld [vmem:[#allocation5 + $0x470] sm:$0xff]  ;;  %v5058_v12 = vcombine.high %v394_v6, %v398_v7  ;;  %v5057_v18 = vcombine.low %v394_v6, %v398_v7  ;;  %v458_v6 = vld [vmem:[#allocation5 + $0x640] sm:$0xff] }
  0xe3   : > { %v5062_v13 = vcombine.high %v396_v8, %v400_v9  ;;  %v5061_v19 = vcombine.low %v396_v8, %v400_v9  ;;  %v462_v7 = vld [vmem:[#allocation5 + $0x660] sm:$0xff]  ;;  %v460_v8 = vld [vmem:[#allocation5 + $0x650] sm:$0xff] }
  0xe4   : > { %v464_v9 = vld [vmem:[#allocation5 + $0x670] sm:$0xff] }
  0xe8   : > { %2695 = vmatmul.mubr.bf16.gmra.mrb[40].mxu1 %v5001_v14  ;;  %v402_v14 = vld [vmem:[#allocation5 + $0x480] sm:$0xff] }
  0xe9   : > { %3401 = vmatmul.mubr.bf16.gmra.mrb[40].mxu0 %v5005_v15  ;;  %2704 = vmatprep.mubr.bf16.mxu1 %v5010_v16  ;;  %v406_v15 = vld [vmem:[#allocation5 + $0x4a0] sm:$0xff]  ;;  %v404_v16 = vld [vmem:[#allocation5 + $0x490] sm:$0xff] }
  0xea   : > { %3410 = vmatprep.mubr.bf16.mxu0 %v5014_v17  ;;  %v408_v17 = vld [vmem:[#allocation5 + $0x4b0] sm:$0xff]  ;;  %v5066_v20 = vcombine.high %v402_v14, %v406_v15 }
  0xeb   : > { %v5070_v21 = vcombine.high %v404_v16, %v408_v17 }
  0xf0   : > { %2705 = vmatmul.mubr.bf16.gmra.mrb[44].mxu1 %v5009_v26  ;;  %v5065_v26 = vcombine.low %v402_v14, %v406_v15  ;;  %v466_v14 = vld [vmem:[#allocation5 + $0x680] sm:$0xff] }
  0xf1   : > { %3411 = vmatmul.mubr.bf16.gmra.mrb[44].mxu0 %v5013_v27  ;;  %2714 = vmatprep.mubr.bf16.mxu1 %v5018_v28  ;;  %v5069_v27 = vcombine.low %v404_v16, %v408_v17  ;;  %v5074_v28 = vcombine.high %v410_v22, %v414_v23  ;;  %v470_v15 = vld [vmem:[#allocation5 + $0x6a0] sm:$0xff]  ;;  %v468_v16 = vld [vmem:[#allocation5 + $0x690] sm:$0xff] }
  0xf2   : > { %3420 = vmatprep.mubr.bf16.mxu0 %v5022_v29  ;;  %v5078_v29 = vcombine.high %v412_v24, %v416_v25  ;;  %v472_v17 = vld [vmem:[#allocation5 + $0x6b0] sm:$0xff] }
  0xf8   : > { %2715 = vmatmul.mubr.bf16.gmra.mrb[48].mxu1 %v5017_v34  ;;  %v5073_v34 = vcombine.low %v410_v22, %v414_v23  ;;  %v474_v22 = vld [vmem:[#allocation5 + $0x6c0] sm:$0xff] }
  0xf9   : > { %3421 = vmatmul.mubr.bf16.gmra.mrb[48].mxu0 %v5021_v35  ;;  %2724 = vmatprep.mubr.bf16.mxu1 %v5026_v36  ;;  %v5077_v35 = vcombine.low %v412_v24, %v416_v25  ;;  %v5082_v36 = vcombine.high %v418_v30, %v422_v31  ;;  %v478_v23 = vld [vmem:[#allocation5 + $0x6e0] sm:$0xff]  ;;  %v476_v24 = vld [vmem:[#allocation5 + $0x6d0] sm:$0xff] }
  0xfa   : > { %3430 = vmatprep.mubr.bf16.mxu0 %v5030_v37  ;;  %v5086_v37 = vcombine.high %v420_v32, %v424_v33  ;;  %v480_v25 = vld [vmem:[#allocation5 + $0x6f0] sm:$0xff]  ;;  %v482_v30 = vld [vmem:[#allocation5 + $0x700] sm:$0xff] }
  0xfb   : > { %v486_v31 = vld [vmem:[#allocation5 + $0x720] sm:$0xff]  ;;  %v484_v32 = vld [vmem:[#allocation5 + $0x710] sm:$0xff] }
  0xfc   : > { %v488_v33 = vld [vmem:[#allocation5 + $0x730] sm:$0xff] }
 0x100   : > { %2725 = vmatmul.mubr.bf16.gmra.mrb[52].mxu1 %v5025_v46  ;;  %v434_v46 = vld [vmem:[#allocation5 + $0x580] sm:$0xff] }
 0x101   : > { %3431 = vmatmul.mubr.bf16.gmra.mrb[52].mxu0 %v5029_v47  ;;  %2734 = vmatprep.mubr.bf16.mxu1 %v5034_v48  ;;  %v438_v47 = vld [vmem:[#allocation5 + $0x5a0] sm:$0xff]  ;;  %v436_v48 = vld [vmem:[#allocation5 + $0x590] sm:$0xff] }
 0x102   : > { %3440 = vmatprep.mubr.bf16.mxu0 %v5038_v49  ;;  %v440_v49 = vld [vmem:[#allocation5 + $0x5b0] sm:$0xff]  ;;  %v5098_v52 = vcombine.high %v434_v46, %v438_v47  ;;  %v5097_v58 = vcombine.low %v434_v46, %v438_v47  ;;  %v498_v46 = vld [vmem:[#allocation5 + $0x780] sm:$0xff] }
 0x103   : > { %v5102_v53 = vcombine.high %v436_v48, %v440_v49  ;;  %v5101_v59 = vcombine.low %v436_v48, %v440_v49  ;;  %v502_v47 = vld [vmem:[#allocation5 + $0x7a0] sm:$0xff]  ;;  %v500_v48 = vld [vmem:[#allocation5 + $0x790] sm:$0xff] }
 0x104   : > { %v504_v49 = vld [vmem:[#allocation5 + $0x7b0] sm:$0xff] }
 0x108   : > { %2735 = vmatmul.mubr.bf16.gmra.mrb[56].mxu1 %v5033_v54  ;;  %v442_v54 = vld [vmem:[#allocation5 + $0x5c0] sm:$0xff] }
 0x109   : > { %3441 = vmatmul.mubr.bf16.gmra.mrb[56].mxu0 %v5037_v55  ;;  %2744 = vmatprep.mubr.bf16.mxu1 %v5042_v56  ;;  %v446_v55 = vld [vmem:[#allocation5 + $0x5e0] sm:$0xff]  ;;  %v444_v56 = vld [vmem:[#allocation5 + $0x5d0] sm:$0xff] }
 0x10a   : > { %3450 = vmatprep.mubr.bf16.mxu0 %v5046_v57  ;;  %v448_v57 = vld [vmem:[#allocation5 + $0x5f0] sm:$0xff]  ;;  %v5106_v60 = vcombine.high %v442_v54, %v446_v55 }
 0x10b   : > { %v5110_v61 = vcombine.high %v444_v56, %v448_v57 }
 0x110   : > { %2745 = vmatmul.mubr.bf16.gmra.mrb[60].mxu1 %v5041_v2  ;;  %v5105_v2 = vcombine.low %v442_v54, %v446_v55  ;;  %v506_v54 = vld [vmem:[#allocation5 + $0x7c0] sm:$0xff] }
 0x111   : > { %3451 = vmatmul.mubr.bf16.gmra.mrb[60].mxu0 %v5045_v3  ;;  %2754 = vmatprep.mubr.bf16.mxu1 %v5050_v4  ;;  %v5109_v3 = vcombine.low %v444_v56, %v448_v57  ;;  %v5114_v4 = vcombine.high %v450_v62, %v454_v63  ;;  %v510_v55 = vld [vmem:[#allocation5 + $0x7e0] sm:$0xff]  ;;  %v508_v56 = vld [vmem:[#allocation5 + $0x7d0] sm:$0xff] }
 0x112   : > { %3460 = vmatprep.mubr.bf16.mxu0 %v5054_v5  ;;  %v5118_v5 = vcombine.high %v452_v0, %v456_v1  ;;  %v512_v57 = vld [vmem:[#allocation5 + $0x7f0] sm:$0xff] }
 0x118   : > { %2755 = vmatmul.mubr.bf16.gmra.mrb[64].mxu1 %v5049_v10  ;;  %v5113_v10 = vcombine.low %v450_v62, %v454_v63  ;;  %v259_v62 = vld [vmem:[#allocation5 + $0x8] sm:$0xff] }
 0x119   : > { %3461 = vmatmul.mubr.bf16.gmra.mrb[64].mxu0 %v5053_v11  ;;  %2764 = vmatprep.mubr.bf16.mxu1 %v5058_v12  ;;  %v5117_v11 = vcombine.low %v452_v0, %v456_v1  ;;  %v5122_v12 = vcombine.high %v458_v6, %v462_v7  ;;  %v263_v63 = vld [vmem:[#allocation5 + $0x28] sm:$0xff]  ;;  %v261_v0 = vld [vmem:[#allocation5 + $0x18] sm:$0xff] }
 0x11a   : > { %3470 = vmatprep.mubr.bf16.mxu0 %v5062_v13  ;;  %v5126_v13 = vcombine.high %v460_v8, %v464_v9  ;;  %v265_v1 = vld [vmem:[#allocation5 + $0x38] sm:$0xff] }
 0x120   : > { %2765 = vmatmul.mubr.bf16.gmra.mrb[68].mxu1 %v5057_v18  ;;  %v5121_v18 = vcombine.low %v458_v6, %v462_v7  ;;  %v267_v6 = vld [vmem:[#allocation5 + $0x48] sm:$0xff] }
 0x121   : > { %3471 = vmatmul.mubr.bf16.gmra.mrb[68].mxu0 %v5061_v19  ;;  %2774 = vmatprep.mubr.bf16.mxu1 %v5066_v20  ;;  %v5125_v19 = vcombine.low %v460_v8, %v464_v9  ;;  %v5130_v20 = vcombine.high %v466_v14, %v470_v15  ;;  %v271_v7 = vld [vmem:[#allocation5 + $0x68] sm:$0xff]  ;;  %v269_v8 = vld [vmem:[#allocation5 + $0x58] sm:$0xff] }
 0x122   : > { %3480 = vmatprep.mubr.bf16.mxu0 %v5070_v21  ;;  %v5134_v21 = vcombine.high %v468_v16, %v472_v17  ;;  %v273_v9 = vld [vmem:[#allocation5 + $0x78] sm:$0xff] }
 0x128   : > { %2775 = vmatmul.mubr.bf16.gmra.mrb[72].mxu1 %v5065_v26  ;;  %v5129_v26 = vcombine.low %v466_v14, %v470_v15  ;;  %v275_v14 = vld [vmem:[#allocation5 + $0x88] sm:$0xff] }
 0x129   : > { %3481 = vmatmul.mubr.bf16.gmra.mrb[72].mxu0 %v5069_v27  ;;  %2784 = vmatprep.mubr.bf16.mxu1 %v5074_v28  ;;  %v5133_v27 = vcombine.low %v468_v16, %v472_v17  ;;  %v5138_v28 = vcombine.high %v474_v22, %v478_v23  ;;  %v279_v15 = vld [vmem:[#allocation5 + $0xa8] sm:$0xff]  ;;  %v277_v16 = vld [vmem:[#allocation5 + $0x98] sm:$0xff] }
 0x12a   : > { %3490 = vmatprep.mubr.bf16.mxu0 %v5078_v29  ;;  %v5142_v29 = vcombine.high %v476_v24, %v480_v25  ;;  %v281_v17 = vld [vmem:[#allocation5 + $0xb8] sm:$0xff] }
 0x130   : > { %2785 = vmatmul.mubr.bf16.gmra.mrb[76].mxu1 %v5073_v34  ;;  %v5137_v34 = vcombine.low %v474_v22, %v478_v23  ;;  %v283_v22 = vld [vmem:[#allocation5 + $0xc8] sm:$0xff] }
 0x131   : > { %3491 = vmatmul.mubr.bf16.gmra.mrb[76].mxu0 %v5077_v35  ;;  %2794 = vmatprep.mubr.bf16.mxu1 %v5082_v36  ;;  %v5141_v35 = vcombine.low %v476_v24, %v480_v25  ;;  %v5146_v36 = vcombine.high %v482_v30, %v486_v31  ;;  %v287_v23 = vld [vmem:[#allocation5 + $0xe8] sm:$0xff]  ;;  %v285_v24 = vld [vmem:[#allocation5 + $0xd8] sm:$0xff] }
 0x132   : > { %3500 = vmatprep.mubr.bf16.mxu0 %v5086_v37  ;;  %v5150_v37 = vcombine.high %v484_v32, %v488_v33  ;;  %v289_v25 = vld [vmem:[#allocation5 + $0xf8] sm:$0xff] }
 0x138   : > { %2795 = vmatmul.mubr.bf16.gmra.mrb[80].mxu1 %v5081_v42  ;;  %v5145_v42 = vcombine.low %v482_v30, %v486_v31  ;;  %v291_v30 = vld [vmem:[#allocation5 + $0x108] sm:$0xff] }
 0x139   : > { %3501 = vmatmul.mubr.bf16.gmra.mrb[80].mxu0 %v5085_v43  ;;  %2804 = vmatprep.mubr.bf16.mxu1 %v5090_v44  ;;  %v5149_v43 = vcombine.low %v484_v32, %v488_v33  ;;  %v5154_v44 = vcombine.high %v490_v38, %v494_v39  ;;  %v295_v31 = vld [vmem:[#allocation5 + $0x128] sm:$0xff]  ;;  %v293_v32 = vld [vmem:[#allocation5 + $0x118] sm:$0xff] }
 0x13a   : > { %3510 = vmatprep.mubr.bf16.mxu0 %v5094_v45  ;;  %v5158_v45 = vcombine.high %v492_v40, %v496_v41  ;;  %v297_v33 = vld [vmem:[#allocation5 + $0x138] sm:$0xff] }
 0x140   : > { %2805 = vmatmul.mubr.bf16.gmra.mrb[84].mxu1 %v5089_v50  ;;  %v5153_v50 = vcombine.low %v490_v38, %v494_v39  ;;  %v299_v38 = vld [vmem:[#allocation5 + $0x148] sm:$0xff] }
 0x141   : > { %3511 = vmatmul.mubr.bf16.gmra.mrb[84].mxu0 %v5093_v51  ;;  %2814 = vmatprep.mubr.bf16.mxu1 %v5098_v52  ;;  %v5157_v51 = vcombine.low %v492_v40, %v496_v41  ;;  %v5162_v52 = vcombine.high %v498_v46, %v502_v47  ;;  %v303_v39 = vld [vmem:[#allocation5 + $0x168] sm:$0xff]  ;;  %v301_v40 = vld [vmem:[#allocation5 + $0x158] sm:$0xff] }
 0x142   : > { %3520 = vmatprep.mubr.bf16.mxu0 %v5102_v53  ;;  %v5166_v53 = vcombine.high %v500_v48, %v504_v49  ;;  %v305_v41 = vld [vmem:[#allocation5 + $0x178] sm:$0xff] }
 0x148   : > { %2815 = vmatmul.mubr.bf16.gmra.mrb[88].mxu1 %v5097_v58  ;;  %v5161_v58 = vcombine.low %v498_v46, %v502_v47  ;;  %v307_v46 = vld [vmem:[#allocation5 + $0x188] sm:$0xff] }
 0x149   : > { %3521 = vmatmul.mubr.bf16.gmra.mrb[88].mxu0 %v5101_v59  ;;  %2824 = vmatprep.mubr.bf16.mxu1 %v5106_v60  ;;  %v5165_v59 = vcombine.low %v500_v48, %v504_v49  ;;  %v5170_v60 = vcombine.high %v506_v54, %v510_v55  ;;  %v311_v47 = vld [vmem:[#allocation5 + $0x1a8] sm:$0xff]  ;;  %v309_v48 = vld [vmem:[#allocation5 + $0x198] sm:$0xff] }
 0x14a   : > { %3530 = vmatprep.mubr.bf16.mxu0 %v5110_v61  ;;  %v5174_v61 = vcombine.high %v508_v56, %v512_v57  ;;  %v313_v49 = vld [vmem:[#allocation5 + $0x1b8] sm:$0xff] }
 0x150   : > { %2825 = vmatmul.mubr.bf16.gmra.mrb[92].mxu1 %v5105_v2  ;;  %v5169_v2 = vcombine.low %v506_v54, %v510_v55  ;;  %v315_v54 = vld [vmem:[#allocation5 + $0x1c8] sm:$0xff] }
 0x151   : > { %3531 = vmatmul.mubr.bf16.gmra.mrb[92].mxu0 %v5109_v3  ;;  %2834 = vmatprep.mubr.bf16.mxu1 %v5114_v4  ;;  %v5173_v3 = vcombine.low %v508_v56, %v512_v57  ;;  %v4924_v4 = vcombine.high %v259_v62, %v263_v63  ;;  %v319_v55 = vld [vmem:[#allocation5 + $0x1e8] sm:$0xff]  ;;  %v317_v56 = vld [vmem:[#allocation5 + $0x1d8] sm:$0xff] }
 0x152   : > { %3540 = vmatprep.mubr.bf16.mxu0 %v5118_v5  ;;  %v4928_v5 = vcombine.high %v261_v0, %v265_v1  ;;  %v321_v57 = vld [vmem:[#allocation5 + $0x1f8] sm:$0xff] }
 0x158   : > { %2835 = vmatmul.mubr.bf16.gmra.mrb[96].mxu1 %v5113_v10  ;;  %v4923_v10 = vcombine.low %v259_v62, %v263_v63  ;;  %v323_v62 = vld [vmem:[#allocation5 + $0x208] sm:$0xff] }
 0x159   : > { %3541 = vmatmul.mubr.bf16.gmra.mrb[96].mxu0 %v5117_v11  ;;  %2844 = vmatprep.mubr.bf16.mxu1 %v5122_v12  ;;  %v4927_v11 = vcombine.low %v261_v0, %v265_v1  ;;  %v4932_v12 = vcombine.high %v267_v6, %v271_v7  ;;  %v327_v63 = vld [vmem:[#allocation5 + $0x228] sm:$0xff]  ;;  %v325_v0 = vld [vmem:[#allocation5 + $0x218] sm:$0xff] }
 0x15a   : > { %3550 = vmatprep.mubr.bf16.mxu0 %v5126_v13  ;;  %v4936_v13 = vcombine.high %v269_v8, %v273_v9  ;;  %v329_v1 = vld [vmem:[#allocation5 + $0x238] sm:$0xff] }
 0x160   : > { %2845 = vmatmul.mubr.bf16.gmra.mrb[100].mxu1 %v5121_v18  ;;  %v4931_v18 = vcombine.low %v267_v6, %v271_v7  ;;  %v331_v6 = vld [vmem:[#allocation5 + $0x248] sm:$0xff] }
 0x161   : > { %3551 = vmatmul.mubr.bf16.gmra.mrb[100].mxu0 %v5125_v19  ;;  %2854 = vmatprep.mubr.bf16.mxu1 %v5130_v20  ;;  %v4935_v19 = vcombine.low %v269_v8, %v273_v9  ;;  %v4940_v20 = vcombine.high %v275_v14, %v279_v15  ;;  %v335_v7 = vld [vmem:[#allocation5 + $0x268] sm:$0xff]  ;;  %v333_v8 = vld [vmem:[#allocation5 + $0x258] sm:$0xff] }
 0x162   : > { %3560 = vmatprep.mubr.bf16.mxu0 %v5134_v21  ;;  %v4944_v21 = vcombine.high %v277_v16, %v281_v17  ;;  %v337_v9 = vld [vmem:[#allocation5 + $0x278] sm:$0xff] }
 0x168   : > { %2855 = vmatmul.mubr.bf16.gmra.mrb[104].mxu1 %v5129_v26  ;;  %v4939_v26 = vcombine.low %v275_v14, %v279_v15  ;;  %v339_v14 = vld [vmem:[#allocation5 + $0x288] sm:$0xff] }
 0x169   : > { %3561 = vmatmul.mubr.bf16.gmra.mrb[104].mxu0 %v5133_v27  ;;  %2864 = vmatprep.mubr.bf16.mxu1 %v5138_v28  ;;  %v4943_v27 = vcombine.low %v277_v16, %v281_v17  ;;  %v4948_v28 = vcombine.high %v283_v22, %v287_v23  ;;  %v343_v15 = vld [vmem:[#allocation5 + $0x2a8] sm:$0xff]  ;;  %v341_v16 = vld [vmem:[#allocation5 + $0x298] sm:$0xff] }
 0x16a   : > { %3570 = vmatprep.mubr.bf16.mxu0 %v5142_v29  ;;  %v4952_v29 = vcombine.high %v285_v24, %v289_v25  ;;  %v345_v17 = vld [vmem:[#allocation5 + $0x2b8] sm:$0xff] }
 0x170   : > { %2865 = vmatmul.mubr.bf16.gmra.mrb[108].mxu1 %v5137_v34  ;;  %v4947_v34 = vcombine.low %v283_v22, %v287_v23  ;;  %v347_v22 = vld [vmem:[#allocation5 + $0x2c8] sm:$0xff] }
 0x171   : > { %3571 = vmatmul.mubr.bf16.gmra.mrb[108].mxu0 %v5141_v35  ;;  %2874 = vmatprep.mubr.bf16.mxu1 %v5146_v36  ;;  %v4951_v35 = vcombine.low %v285_v24, %v289_v25  ;;  %v4956_v36 = vcombine.high %v291_v30, %v295_v31  ;;  %v351_v23 = vld [vmem:[#allocation5 + $0x2e8] sm:$0xff]  ;;  %v349_v24 = vld [vmem:[#allocation5 + $0x2d8] sm:$0xff] }
 0x172   : > { %3580 = vmatprep.mubr.bf16.mxu0 %v5150_v37  ;;  %v4960_v37 = vcombine.high %v293_v32, %v297_v33  ;;  %v353_v25 = vld [vmem:[#allocation5 + $0x2f8] sm:$0xff] }
 0x178   : > { %2875 = vmatmul.mubr.bf16.gmra.mrb[112].mxu1 %v5145_v42  ;;  %v4955_v42 = vcombine.low %v291_v30, %v295_v31  ;;  %v355_v30 = vld [vmem:[#allocation5 + $0x308] sm:$0xff] }
 0x179   : > { %3581 = vmatmul.mubr.bf16.gmra.mrb[112].mxu0 %v5149_v43  ;;  %2884 = vmatprep.mubr.bf16.mxu1 %v5154_v44  ;;  %v4959_v43 = vcombine.low %v293_v32, %v297_v33  ;;  %v4964_v44 = vcombine.high %v299_v38, %v303_v39  ;;  %v359_v31 = vld [vmem:[#allocation5 + $0x328] sm:$0xff]  ;;  %v357_v32 = vld [vmem:[#allocation5 + $0x318] sm:$0xff] }
 0x17a   : > { %3590 = vmatprep.mubr.bf16.mxu0 %v5158_v45  ;;  %v4968_v45 = vcombine.high %v301_v40, %v305_v41  ;;  %v361_v33 = vld [vmem:[#allocation5 + $0x338] sm:$0xff] }
 0x180   : > { %2885 = vmatmul.mubr.bf16.gmra.mrb[116].mxu1 %v5153_v50  ;;  %v4963_v50 = vcombine.low %v299_v38, %v303_v39  ;;  %v363_v38 = vld [vmem:[#allocation5 + $0x348] sm:$0xff] }
 0x181   : > { %3591 = vmatmul.mubr.bf16.gmra.mrb[116].mxu0 %v5157_v51  ;;  %2894 = vmatprep.mubr.bf16.mxu1 %v5162_v52  ;;  %v4967_v51 = vcombine.low %v301_v40, %v305_v41  ;;  %v4972_v52 = vcombine.high %v307_v46, %v311_v47  ;;  %v367_v39 = vld [vmem:[#allocation5 + $0x368] sm:$0xff]  ;;  %v365_v40 = vld [vmem:[#allocation5 + $0x358] sm:$0xff] }
 0x182   : > { %3600 = vmatprep.mubr.bf16.mxu0 %v5166_v53  ;;  %v4976_v53 = vcombine.high %v309_v48, %v313_v49  ;;  %v369_v41 = vld [vmem:[#allocation5 + $0x378] sm:$0xff] }
 0x188   : > { %2895 = vmatmul.mubr.bf16.gmra.mrb[120].mxu1 %v5161_v58  ;;  %v4971_v58 = vcombine.low %v307_v46, %v311_v47  ;;  %v371_v46 = vld [vmem:[#allocation5 + $0x388] sm:$0xff] }
 0x189   : > { %3601 = vmatmul.mubr.bf16.gmra.mrb[120].mxu0 %v5165_v59  ;;  %2904 = vmatprep.mubr.bf16.mxu1 %v5170_v60  ;;  %v4975_v59 = vcombine.low %v309_v48, %v313_v49  ;;  %v4980_v60 = vcombine.high %v315_v54, %v319_v55  ;;  %v375_v47 = vld [vmem:[#allocation5 + $0x3a8] sm:$0xff]  ;;  %v373_v48 = vld [vmem:[#allocation5 + $0x398] sm:$0xff] }
 0x18a   : > { %3610 = vmatprep.mubr.bf16.mxu0 %v5174_v61  ;;  %v4984_v61 = vcombine.high %v317_v56, %v321_v57  ;;  %v377_v49 = vld [vmem:[#allocation5 + $0x3b8] sm:$0xff] }
 0x190   : > { %2905 = vmatmul.mubr.bf16.gmra.mrb[124].mxu1 %v5169_v2  ;;  %v4979_v2 = vcombine.low %v315_v54, %v319_v55  ;;  %v379_v54 = vld [vmem:[#allocation5 + $0x3c8] sm:$0xff] }
 0x191   : > { %3611 = vmatmul.mubr.bf16.gmra.mrb[124].mxu0 %v5173_v3  ;;  %2947 = vmatprep.mubr.bf16.mxu1 %v4924_v4  ;;  %v4983_v3 = vcombine.low %v317_v56, %v321_v57  ;;  %v4988_v4 = vcombine.high %v323_v62, %v327_v63  ;;  %v383_v55 = vld [vmem:[#allocation5 + $0x3e8] sm:$0xff]  ;;  %v381_v56 = vld [vmem:[#allocation5 + $0x3d8] sm:$0xff] }
 0x192   : > { %3653 = vmatprep.mubr.bf16.mxu0 %v4928_v5  ;;  %v4992_v5 = vcombine.high %v325_v0, %v329_v1  ;;  %v385_v57 = vld [vmem:[#allocation5 + $0x3f8] sm:$0xff] }
 0x198   : > { %2948 = vmatmul.mubr.bf16.vlgmr.msra.gmra.mrb[0].mxu1 %v4923_v10  ;;  %v4987_v10 = vcombine.low %v323_v62, %v327_v63  ;;  %v387_v62 = vld [vmem:[#allocation5 + $0x408] sm:$0xff] }
 0x199   : > { %3654 = vmatmul.mubr.bf16.vlgmr.msra.gmra.mrb[0].mxu0 %v4927_v11  ;;  %2957 = vmatprep.mubr.bf16.mxu1 %v4932_v12  ;;  %v4991_v11 = vcombine.low %v325_v0, %v329_v1  ;;  %v4996_v12 = vcombine.high %v331_v6, %v335_v7  ;;  %v391_v63 = vld [vmem:[#allocation5 + $0x428] sm:$0xff]  ;;  %v389_v0 = vld [vmem:[#allocation5 + $0x418] sm:$0xff] }
 0x19a   : > { %3663 = vmatprep.mubr.bf16.mxu0 %v4936_v13  ;;  %v5000_v13 = vcombine.high %v333_v8, %v337_v9  ;;  %v393_v1 = vld [vmem:[#allocation5 + $0x438] sm:$0xff] }
 0x1a0   : > { %2958 = vmatmul.mubr.bf16.gmra.mrb[4].mxu1 %v4931_v18  ;;  %v4995_v18 = vcombine.low %v331_v6, %v335_v7  ;;  %v395_v6 = vld [vmem:[#allocation5 + $0x448] sm:$0xff] }
 0x1a1   : > { %3664 = vmatmul.mubr.bf16.gmra.mrb[4].mxu0 %v4935_v19  ;;  %2967 = vmatprep.mubr.bf16.mxu1 %v4940_v20  ;;  %v4999_v19 = vcombine.low %v333_v8, %v337_v9  ;;  %v5004_v20 = vcombine.high %v339_v14, %v343_v15  ;;  %v399_v7 = vld [vmem:[#allocation5 + $0x468] sm:$0xff]  ;;  %v397_v8 = vld [vmem:[#allocation5 + $0x458] sm:$0xff] }
 0x1a2   : > { %3673 = vmatprep.mubr.bf16.mxu0 %v4944_v21  ;;  %v5008_v21 = vcombine.high %v341_v16, %v345_v17  ;;  %v401_v9 = vld [vmem:[#allocation5 + $0x478] sm:$0xff] }
 0x1a8   : > { %2968 = vmatmul.mubr.bf16.gmra.mrb[8].mxu1 %v4939_v26  ;;  %v5003_v26 = vcombine.low %v339_v14, %v343_v15  ;;  %v403_v14 = vld [vmem:[#allocation5 + $0x488] sm:$0xff] }
 0x1a9   : > { %3674 = vmatmul.mubr.bf16.gmra.mrb[8].mxu0 %v4943_v27  ;;  %2977 = vmatprep.mubr.bf16.mxu1 %v4948_v28  ;;  %v5007_v27 = vcombine.low %v341_v16, %v345_v17  ;;  %v5012_v28 = vcombine.high %v347_v22, %v351_v23  ;;  %v407_v15 = vld [vmem:[#allocation5 + $0x4a8] sm:$0xff]  ;;  %v405_v16 = vld [vmem:[#allocation5 + $0x498] sm:$0xff] }
 0x1aa   : > { %3683 = vmatprep.mubr.bf16.mxu0 %v4952_v29  ;;  %v5016_v29 = vcombine.high %v349_v24, %v353_v25  ;;  %v409_v17 = vld [vmem:[#allocation5 + $0x4b8] sm:$0xff] }
 0x1b0   : > { %2978 = vmatmul.mubr.bf16.gmra.mrb[12].mxu1 %v4947_v34  ;;  %v5011_v34 = vcombine.low %v347_v22, %v351_v23  ;;  %v411_v22 = vld [vmem:[#allocation5 + $0x4c8] sm:$0xff] }
 0x1b1   : > { %3684 = vmatmul.mubr.bf16.gmra.mrb[12].mxu0 %v4951_v35  ;;  %2987 = vmatprep.mubr.bf16.mxu1 %v4956_v36  ;;  %v5015_v35 = vcombine.low %v349_v24, %v353_v25  ;;  %v5020_v36 = vcombine.high %v355_v30, %v359_v31  ;;  %v415_v23 = vld [vmem:[#allocation5 + $0x4e8] sm:$0xff]  ;;  %v413_v24 = vld [vmem:[#allocation5 + $0x4d8] sm:$0xff] }
 0x1b2   : > { %3693 = vmatprep.mubr.bf16.mxu0 %v4960_v37  ;;  %v5024_v37 = vcombine.high %v357_v32, %v361_v33  ;;  %v417_v25 = vld [vmem:[#allocation5 + $0x4f8] sm:$0xff] }
 0x1b8   : > { %2988 = vmatmul.mubr.bf16.gmra.mrb[16].mxu1 %v4955_v42  ;;  %v5019_v42 = vcombine.low %v355_v30, %v359_v31  ;;  %v419_v30 = vld [vmem:[#allocation5 + $0x508] sm:$0xff] }
 0x1b9   : > { %3694 = vmatmul.mubr.bf16.gmra.mrb[16].mxu0 %v4959_v43  ;;  %2997 = vmatprep.mubr.bf16.mxu1 %v4964_v44  ;;  %v5023_v43 = vcombine.low %v357_v32, %v361_v33  ;;  %v5028_v44 = vcombine.high %v363_v38, %v367_v39  ;;  %v423_v31 = vld [vmem:[#allocation5 + $0x528] sm:$0xff]  ;;  %v421_v32 = vld [vmem:[#allocation5 + $0x518] sm:$0xff] }
 0x1ba   : > { %3703 = vmatprep.mubr.bf16.mxu0 %v4968_v45  ;;  %v5032_v45 = vcombine.high %v365_v40, %v369_v41  ;;  %v425_v33 = vld [vmem:[#allocation5 + $0x538] sm:$0xff] }
 0x1c0   : > { %2998 = vmatmul.mubr.bf16.gmra.mrb[20].mxu1 %v4963_v50  ;;  %v5027_v50 = vcombine.low %v363_v38, %v367_v39  ;;  %v427_v38 = vld [vmem:[#allocation5 + $0x548] sm:$0xff] }
 0x1c1   : > { %3704 = vmatmul.mubr.bf16.gmra.mrb[20].mxu0 %v4967_v51  ;;  %3007 = vmatprep.mubr.bf16.mxu1 %v4972_v52  ;;  %v5031_v51 = vcombine.low %v365_v40, %v369_v41  ;;  %v5036_v52 = vcombine.high %v371_v46, %v375_v47  ;;  %v431_v39 = vld [vmem:[#allocation5 + $0x568] sm:$0xff]  ;;  %v429_v40 = vld [vmem:[#allocation5 + $0x558] sm:$0xff] }
 0x1c2   : > { %3713 = vmatprep.mubr.bf16.mxu0 %v4976_v53  ;;  %v5040_v53 = vcombine.high %v373_v48, %v377_v49  ;;  %v433_v41 = vld [vmem:[#allocation5 + $0x578] sm:$0xff] }
 0x1c8   : > { %3008 = vmatmul.mubr.bf16.gmra.mrb[24].mxu1 %v4971_v58  ;;  %v5035_v58 = vcombine.low %v371_v46, %v375_v47  ;;  %v435_v46 = vld [vmem:[#allocation5 + $0x588] sm:$0xff] }
 0x1c9   : > { %3714 = vmatmul.mubr.bf16.gmra.mrb[24].mxu0 %v4975_v59  ;;  %3017 = vmatprep.mubr.bf16.mxu1 %v4980_v60  ;;  %v5039_v59 = vcombine.low %v373_v48, %v377_v49  ;;  %v5044_v60 = vcombine.high %v379_v54, %v383_v55  ;;  %v439_v47 = vld [vmem:[#allocation5 + $0x5a8] sm:$0xff]  ;;  %v437_v48 = vld [vmem:[#allocation5 + $0x598] sm:$0xff] }
 0x1ca   : > { %3723 = vmatprep.mubr.bf16.mxu0 %v4984_v61  ;;  %v5048_v61 = vcombine.high %v381_v56, %v385_v57  ;;  %v441_v49 = vld [vmem:[#allocation5 + $0x5b8] sm:$0xff] }
 0x1d0   : > { %3018 = vmatmul.mubr.bf16.gmra.mrb[28].mxu1 %v4979_v2  ;;  %v5043_v2 = vcombine.low %v379_v54, %v383_v55  ;;  %v443_v54 = vld [vmem:[#allocation5 + $0x5c8] sm:$0xff] }
 0x1d1   : > { %3724 = vmatmul.mubr.bf16.gmra.mrb[28].mxu0 %v4983_v3  ;;  %3027 = vmatprep.mubr.bf16.mxu1 %v4988_v4  ;;  %v5047_v3 = vcombine.low %v381_v56, %v385_v57  ;;  %v5052_v4 = vcombine.high %v387_v62, %v391_v63  ;;  %v447_v55 = vld [vmem:[#allocation5 + $0x5e8] sm:$0xff]  ;;  %v445_v56 = vld [vmem:[#allocation5 + $0x5d8] sm:$0xff] }
 0x1d2   : > { %3733 = vmatprep.mubr.bf16.mxu0 %v4992_v5  ;;  %v5056_v5 = vcombine.high %v389_v0, %v393_v1  ;;  %v449_v57 = vld [vmem:[#allocation5 + $0x5f8] sm:$0xff] }
 0x1d8   : > { %3028 = vmatmul.mubr.bf16.gmra.mrb[32].mxu1 %v4987_v10  ;;  %v5051_v10 = vcombine.low %v387_v62, %v391_v63  ;;  %v451_v62 = vld [vmem:[#allocation5 + $0x608] sm:$0xff] }
 0x1d9   : > { %3734 = vmatmul.mubr.bf16.gmra.mrb[32].mxu0 %v4991_v11  ;;  %3037 = vmatprep.mubr.bf16.mxu1 %v4996_v12  ;;  %v5055_v11 = vcombine.low %v389_v0, %v393_v1  ;;  %v5060_v12 = vcombine.high %v395_v6, %v399_v7  ;;  %v455_v63 = vld [vmem:[#allocation5 + $0x628] sm:$0xff]  ;;  %v453_v0 = vld [vmem:[#allocation5 + $0x618] sm:$0xff] }
 0x1da   : > { %3743 = vmatprep.mubr.bf16.mxu0 %v5000_v13  ;;  %v5064_v13 = vcombine.high %v397_v8, %v401_v9  ;;  %v457_v1 = vld [vmem:[#allocation5 + $0x638] sm:$0xff] }
 0x1e0   : > { %3038 = vmatmul.mubr.bf16.gmra.mrb[36].mxu1 %v4995_v18  ;;  %v5059_v18 = vcombine.low %v395_v6, %v399_v7  ;;  %v459_v6 = vld [vmem:[#allocation5 + $0x648] sm:$0xff] }
 0x1e1   : > { %3744 = vmatmul.mubr.bf16.gmra.mrb[36].mxu0 %v4999_v19  ;;  %3047 = vmatprep.mubr.bf16.mxu1 %v5004_v20  ;;  %v5063_v19 = vcombine.low %v397_v8, %v401_v9  ;;  %v5068_v20 = vcombine.high %v403_v14, %v407_v15  ;;  %v463_v7 = vld [vmem:[#allocation5 + $0x668] sm:$0xff]  ;;  %v461_v8 = vld [vmem:[#allocation5 + $0x658] sm:$0xff] }
 0x1e2   : > { %3753 = vmatprep.mubr.bf16.mxu0 %v5008_v21  ;;  %v5072_v21 = vcombine.high %v405_v16, %v409_v17  ;;  %v465_v9 = vld [vmem:[#allocation5 + $0x678] sm:$0xff] }
 0x1e8   : > { %3048 = vmatmul.mubr.bf16.gmra.mrb[40].mxu1 %v5003_v26  ;;  %v5067_v26 = vcombine.low %v403_v14, %v407_v15  ;;  %v467_v14 = vld [vmem:[#allocation5 + $0x688] sm:$0xff] }
 0x1e9   : > { %3754 = vmatmul.mubr.bf16.gmra.mrb[40].mxu0 %v5007_v27  ;;  %3057 = vmatprep.mubr.bf16.mxu1 %v5012_v28  ;;  %v5071_v27 = vcombine.low %v405_v16, %v409_v17  ;;  %v5076_v28 = vcombine.high %v411_v22, %v415_v23  ;;  %v471_v15 = vld [vmem:[#allocation5 + $0x6a8] sm:$0xff]  ;;  %v469_v16 = vld [vmem:[#allocation5 + $0x698] sm:$0xff] }
 0x1ea   : > { %3763 = vmatprep.mubr.bf16.mxu0 %v5016_v29  ;;  %v5080_v29 = vcombine.high %v413_v24, %v417_v25  ;;  %v473_v17 = vld [vmem:[#allocation5 + $0x6b8] sm:$0xff] }
 0x1f0   : > { %3058 = vmatmul.mubr.bf16.gmra.mrb[44].mxu1 %v5011_v34  ;;  %v5075_v34 = vcombine.low %v411_v22, %v415_v23  ;;  %v475_v22 = vld [vmem:[#allocation5 + $0x6c8] sm:$0xff] }
 0x1f1   : > { %3764 = vmatmul.mubr.bf16.gmra.mrb[44].mxu0 %v5015_v35  ;;  %3067 = vmatprep.mubr.bf16.mxu1 %v5020_v36  ;;  %v5079_v35 = vcombine.low %v413_v24, %v417_v25  ;;  %v5084_v36 = vcombine.high %v419_v30, %v423_v31  ;;  %v479_v23 = vld [vmem:[#allocation5 + $0x6e8] sm:$0xff]  ;;  %v477_v24 = vld [vmem:[#allocation5 + $0x6d8] sm:$0xff] }
 0x1f2   : > { %3773 = vmatprep.mubr.bf16.mxu0 %v5024_v37  ;;  %v5088_v37 = vcombine.high %v421_v32, %v425_v33  ;;  %v481_v25 = vld [vmem:[#allocation5 + $0x6f8] sm:$0xff] }
 0x1f8   : > { %3068 = vmatmul.mubr.bf16.gmra.mrb[48].mxu1 %v5019_v42  ;;  %v5083_v42 = vcombine.low %v419_v30, %v423_v31  ;;  %v6403_v30 = vld [vmem:[#allocation5 + $0x708] sm:$0xff] }
 0x1f9   : > { %3774 = vmatmul.mubr.bf16.gmra.mrb[48].mxu0 %v5023_v43  ;;  %3077 = vmatprep.mubr.bf16.mxu1 %v5028_v44  ;;  %v5087_v43 = vcombine.low %v421_v32, %v425_v33  ;;  %v5092_v44 = vcombine.high %v427_v38, %v431_v39  ;;  %v6405_v31 = vld [vmem:[#allocation5 + $0x728] sm:$0xff] }
 0x1fa   : > { %3783 = vmatprep.mubr.bf16.mxu0 %v5032_v45  ;;  %v5096_v45 = vcombine.high %v429_v40, %v433_v41 }
 0x200   : > { %3078 = vmatmul.mubr.bf16.gmra.mrb[52].mxu1 %v5027_v50  ;;  %v5091_v50 = vcombine.low %v427_v38, %v431_v39  ;;  %v5139_v39 = vcombine.low %v475_v22, %v479_v23 }
 0x201   : > { %3784 = vmatmul.mubr.bf16.gmra.mrb[52].mxu0 %v5031_v51  ;;  %3087 = vmatprep.mubr.bf16.mxu1 %v5036_v52  ;;  %v5095_v51 = vcombine.low %v429_v40, %v433_v41  ;;  %v5100_v52 = vcombine.high %v435_v46, %v439_v47  ;;  %v5143_v40 = vcombine.low %v477_v24, %v481_v25 }
 0x202   : > { %3793 = vmatprep.mubr.bf16.mxu0 %v5040_v53  ;;  %v5104_v53 = vcombine.high %v437_v48, %v441_v49 }
 0x208   : > { %3088 = vmatmul.mubr.bf16.gmra.mrb[56].mxu1 %v5035_v58  ;;  %v5099_v58 = vcombine.low %v435_v46, %v439_v47 }
 0x209   : > { %3794 = vmatmul.mubr.bf16.gmra.mrb[56].mxu0 %v5039_v59  ;;  %3097 = vmatprep.mubr.bf16.mxu1 %v5044_v60  ;;  %v5103_v59 = vcombine.low %v437_v48, %v441_v49  ;;  %v5108_v60 = vcombine.high %v443_v54, %v447_v55 }
 0x20a   : > { %3803 = vmatprep.mubr.bf16.mxu0 %v5048_v61  ;;  %v5112_v61 = vcombine.high %v445_v56, %v449_v57 }
 0x210   : > { %3098 = vmatmul.mubr.bf16.gmra.mrb[60].mxu1 %v5043_v2  ;;  %v5107_v2 = vcombine.low %v443_v54, %v447_v55 }
 0x211   : > { %3804 = vmatmul.mubr.bf16.gmra.mrb[60].mxu0 %v5047_v3  ;;  %3107 = vmatprep.mubr.bf16.mxu1 %v5052_v4  ;;  %v5111_v3 = vcombine.low %v445_v56, %v449_v57  ;;  %v5116_v4 = vcombine.high %v451_v62, %v455_v63  ;;  %v6420_v57 = vld [vmem:[#allocation5 + $0x748] sm:$0xff] }
 0x212   : > { %3813 = vmatprep.mubr.bf16.mxu0 %v5056_v5  ;;  %v5120_v5 = vcombine.high %v453_v0, %v457_v1 }
 0x218   : > { %3108 = vmatmul.mubr.bf16.gmra.mrb[64].mxu1 %v5051_v10  ;;  %v5115_v10 = vcombine.low %v451_v62, %v455_v63  ;;  %v6424_v62 = vld [vmem:[#allocation5 + $0x758] sm:$0xff] }
 0x219   : > { %3814 = vmatmul.mubr.bf16.gmra.mrb[64].mxu0 %v5055_v11  ;;  %3117 = vmatprep.mubr.bf16.mxu1 %v5060_v12  ;;  %v5119_v11 = vcombine.low %v453_v0, %v457_v1  ;;  %v5124_v12 = vcombine.high %v459_v6, %v463_v7  ;;  %v6426_v63 = vld [vmem:[#allocation5 + $0x778] sm:$0xff] }
 0x21a   : > { %3823 = vmatprep.mubr.bf16.mxu0 %v5064_v13  ;;  %v5128_v13 = vcombine.high %v461_v8, %v465_v9 }
 0x220   : > { %3118 = vmatmul.mubr.bf16.gmra.mrb[68].mxu1 %v5059_v18  ;;  %v5123_v18 = vcombine.low %v459_v6, %v463_v7 }
 0x221   : > { %3824 = vmatmul.mubr.bf16.gmra.mrb[68].mxu0 %v5063_v19  ;;  %3127 = vmatprep.mubr.bf16.mxu1 %v5068_v20  ;;  %v5127_v19 = vcombine.low %v461_v8, %v465_v9  ;;  %v5132_v20 = vcombine.high %v467_v14, %v471_v15 }
 0x222   : > { %3833 = vmatprep.mubr.bf16.mxu0 %v5072_v21  ;;  %v5136_v21 = vcombine.high %v469_v16, %v473_v17 }
 0x228   : > { %3128 = vmatmul.mubr.bf16.gmra.mrb[72].mxu1 %v5067_v26  ;;  %v5131_v26 = vcombine.low %v467_v14, %v471_v15 }
 0x229   : > { %3834 = vmatmul.mubr.bf16.gmra.mrb[72].mxu0 %v5071_v27  ;;  %3137 = vmatprep.mubr.bf16.mxu1 %v5076_v28  ;;  %v5135_v27 = vcombine.low %v469_v16, %v473_v17  ;;  %v5140_v28 = vcombine.high %v475_v22, %v479_v23 }
 0x22a   : > { %3843 = vmatprep.mubr.bf16.mxu0 %v5080_v29  ;;  %v5144_v29 = vcombine.high %v477_v24, %v481_v25  ;;  %v6441_v25 = vld [vmem:[#allocation5 + $0x7a8] sm:$0xff] }
 0x230   : > { %3138 = vmatmul.mubr.bf16.gmra.mrb[76].mxu1 %v5075_v34  ;;  %v6407_v34 = vld [vmem:[#allocation5 + $0x718] sm:$0xff] }
 0x231   : > { %3844 = vmatmul.mubr.bf16.gmra.mrb[76].mxu0 %v5079_v35  ;;  %3147 = vmatprep.mubr.bf16.mxu1 %v5084_v36  ;;  %v489_v35 = vld [vmem:[#allocation5 + $0x738] sm:$0xff] }
 0x232   : > { %3853 = vmatprep.mubr.bf16.mxu0 %v5088_v37  ;;  %v5152_v48 = vcombine.high %v6407_v34, %v489_v35 }
 0x238   : > { %3148 = vmatmul.mubr.bf16.gmra.mrb[80].mxu1 %v5083_v42 }
 0x239   : > { %3854 = vmatmul.mubr.bf16.gmra.mrb[80].mxu0 %v5087_v43  ;;  %3157 = vmatprep.mubr.bf16.mxu1 %v5092_v44  ;;  %v5148_v44 = vcombine.high %v6403_v30, %v6405_v31 }
 0x23a   : > { %3863 = vmatprep.mubr.bf16.mxu0 %v5096_v45 }
 0x240   : > { %3158 = vmatmul.mubr.bf16.gmra.mrb[84].mxu1 %v5091_v50 }
 0x241   : > { %3864 = vmatmul.mubr.bf16.gmra.mrb[84].mxu0 %v5095_v51  ;;  %3167 = vmatprep.mubr.bf16.mxu1 %v5100_v52 }
 0x242   : > { %3873 = vmatprep.mubr.bf16.mxu0 %v5104_v53 }
 0x248   : > { %3168 = vmatmul.mubr.bf16.gmra.mrb[88].mxu1 %v5099_v58 }
 0x249   : > { %3874 = vmatmul.mubr.bf16.gmra.mrb[88].mxu0 %v5103_v59  ;;  %3177 = vmatprep.mubr.bf16.mxu1 %v5108_v60 }
 0x24a   : > { %3883 = vmatprep.mubr.bf16.mxu0 %v5112_v61  ;;  %v6422_v61 = vld [vmem:[#allocation5 + $0x768] sm:$0xff] }
 0x250   : > { %3178 = vmatmul.mubr.bf16.gmra.mrb[92].mxu1 %v5107_v2 }
 0x251   : > { %3884 = vmatmul.mubr.bf16.gmra.mrb[92].mxu0 %v5111_v3  ;;  %3187 = vmatprep.mubr.bf16.mxu1 %v5116_v4  ;;  %v5147_v3 = vcombine.low %v6403_v30, %v6405_v31  ;;  %v5151_v4 = vcombine.low %v6407_v34, %v489_v35  ;;  %v5155_v31 = vcombine.low %v6420_v57, %v6422_v61 }
 0x252   : > { %3893 = vmatprep.mubr.bf16.mxu0 %v5120_v5 }
 0x258   : > { %3188 = vmatmul.mubr.bf16.gmra.mrb[96].mxu1 %v5115_v10 }
 0x259   : > { %3894 = vmatmul.mubr.bf16.gmra.mrb[96].mxu0 %v5119_v11  ;;  %3197 = vmatprep.mubr.bf16.mxu1 %v5124_v12  ;;  %v5156_v12 = vcombine.high %v6420_v57, %v6422_v61 }
 0x25a   : > { %3903 = vmatprep.mubr.bf16.mxu0 %v5128_v13  ;;  %v5160_v13 = vcombine.high %v6424_v62, %v6426_v63 }
 0x260   : > { %3198 = vmatmul.mubr.bf16.gmra.mrb[100].mxu1 %v5123_v18 }
 0x261   : > { %3904 = vmatmul.mubr.bf16.gmra.mrb[100].mxu0 %v5127_v19  ;;  %3207 = vmatprep.mubr.bf16.mxu1 %v5132_v20 }
 0x262   : > { %3913 = vmatprep.mubr.bf16.mxu0 %v5136_v21  ;;  %v6439_v21 = vld [vmem:[#allocation5 + $0x788] sm:$0xff] }
 0x268   : > { %3208 = vmatmul.mubr.bf16.gmra.mrb[104].mxu1 %v5131_v26  ;;  %v6443_v26 = vld [vmem:[#allocation5 + $0x798] sm:$0xff] }
 0x269   : > { %3914 = vmatmul.mubr.bf16.gmra.mrb[104].mxu0 %v5135_v27  ;;  %3217 = vmatprep.mubr.bf16.mxu1 %v5140_v28  ;;  %v6445_v27 = vld [vmem:[#allocation5 + $0x7b8] sm:$0xff] }
 0x26a   : > { %3923 = vmatprep.mubr.bf16.mxu0 %v5144_v29 }
 0x26b   : > { %v2949_v32 = vpop.f32.mrb[0].mxu1 }
 0x26c   : > { %v3655_v33 = vpop.f32.mrb[0].mxu0  ;;  %v2951_v37 = vpop.f32.mrb[1].mxu1 }
 0x26d   : > { %v5314_v36 = vadd.f32 %v3655_v33, %v2949_v32  ;;  %v3657_v38 = vpop.f32.mrb[1].mxu0  ;;  %v2953_v42 = vpop.f32.mrb[2].mxu1  ;;  %v5159_v32 = vcombine.low %v6424_v62, %v6426_v63 }
 0x26e   : > { %v5315_v41 = vadd.f32 %v3657_v38, %v2951_v37  ;;  %v3659_v43 = vpop.f32.mrb[2].mxu0  ;;  %v2955_v46 = vpop.f32.mrb[3].mxu1 }
 0x26f   : > { %3974 = vst [vmem:[%s6413_s26] sm:$0xff] %v5314_v36  ;;  %v5316_v45 = vadd.f32 %v3659_v43, %v2953_v42  ;;  %v3661_v47 = vpop.f32.mrb[3].mxu0  ;;  %v4294_v49 = vmul.f32 %v5314_v36, %v5314_v36 }
 0x270   : > { %3975 = vst [vmem:[%s6413_s26 + $0x8] sm:$0xff] %v5315_v41  ;;  %v5317_v50 = vadd.f32 %v3661_v47, %v2955_v46  ;;  %v4102_v51 = vadd.f32 %v5315_v41, %v5314_v36  ;;  %v4295_v52 = vmul.f32 %v5315_v41, %v5315_v41  ;;  %3218 = vmatmul.mubr.bf16.gmra.mrb[108].mxu1 %v5139_v39 }
 0x271   : > { %3976 = vst [vmem:[%s6413_s26 + $0x10] sm:$0xff] %v5316_v45  ;;  %3924 = vmatmul.mubr.bf16.gmra.mrb[108].mxu0 %v5143_v40  ;;  %v4296_v53 = vmul.f32 %v5316_v45, %v5316_v45  ;;  %3227 = vmatprep.mubr.bf16.mxu1 %v5148_v44  ;;  %v5164_v40 = vcombine.high %v6439_v21, %v6441_v25 }
 0x272   : > { %3977 = vst [vmem:[%s6413_s26 + $0x18] sm:$0xff] %v5317_v50  ;;  %4103 = vadd.xlane.f32.xlu0 %v4102_v51  ;;  %v4297_v54 = vmul.f32 %v5317_v50, %v5317_v50  ;;  %v4105_v55 = vadd.f32 %v5317_v50, %v5316_v45  ;;  %v4422_v56 = vadd.f32 %v4295_v52, %v4294_v49  ;;  %v6459_v49 = vld [vmem:[#allocation5 + $0x7c8] sm:$0xff] }
 0x273   : > { %3933 = vmatprep.mubr.bf16.mxu0 %v5152_v48  ;;  %v2959_v58 = vpop.f32.mrb[4].mxu1  ;;  %v5168_v41 = vcombine.high %v6443_v26, %v6445_v27 }
 0x274   : > { %v3665_v59 = vpop.f32.mrb[4].mxu0  ;;  %v4425_v60 = vadd.f32 %v4297_v54, %v4296_v53  ;;  %v2961_v1 = vpop.f32.mrb[5].mxu1  ;;  %v511_v53 = vld [vmem:[#allocation5 + $0x7e8] sm:$0xff]  ;;  %v509_v54 = vld [vmem:[#allocation5 + $0x7d8] sm:$0xff] }
 0x275   : > { %v5318_v0 = vadd.f32 %v3665_v59, %v2959_v58  ;;  %v3667_v2 = vpop.f32.mrb[5].mxu0  ;;  %v2963_v7 = vpop.f32.mrb[6].mxu1  ;;  %v5163_v59 = vcombine.low %v6439_v21, %v6441_v25 }
 0x276   : > { %v5319_v5 = vadd.f32 %v3667_v2, %v2961_v1  ;;  %v3669_v6 = vpop.f32.mrb[6].mxu0  ;;  %4426 = vadd.xlane.f32.xlu1 %v4425_v60  ;;  %4106 = vadd.xlane.f32.xlu0 %v4105_v55  ;;  %v2965_v9 = vpop.f32.mrb[7].mxu1  ;;  %v513_v55 = vld [vmem:[#allocation5 + $0x7f8] sm:$0xff]  ;;  %v5167_v60 = vcombine.low %v6443_v26, %v6445_v27 }
 0x277   : > { %3978 = vst [vmem:[%s6413_s26 + $0x20] sm:$0xff] %v5318_v0  ;;  %v5320_v8 = vadd.f32 %v3669_v6, %v2963_v7  ;;  %v3671_v10 = vpop.f32.mrb[7].mxu0  ;;  %v4298_v11 = vmul.f32 %v5318_v0, %v5318_v0 }
 0x278   : > { %3979 = vst [vmem:[%s6413_s26 + $0x28] sm:$0xff] %v5319_v5  ;;  %v5321_v14 = vadd.f32 %v3671_v10, %v2965_v9  ;;  %v4108_v15 = vadd.f32 %v5319_v5, %v5318_v0  ;;  %v4299_v16 = vmul.f32 %v5319_v5, %v5319_v5  ;;  %3228 = vmatmul.mubr.bf16.gmra.mrb[112].mxu1 %v5147_v3 }
 0x279   : > { %3980 = vst [vmem:[%s6413_s26 + $0x30] sm:$0xff] %v5320_v8  ;;  %3934 = vmatmul.mubr.bf16.gmra.mrb[112].mxu0 %v5151_v4  ;;  %v4300_v17 = vmul.f32 %v5320_v8, %v5320_v8  ;;  %3237 = vmatprep.mubr.bf16.mxu1 %v5156_v12  ;;  %v5172_v4 = vcombine.high %v6459_v49, %v511_v53 }
 0x27a   : > { %3981 = vst [vmem:[%s6413_s26 + $0x38] sm:$0xff] %v5321_v14  ;;  %4423 = vadd.xlane.f32.xlu0 %v4422_v56  ;;  %4109 = vadd.xlane.f32.xlu1 %v4108_v15  ;;  %v4428_v18 = vadd.f32 %v4299_v16, %v4298_v11  ;;  %v4111_v19 = vadd.f32 %v5321_v14, %v5320_v8 }
 0x27b   : > { %v4301_v20 = vmul.f32 %v5321_v14, %v5321_v14  ;;  %3943 = vmatprep.mubr.bf16.mxu0 %v5160_v13  ;;  %v2969_v22 = vpop.f32.mrb[8].mxu1  ;;  %v5176_v5 = vcombine.high %v509_v54, %v513_v55 }
 0x27c   : > { %v3675_v23 = vpop.f32.mrb[8].mxu0  ;;  %v2971_v29 = vpop.f32.mrb[9].mxu1 }
 0x27d   : > { %v4431_v24 = vadd.f32 %v4301_v20, %v4300_v17  ;;  %v5322_v28 = vadd.f32 %v3675_v23, %v2969_v22  ;;  %v3677_v30 = vpop.f32.mrb[9].mxu0  ;;  %v2973_v35 = vpop.f32.mrb[10].mxu1  ;;  %v5175_v20 = vcombine.low %v509_v54, %v513_v55 }
 0x27e   : > { %v5323_v33 = vadd.f32 %v3677_v30, %v2971_v29  ;;  %v3679_v34 = vpop.f32.mrb[10].mxu0  ;;  %4429 = vadd.xlane.f32.xlu0 %v4428_v18  ;;  %4112 = vadd.xlane.f32.xlu1 %v4111_v19  ;;  %v2975_v37 = vpop.f32.mrb[11].mxu1  ;;  %v5171_v19 = vcombine.low %v6459_v49, %v511_v53 }
 0x27f   : > { %3982 = vst [vmem:[%s6413_s26 + $0x40] sm:$0xff] %v5322_v28  ;;  %v5324_v36 = vadd.f32 %v3679_v34, %v2973_v35  ;;  %v3681_v38 = vpop.f32.mrb[11].mxu0  ;;  %v4302_v39 = vmul.f32 %v5322_v28, %v5322_v28 }
 0x280   : > { %3983 = vst [vmem:[%s6413_s26 + $0x48] sm:$0xff] %v5323_v33  ;;  %v5325_v42 = vadd.f32 %v3681_v38, %v2975_v37  ;;  %v4114_v43 = vadd.f32 %v5323_v33, %v5322_v28  ;;  %v4303_v44 = vmul.f32 %v5323_v33, %v5323_v33  ;;  %3238 = vmatmul.mubr.bf16.gmra.mrb[116].mxu1 %v5155_v31 }
 0x281   : > { %3984 = vst [vmem:[%s6413_s26 + $0x50] sm:$0xff] %v5324_v36  ;;  %3944 = vmatmul.mubr.bf16.gmra.mrb[116].mxu0 %v5159_v32  ;;  %v4304_v45 = vmul.f32 %v5324_v36, %v5324_v36  ;;  %3247 = vmatprep.mubr.bf16.mxu1 %v5164_v40 }
 0x282   : > { %3985 = vst [vmem:[%s6413_s26 + $0x58] sm:$0xff] %v5325_v42  ;;  %4432 = vadd.xlane.f32.xlu1 %v4431_v24  ;;  %4115 = vadd.xlane.f32.xlu0 %v4114_v43  ;;  %v4434_v46 = vadd.f32 %v4303_v44, %v4302_v39  ;;  %v4117_v47 = vadd.f32 %v5325_v42, %v5324_v36 }
 0x283   : > { %v4305_v48 = vmul.f32 %v5325_v42, %v5325_v42  ;;  %3953 = vmatprep.mubr.bf16.mxu0 %v5168_v41  ;;  %v2979_v50 = vpop.f32.mrb[12].mxu1 }
 0x284   : > { %v3685_v51 = vpop.f32.mrb[12].mxu0  ;;  %v2981_v57 = vpop.f32.mrb[13].mxu1 }
 0x285   : > { %v4437_v52 = vadd.f32 %v4305_v48, %v4304_v45  ;;  %v5326_v56 = vadd.f32 %v3685_v51, %v2979_v50  ;;  %v3687_v58 = vpop.f32.mrb[13].mxu0  ;;  %v2983_v63 = vpop.f32.mrb[14].mxu1 }
 0x286   : > { %v5327_v61 = vadd.f32 %v3687_v58, %v2981_v57  ;;  %v3689_v62 = vpop.f32.mrb[14].mxu0  ;;  %4435 = vadd.xlane.f32.xlu0 %v4434_v46  ;;  %4118 = vadd.xlane.f32.xlu1 %v4117_v47  ;;  %v2985_v1 = vpop.f32.mrb[15].mxu1 }
 0x287   : > { %3986 = vst [vmem:[%s6413_s26 + $0x60] sm:$0xff] %v5326_v56  ;;  %v5328_v0 = vadd.f32 %v3689_v62, %v2983_v63  ;;  %v3691_v2 = vpop.f32.mrb[15].mxu0  ;;  %v4306_v3 = vmul.f32 %v5326_v56, %v5326_v56 }
 0x288   : > { %3987 = vst [vmem:[%s6413_s26 + $0x68] sm:$0xff] %v5327_v61  ;;  %v5329_v6 = vadd.f32 %v3691_v2, %v2985_v1  ;;  %v4120_v7 = vadd.f32 %v5327_v61, %v5326_v56  ;;  %v4307_v8 = vmul.f32 %v5327_v61, %v5327_v61  ;;  %3248 = vmatmul.mubr.bf16.gmra.mrb[120].mxu1 %v5163_v59 }
 0x289   : > { %3988 = vst [vmem:[%s6413_s26 + $0x70] sm:$0xff] %v5328_v0  ;;  %3954 = vmatmul.mubr.bf16.gmra.mrb[120].mxu0 %v5167_v60  ;;  %v4308_v9 = vmul.f32 %v5328_v0, %v5328_v0  ;;  %3257 = vmatprep.mubr.bf16.mxu1 %v5172_v4 }
 0x28a   : > { %3989 = vst [vmem:[%s6413_s26 + $0x78] sm:$0xff] %v5329_v6  ;;  %4438 = vadd.xlane.f32.xlu1 %v4437_v52  ;;  %4121 = vadd.xlane.f32.xlu0 %v4120_v7  ;;  %v4440_v10 = vadd.f32 %v4307_v8, %v4306_v3  ;;  %v4123_v11 = vadd.f32 %v5329_v6, %v5328_v0 }
 0x28b   : > { %v4309_v12 = vmul.f32 %v5329_v6, %v5329_v6  ;;  %3963 = vmatprep.mubr.bf16.mxu0 %v5176_v5  ;;  %v2989_v13 = vpop.f32.mrb[16].mxu1 }
 0x28c   : > { %v3695_v14 = vpop.f32.mrb[16].mxu0  ;;  %v2991_v17 = vpop.f32.mrb[17].mxu1 }
 0x28d   : > { %v4443_v15 = vadd.f32 %v4309_v12, %v4308_v9  ;;  %v5330_v16 = vadd.f32 %v3695_v14, %v2989_v13  ;;  %v3697_v18 = vpop.f32.mrb[17].mxu0  ;;  %v2993_v23 = vpop.f32.mrb[18].mxu1 }
 0x28e   : > { %v5331_v21 = vadd.f32 %v3697_v18, %v2991_v17  ;;  %v3699_v22 = vpop.f32.mrb[18].mxu0  ;;  %4441 = vadd.xlane.f32.xlu0 %v4440_v10  ;;  %4124 = vadd.xlane.f32.xlu1 %v4123_v11  ;;  %v2995_v25 = vpop.f32.mrb[19].mxu1 }
 0x28f   : > { %3990 = vst [vmem:[%s6413_s26 + $0x80] sm:$0xff] %v5330_v16  ;;  %v5332_v24 = vadd.f32 %v3699_v22, %v2993_v23  ;;  %v3701_v26 = vpop.f32.mrb[19].mxu0  ;;  %v4310_v27 = vmul.f32 %v5330_v16, %v5330_v16 }
 0x290   : > { %3991 = vst [vmem:[%s6413_s26 + $0x88] sm:$0xff] %v5331_v21  ;;  %v5333_v28 = vadd.f32 %v3701_v26, %v2995_v25  ;;  %v4126_v29 = vadd.f32 %v5331_v21, %v5330_v16  ;;  %v4311_v30 = vmul.f32 %v5331_v21, %v5331_v21  ;;  %3258 = vmatmul.mubr.bf16.gmra.mrb[124].mxu1 %v5171_v19 }
 0x291   : > { %3992 = vst [vmem:[%s6413_s26 + $0x90] sm:$0xff] %v5332_v24  ;;  %3964 = vmatmul.mubr.bf16.gmra.mrb[124].mxu0 %v5175_v20  ;;  %v4312_v31 = vmul.f32 %v5332_v24, %v5332_v24 }
 0x292   : > { %3993 = vst [vmem:[%s6413_s26 + $0x98] sm:$0xff] %v5333_v28  ;;  %4444 = vadd.xlane.f32.xlu1 %v4443_v15  ;;  %4127 = vadd.xlane.f32.xlu0 %v4126_v29  ;;  %v4446_v32 = vadd.f32 %v4311_v30, %v4310_v27  ;;  %v4129_v33 = vadd.f32 %v5333_v28, %v5332_v24 }
 0x293   : > { %v4313_v34 = vmul.f32 %v5333_v28, %v5333_v28  ;;  %v2999_v35 = vpop.f32.mrb[20].mxu1 }
 0x294   : > { %v3705_v36 = vpop.f32.mrb[20].mxu0  ;;  %v3001_v39 = vpop.f32.mrb[21].mxu1 }
 0x295   : > { %v4449_v37 = vadd.f32 %v4313_v34, %v4312_v31  ;;  %v5334_v38 = vadd.f32 %v3705_v36, %v2999_v35  ;;  %v3707_v40 = vpop.f32.mrb[21].mxu0  ;;  %v3003_v43 = vpop.f32.mrb[22].mxu1 }
 0x296   : > { %v5335_v41 = vadd.f32 %v3707_v40, %v3001_v39  ;;  %v3709_v42 = vpop.f32.mrb[22].mxu0  ;;  %4447 = vadd.xlane.f32.xlu0 %v4446_v32  ;;  %4130 = vadd.xlane.f32.xlu1 %v4129_v33  ;;  %v3005_v45 = vpop.f32.mrb[23].mxu1 }
 0x297   : > { %3994 = vst [vmem:[%s6413_s26 + $0xa0] sm:$0xff] %v5334_v38  ;;  %v5336_v44 = vadd.f32 %v3709_v42, %v3003_v43  ;;  %v3711_v46 = vpop.f32.mrb[23].mxu0  ;;  %v4314_v47 = vmul.f32 %v5334_v38, %v5334_v38 }
 0x298   : > { %3995 = vst [vmem:[%s6413_s26 + $0xa8] sm:$0xff] %v5335_v41  ;;  %v5337_v48 = vadd.f32 %v3711_v46, %v3005_v45  ;;  %v4132_v49 = vadd.f32 %v5335_v41, %v5334_v38  ;;  %v4315_v50 = vmul.f32 %v5335_v41, %v5335_v41 }
 0x299   : > { %3996 = vst [vmem:[%s6413_s26 + $0xb0] sm:$0xff] %v5336_v44  ;;  %v4316_v51 = vmul.f32 %v5336_v44, %v5336_v44 }
 0x29a   : > { %3997 = vst [vmem:[%s6413_s26 + $0xb8] sm:$0xff] %v5337_v48  ;;  %4450 = vadd.xlane.f32.xlu1 %v4449_v37  ;;  %4133 = vadd.xlane.f32.xlu0 %v4132_v49  ;;  %v4452_v52 = vadd.f32 %v4315_v50, %v4314_v47  ;;  %v4135_v53 = vadd.f32 %v5337_v48, %v5336_v44 }
 0x29b   : > { %v4317_v54 = vmul.f32 %v5337_v48, %v5337_v48  ;;  %v3009_v55 = vpop.f32.mrb[24].mxu1 }
 0x29c   : > { %v3715_v56 = vpop.f32.mrb[24].mxu0  ;;  %v3011_v59 = vpop.f32.mrb[25].mxu1 }
 0x29d   : > { %v4455_v57 = vadd.f32 %v4317_v54, %v4316_v51  ;;  %v5338_v58 = vadd.f32 %v3715_v56, %v3009_v55  ;;  %v3717_v60 = vpop.f32.mrb[25].mxu0  ;;  %v3013_v63 = vpop.f32.mrb[26].mxu1 }
 0x29e   : > { %v5339_v61 = vadd.f32 %v3717_v60, %v3011_v59  ;;  %v3719_v62 = vpop.f32.mrb[26].mxu0  ;;  %4453 = vadd.xlane.f32.xlu0 %v4452_v52  ;;  %4136 = vadd.xlane.f32.xlu1 %v4135_v53  ;;  %v3015_v1 = vpop.f32.mrb[27].mxu1 }
 0x29f   : > { %3998 = vst [vmem:[%s6413_s26 + $0xc0] sm:$0xff] %v5338_v58  ;;  %v5340_v0 = vadd.f32 %v3719_v62, %v3013_v63  ;;  %v3721_v2 = vpop.f32.mrb[27].mxu0  ;;  %v4318_v3 = vmul.f32 %v5338_v58, %v5338_v58 }
 0x2a0   : > { %3999 = vst [vmem:[%s6413_s26 + $0xc8] sm:$0xff] %v5339_v61  ;;  %v5341_v4 = vadd.f32 %v3721_v2, %v3015_v1  ;;  %v4138_v5 = vadd.f32 %v5339_v61, %v5338_v58  ;;  %v4319_v6 = vmul.f32 %v5339_v61, %v5339_v61 }
 0x2a1   : > { %4000 = vst [vmem:[%s6413_s26 + $0xd0] sm:$0xff] %v5340_v0  ;;  %v4320_v7 = vmul.f32 %v5340_v0, %v5340_v0 }
 0x2a2   : > { %4001 = vst [vmem:[%s6413_s26 + $0xd8] sm:$0xff] %v5341_v4  ;;  %4456 = vadd.xlane.f32.xlu1 %v4455_v57  ;;  %4139 = vadd.xlane.f32.xlu0 %v4138_v5  ;;  %v4458_v8 = vadd.f32 %v4319_v6, %v4318_v3  ;;  %v4141_v9 = vadd.f32 %v5341_v4, %v5340_v0 }
 0x2a3   : > { %v4321_v10 = vmul.f32 %v5341_v4, %v5341_v4  ;;  %v3019_v11 = vpop.f32.mrb[28].mxu1 }
 0x2a4   : > { %v3725_v12 = vpop.f32.mrb[28].mxu0  ;;  %v3021_v15 = vpop.f32.mrb[29].mxu1 }
 0x2a5   : > { %v4461_v13 = vadd.f32 %v4321_v10, %v4320_v7  ;;  %v5342_v14 = vadd.f32 %v3725_v12, %v3019_v11  ;;  %v3727_v16 = vpop.f32.mrb[29].mxu0  ;;  %v3023_v19 = vpop.f32.mrb[30].mxu1 }
 0x2a6   : > { %v5343_v17 = vadd.f32 %v3727_v16, %v3021_v15  ;;  %v3729_v18 = vpop.f32.mrb[30].mxu0  ;;  %4459 = vadd.xlane.f32.xlu0 %v4458_v8  ;;  %4142 = vadd.xlane.f32.xlu1 %v4141_v9  ;;  %v3025_v21 = vpop.f32.mrb[31].mxu1 }
 0x2a7   : > { %4002 = vst [vmem:[%s6413_s26 + $0xe0] sm:$0xff] %v5342_v14  ;;  %v5344_v20 = vadd.f32 %v3729_v18, %v3023_v19  ;;  %v3731_v22 = vpop.f32.mrb[31].mxu0  ;;  %v4322_v23 = vmul.f32 %v5342_v14, %v5342_v14 }
 0x2a8   : > { %4003 = vst [vmem:[%s6413_s26 + $0xe8] sm:$0xff] %v5343_v17  ;;  %v5345_v24 = vadd.f32 %v3731_v22, %v3025_v21  ;;  %v4144_v25 = vadd.f32 %v5343_v17, %v5342_v14  ;;  %v4323_v26 = vmul.f32 %v5343_v17, %v5343_v17 }
 0x2a9   : > { %4004 = vst [vmem:[%s6413_s26 + $0xf0] sm:$0xff] %v5344_v20  ;;  %v4324_v27 = vmul.f32 %v5344_v20, %v5344_v20 }
 0x2aa   : > { %4005 = vst [vmem:[%s6413_s26 + $0xf8] sm:$0xff] %v5345_v24  ;;  %4462 = vadd.xlane.f32.xlu1 %v4461_v13  ;;  %4145 = vadd.xlane.f32.xlu0 %v4144_v25  ;;  %v4464_v28 = vadd.f32 %v4323_v26, %v4322_v23  ;;  %v4147_v29 = vadd.f32 %v5345_v24, %v5344_v20 }
 0x2ab   : > { %v4325_v30 = vmul.f32 %v5345_v24, %v5345_v24  ;;  %v3029_v31 = vpop.f32.mrb[32].mxu1 }
 0x2ac   : > { %v3735_v32 = vpop.f32.mrb[32].mxu0  ;;  %v3031_v35 = vpop.f32.mrb[33].mxu1 }
 0x2ad   : > { %v4467_v33 = vadd.f32 %v4325_v30, %v4324_v27  ;;  %v5346_v34 = vadd.f32 %v3735_v32, %v3029_v31  ;;  %v3737_v36 = vpop.f32.mrb[33].mxu0  ;;  %v3033_v39 = vpop.f32.mrb[34].mxu1 }
 0x2ae   : > { %v5347_v37 = vadd.f32 %v3737_v36, %v3031_v35  ;;  %v3739_v38 = vpop.f32.mrb[34].mxu0  ;;  %4465 = vadd.xlane.f32.xlu0 %v4464_v28  ;;  %4148 = vadd.xlane.f32.xlu1 %v4147_v29  ;;  %v3035_v41 = vpop.f32.mrb[35].mxu1 }
 0x2af   : > { %4006 = vst [vmem:[%s6413_s26 + $0x100] sm:$0xff] %v5346_v34  ;;  %v5348_v40 = vadd.f32 %v3739_v38, %v3033_v39  ;;  %v3741_v42 = vpop.f32.mrb[35].mxu0  ;;  %v4326_v43 = vmul.f32 %v5346_v34, %v5346_v34 }
 0x2b0   : > { %4007 = vst [vmem:[%s6413_s26 + $0x108] sm:$0xff] %v5347_v37  ;;  %v5349_v44 = vadd.f32 %v3741_v42, %v3035_v41  ;;  %v4150_v45 = vadd.f32 %v5347_v37, %v5346_v34  ;;  %v4327_v46 = vmul.f32 %v5347_v37, %v5347_v37 }
 0x2b1   : > { %4008 = vst [vmem:[%s6413_s26 + $0x110] sm:$0xff] %v5348_v40  ;;  %v4328_v47 = vmul.f32 %v5348_v40, %v5348_v40 }
 0x2b2   : > { %4009 = vst [vmem:[%s6413_s26 + $0x118] sm:$0xff] %v5349_v44  ;;  %4468 = vadd.xlane.f32.xlu1 %v4467_v33  ;;  %4151 = vadd.xlane.f32.xlu0 %v4150_v45  ;;  %v4470_v48 = vadd.f32 %v4327_v46, %v4326_v43  ;;  %v4153_v49 = vadd.f32 %v5349_v44, %v5348_v40 }
 0x2b3   : > { %v4329_v50 = vmul.f32 %v5349_v44, %v5349_v44  ;;  %v3039_v51 = vpop.f32.mrb[36].mxu1 }
 0x2b4   : > { %v3745_v52 = vpop.f32.mrb[36].mxu0  ;;  %v3041_v55 = vpop.f32.mrb[37].mxu1 }
 0x2b5   : > { %v4473_v53 = vadd.f32 %v4329_v50, %v4328_v47  ;;  %v5350_v54 = vadd.f32 %v3745_v52, %v3039_v51  ;;  %v3747_v56 = vpop.f32.mrb[37].mxu0  ;;  %v3043_v59 = vpop.f32.mrb[38].mxu1 }
 0x2b6   : > { %v5351_v57 = vadd.f32 %v3747_v56, %v3041_v55  ;;  %v3749_v58 = vpop.f32.mrb[38].mxu0  ;;  %4471 = vadd.xlane.f32.xlu0 %v4470_v48  ;;  %4154 = vadd.xlane.f32.xlu1 %v4153_v49  ;;  %v3045_v61 = vpop.f32.mrb[39].mxu1 }
 0x2b7   : > { %4010 = vst [vmem:[%s6413_s26 + $0x120] sm:$0xff] %v5350_v54  ;;  %v5352_v60 = vadd.f32 %v3749_v58, %v3043_v59  ;;  %v3751_v62 = vpop.f32.mrb[39].mxu0  ;;  %v4330_v63 = vmul.f32 %v5350_v54, %v5350_v54 }
 0x2b8   : > { %4011 = vst [vmem:[%s6413_s26 + $0x128] sm:$0xff] %v5351_v57  ;;  %v5353_v0 = vadd.f32 %v3751_v62, %v3045_v61  ;;  %v4156_v1 = vadd.f32 %v5351_v57, %v5350_v54  ;;  %v4331_v2 = vmul.f32 %v5351_v57, %v5351_v57 }
 0x2b9   : > { %4012 = vst [vmem:[%s6413_s26 + $0x130] sm:$0xff] %v5352_v60  ;;  %v4332_v3 = vmul.f32 %v5352_v60, %v5352_v60 }
 0x2ba   : > { %4013 = vst [vmem:[%s6413_s26 + $0x138] sm:$0xff] %v5353_v0  ;;  %4474 = vadd.xlane.f32.xlu1 %v4473_v53  ;;  %4157 = vadd.xlane.f32.xlu0 %v4156_v1  ;;  %v4476_v4 = vadd.f32 %v4331_v2, %v4330_v63  ;;  %v4159_v5 = vadd.f32 %v5353_v0, %v5352_v60 }
 0x2bb   : > { %v4333_v6 = vmul.f32 %v5353_v0, %v5353_v0  ;;  %v3049_v7 = vpop.f32.mrb[40].mxu1 }
 0x2bc   : > { %v3755_v8 = vpop.f32.mrb[40].mxu0  ;;  %v3051_v11 = vpop.f32.mrb[41].mxu1 }
 0x2bd   : > { %v4479_v9 = vadd.f32 %v4333_v6, %v4332_v3  ;;  %v5354_v10 = vadd.f32 %v3755_v8, %v3049_v7  ;;  %v3757_v12 = vpop.f32.mrb[41].mxu0  ;;  %v3053_v15 = vpop.f32.mrb[42].mxu1 }
 0x2be   : > { %v5355_v13 = vadd.f32 %v3757_v12, %v3051_v11  ;;  %v3759_v14 = vpop.f32.mrb[42].mxu0  ;;  %4477 = vadd.xlane.f32.xlu0 %v4476_v4  ;;  %4160 = vadd.xlane.f32.xlu1 %v4159_v5  ;;  %v3055_v17 = vpop.f32.mrb[43].mxu1 }
 0x2bf   : > { %4014 = vst [vmem:[%s6413_s26 + $0x140] sm:$0xff] %v5354_v10  ;;  %v5356_v16 = vadd.f32 %v3759_v14, %v3053_v15  ;;  %v3761_v18 = vpop.f32.mrb[43].mxu0  ;;  %v4334_v19 = vmul.f32 %v5354_v10, %v5354_v10 }
 0x2c0   : > { %4015 = vst [vmem:[%s6413_s26 + $0x148] sm:$0xff] %v5355_v13  ;;  %v5357_v20 = vadd.f32 %v3761_v18, %v3055_v17  ;;  %v4162_v21 = vadd.f32 %v5355_v13, %v5354_v10  ;;  %v4335_v22 = vmul.f32 %v5355_v13, %v5355_v13 }
 0x2c1   : > { %4016 = vst [vmem:[%s6413_s26 + $0x150] sm:$0xff] %v5356_v16  ;;  %v4336_v23 = vmul.f32 %v5356_v16, %v5356_v16 }
 0x2c2   : > { %4017 = vst [vmem:[%s6413_s26 + $0x158] sm:$0xff] %v5357_v20  ;;  %4480 = vadd.xlane.f32.xlu1 %v4479_v9  ;;  %4163 = vadd.xlane.f32.xlu0 %v4162_v21  ;;  %v4482_v24 = vadd.f32 %v4335_v22, %v4334_v19  ;;  %v4165_v25 = vadd.f32 %v5357_v20, %v5356_v16 }
 0x2c3   : > { %v4337_v26 = vmul.f32 %v5357_v20, %v5357_v20  ;;  %v3059_v27 = vpop.f32.mrb[44].mxu1 }
 0x2c4   : > { %v3765_v28 = vpop.f32.mrb[44].mxu0  ;;  %v3061_v31 = vpop.f32.mrb[45].mxu1 }
 0x2c5   : > { %v4485_v29 = vadd.f32 %v4337_v26, %v4336_v23  ;;  %v5358_v30 = vadd.f32 %v3765_v28, %v3059_v27  ;;  %v3767_v32 = vpop.f32.mrb[45].mxu0  ;;  %v3063_v35 = vpop.f32.mrb[46].mxu1 }
 0x2c6   : > { %v5359_v33 = vadd.f32 %v3767_v32, %v3061_v31  ;;  %v3769_v34 = vpop.f32.mrb[46].mxu0  ;;  %4483 = vadd.xlane.f32.xlu0 %v4482_v24  ;;  %4166 = vadd.xlane.f32.xlu1 %v4165_v25  ;;  %v3065_v37 = vpop.f32.mrb[47].mxu1 }
 0x2c7   : > { %4018 = vst [vmem:[%s6413_s26 + $0x160] sm:$0xff] %v5358_v30  ;;  %v5360_v36 = vadd.f32 %v3769_v34, %v3063_v35  ;;  %v3771_v38 = vpop.f32.mrb[47].mxu0  ;;  %v4338_v39 = vmul.f32 %v5358_v30, %v5358_v30 }
 0x2c8   : > { %4019 = vst [vmem:[%s6413_s26 + $0x168] sm:$0xff] %v5359_v33  ;;  %v5361_v40 = vadd.f32 %v3771_v38, %v3065_v37  ;;  %v4168_v41 = vadd.f32 %v5359_v33, %v5358_v30  ;;  %v4339_v42 = vmul.f32 %v5359_v33, %v5359_v33 }
 0x2c9   : > { %4020 = vst [vmem:[%s6413_s26 + $0x170] sm:$0xff] %v5360_v36  ;;  %v4340_v43 = vmul.f32 %v5360_v36, %v5360_v36 }
 0x2ca   : > { %4021 = vst [vmem:[%s6413_s26 + $0x178] sm:$0xff] %v5361_v40  ;;  %4486 = vadd.xlane.f32.xlu1 %v4485_v29  ;;  %4169 = vadd.xlane.f32.xlu0 %v4168_v41  ;;  %v4488_v44 = vadd.f32 %v4339_v42, %v4338_v39  ;;  %v4171_v45 = vadd.f32 %v5361_v40, %v5360_v36 }
 0x2cb   : > { %v4341_v46 = vmul.f32 %v5361_v40, %v5361_v40  ;;  %v3069_v47 = vpop.f32.mrb[48].mxu1 }
 0x2cc   : > { %v3775_v48 = vpop.f32.mrb[48].mxu0  ;;  %v3071_v51 = vpop.f32.mrb[49].mxu1 }
 0x2cd   : > { %v4491_v49 = vadd.f32 %v4341_v46, %v4340_v43  ;;  %v5362_v50 = vadd.f32 %v3775_v48, %v3069_v47  ;;  %v3777_v52 = vpop.f32.mrb[49].mxu0  ;;  %v3073_v55 = vpop.f32.mrb[50].mxu1 }
 0x2ce   : > { %v5363_v53 = vadd.f32 %v3777_v52, %v3071_v51  ;;  %v3779_v54 = vpop.f32.mrb[50].mxu0  ;;  %4489 = vadd.xlane.f32.xlu0 %v4488_v44  ;;  %4172 = vadd.xlane.f32.xlu1 %v4171_v45  ;;  %v3075_v57 = vpop.f32.mrb[51].mxu1 }
 0x2cf   : > { %4022 = vst [vmem:[%s6413_s26 + $0x180] sm:$0xff] %v5362_v50  ;;  %v5364_v56 = vadd.f32 %v3779_v54, %v3073_v55  ;;  %v3781_v58 = vpop.f32.mrb[51].mxu0  ;;  %v4342_v59 = vmul.f32 %v5362_v50, %v5362_v50 }
 0x2d0   : > { %4023 = vst [vmem:[%s6413_s26 + $0x188] sm:$0xff] %v5363_v53  ;;  %v5365_v60 = vadd.f32 %v3781_v58, %v3075_v57  ;;  %v4174_v61 = vadd.f32 %v5363_v53, %v5362_v50  ;;  %v4343_v62 = vmul.f32 %v5363_v53, %v5363_v53 }
 0x2d1   : > { %4024 = vst [vmem:[%s6413_s26 + $0x190] sm:$0xff] %v5364_v56  ;;  %v4344_v63 = vmul.f32 %v5364_v56, %v5364_v56 }
 0x2d2   : > { %4025 = vst [vmem:[%s6413_s26 + $0x198] sm:$0xff] %v5365_v60  ;;  %4492 = vadd.xlane.f32.xlu1 %v4491_v49  ;;  %4175 = vadd.xlane.f32.xlu0 %v4174_v61  ;;  %v4494_v0 = vadd.f32 %v4343_v62, %v4342_v59  ;;  %v4177_v1 = vadd.f32 %v5365_v60, %v5364_v56 }
 0x2d3   : > { %v4345_v2 = vmul.f32 %v5365_v60, %v5365_v60  ;;  %v3079_v3 = vpop.f32.mrb[52].mxu1 }
 0x2d4   : > { %v3785_v4 = vpop.f32.mrb[52].mxu0  ;;  %v3081_v7 = vpop.f32.mrb[53].mxu1 }
 0x2d5   : > { %v4497_v5 = vadd.f32 %v4345_v2, %v4344_v63  ;;  %v5366_v6 = vadd.f32 %v3785_v4, %v3079_v3  ;;  %v3787_v8 = vpop.f32.mrb[53].mxu0  ;;  %v3083_v11 = vpop.f32.mrb[54].mxu1 }
 0x2d6   : > { %v5367_v9 = vadd.f32 %v3787_v8, %v3081_v7  ;;  %v3789_v10 = vpop.f32.mrb[54].mxu0  ;;  %4495 = vadd.xlane.f32.xlu0 %v4494_v0  ;;  %4178 = vadd.xlane.f32.xlu1 %v4177_v1  ;;  %v3085_v13 = vpop.f32.mrb[55].mxu1 }
 0x2d7   : > { %4026 = vst [vmem:[%s6413_s26 + $0x1a0] sm:$0xff] %v5366_v6  ;;  %v5368_v12 = vadd.f32 %v3789_v10, %v3083_v11  ;;  %v3791_v14 = vpop.f32.mrb[55].mxu0  ;;  %v4346_v15 = vmul.f32 %v5366_v6, %v5366_v6 }
 0x2d8   : > { %4027 = vst [vmem:[%s6413_s26 + $0x1a8] sm:$0xff] %v5367_v9  ;;  %v5369_v16 = vadd.f32 %v3791_v14, %v3085_v13  ;;  %v4180_v17 = vadd.f32 %v5367_v9, %v5366_v6  ;;  %v4347_v18 = vmul.f32 %v5367_v9, %v5367_v9 }
 0x2d9   : > { %4028 = vst [vmem:[%s6413_s26 + $0x1b0] sm:$0xff] %v5368_v12  ;;  %v4348_v19 = vmul.f32 %v5368_v12, %v5368_v12 }
 0x2da   : > { %4029 = vst [vmem:[%s6413_s26 + $0x1b8] sm:$0xff] %v5369_v16  ;;  %4498 = vadd.xlane.f32.xlu1 %v4497_v5  ;;  %4181 = vadd.xlane.f32.xlu0 %v4180_v17  ;;  %v4500_v20 = vadd.f32 %v4347_v18, %v4346_v15  ;;  %v4183_v21 = vadd.f32 %v5369_v16, %v5368_v12 }
 0x2db   : > { %v4349_v22 = vmul.f32 %v5369_v16, %v5369_v16  ;;  %v3089_v23 = vpop.f32.mrb[56].mxu1 }
 0x2dc   : > { %v3795_v24 = vpop.f32.mrb[56].mxu0  ;;  %v3091_v27 = vpop.f32.mrb[57].mxu1 }
 0x2dd   : > { %v4503_v25 = vadd.f32 %v4349_v22, %v4348_v19  ;;  %v5370_v26 = vadd.f32 %v3795_v24, %v3089_v23  ;;  %v3797_v28 = vpop.f32.mrb[57].mxu0  ;;  %v3093_v31 = vpop.f32.mrb[58].mxu1 }
 0x2de   : > { %v5371_v29 = vadd.f32 %v3797_v28, %v3091_v27  ;;  %v3799_v30 = vpop.f32.mrb[58].mxu0  ;;  %4501 = vadd.xlane.f32.xlu0 %v4500_v20  ;;  %4184 = vadd.xlane.f32.xlu1 %v4183_v21  ;;  %v3095_v33 = vpop.f32.mrb[59].mxu1 }
 0x2df   : > { %4030 = vst [vmem:[%s6413_s26 + $0x1c0] sm:$0xff] %v5370_v26  ;;  %v5372_v32 = vadd.f32 %v3799_v30, %v3093_v31  ;;  %v3801_v34 = vpop.f32.mrb[59].mxu0  ;;  %v4350_v35 = vmul.f32 %v5370_v26, %v5370_v26 }
 0x2e0   : > { %4031 = vst [vmem:[%s6413_s26 + $0x1c8] sm:$0xff] %v5371_v29  ;;  %v5373_v36 = vadd.f32 %v3801_v34, %v3095_v33  ;;  %v4186_v37 = vadd.f32 %v5371_v29, %v5370_v26  ;;  %v4351_v38 = vmul.f32 %v5371_v29, %v5371_v29 }
 0x2e1   : > { %4032 = vst [vmem:[%s6413_s26 + $0x1d0] sm:$0xff] %v5372_v32  ;;  %v4352_v39 = vmul.f32 %v5372_v32, %v5372_v32 }
 0x2e2   : > { %4033 = vst [vmem:[%s6413_s26 + $0x1d8] sm:$0xff] %v5373_v36  ;;  %4504 = vadd.xlane.f32.xlu1 %v4503_v25  ;;  %4187 = vadd.xlane.f32.xlu0 %v4186_v37  ;;  %v4506_v40 = vadd.f32 %v4351_v38, %v4350_v35  ;;  %v4189_v41 = vadd.f32 %v5373_v36, %v5372_v32 }
 0x2e3   : > { %v4353_v42 = vmul.f32 %v5373_v36, %v5373_v36  ;;  %v3099_v43 = vpop.f32.mrb[60].mxu1 }
 0x2e4   : > { %v3805_v44 = vpop.f32.mrb[60].mxu0  ;;  %v3101_v47 = vpop.f32.mrb[61].mxu1 }
 0x2e5   : > { %v4509_v45 = vadd.f32 %v4353_v42, %v4352_v39  ;;  %v5374_v46 = vadd.f32 %v3805_v44, %v3099_v43  ;;  %v3807_v48 = vpop.f32.mrb[61].mxu0  ;;  %v3103_v51 = vpop.f32.mrb[62].mxu1 }
 0x2e6   : > { %v5375_v49 = vadd.f32 %v3807_v48, %v3101_v47  ;;  %v3809_v50 = vpop.f32.mrb[62].mxu0  ;;  %4507 = vadd.xlane.f32.xlu0 %v4506_v40  ;;  %4190 = vadd.xlane.f32.xlu1 %v4189_v41  ;;  %v3105_v53 = vpop.f32.mrb[63].mxu1 }
 0x2e7   : > { %4034 = vst [vmem:[%s6413_s26 + $0x1e0] sm:$0xff] %v5374_v46  ;;  %v5376_v52 = vadd.f32 %v3809_v50, %v3103_v51  ;;  %v3811_v54 = vpop.f32.mrb[63].mxu0  ;;  %v4354_v55 = vmul.f32 %v5374_v46, %v5374_v46 }
 0x2e8   : > { %4035 = vst [vmem:[%s6413_s26 + $0x1e8] sm:$0xff] %v5375_v49  ;;  %v5377_v56 = vadd.f32 %v3811_v54, %v3105_v53  ;;  %v4192_v57 = vadd.f32 %v5375_v49, %v5374_v46  ;;  %v4355_v58 = vmul.f32 %v5375_v49, %v5375_v49 }
 0x2e9   : > { %4036 = vst [vmem:[%s6413_s26 + $0x1f0] sm:$0xff] %v5376_v52  ;;  %v4356_v59 = vmul.f32 %v5376_v52, %v5376_v52 }
 0x2ea   : > { %4037 = vst [vmem:[%s6413_s26 + $0x1f8] sm:$0xff] %v5377_v56  ;;  %4510 = vadd.xlane.f32.xlu1 %v4509_v45  ;;  %4193 = vadd.xlane.f32.xlu0 %v4192_v57  ;;  %v4512_v60 = vadd.f32 %v4355_v58, %v4354_v55  ;;  %v4195_v61 = vadd.f32 %v5377_v56, %v5376_v52 }
 0x2eb   : > { %v4357_v62 = vmul.f32 %v5377_v56, %v5377_v56  ;;  %v3109_v63 = vpop.f32.mrb[64].mxu1 }
 0x2ec   : > { %v3815_v0 = vpop.f32.mrb[64].mxu0  ;;  %v3111_v3 = vpop.f32.mrb[65].mxu1 }
 0x2ed   : > { %v4515_v1 = vadd.f32 %v4357_v62, %v4356_v59  ;;  %v5378_v2 = vadd.f32 %v3815_v0, %v3109_v63  ;;  %v3817_v4 = vpop.f32.mrb[65].mxu0  ;;  %v3113_v7 = vpop.f32.mrb[66].mxu1 }
 0x2ee   : > { %v5379_v5 = vadd.f32 %v3817_v4, %v3111_v3  ;;  %v3819_v6 = vpop.f32.mrb[66].mxu0  ;;  %4513 = vadd.xlane.f32.xlu0 %v4512_v60  ;;  %4196 = vadd.xlane.f32.xlu1 %v4195_v61  ;;  %v3115_v9 = vpop.f32.mrb[67].mxu1 }
 0x2ef   : > { %4038 = vst [vmem:[%s6413_s26 + $0x200] sm:$0xff] %v5378_v2  ;;  %v5380_v8 = vadd.f32 %v3819_v6, %v3113_v7  ;;  %v3821_v10 = vpop.f32.mrb[67].mxu0  ;;  %v4358_v11 = vmul.f32 %v5378_v2, %v5378_v2 }
 0x2f0   : > { %4039 = vst [vmem:[%s6413_s26 + $0x208] sm:$0xff] %v5379_v5  ;;  %v5381_v12 = vadd.f32 %v3821_v10, %v3115_v9  ;;  %v4198_v13 = vadd.f32 %v5379_v5, %v5378_v2  ;;  %v4359_v14 = vmul.f32 %v5379_v5, %v5379_v5 }
 0x2f1   : > { %4040 = vst [vmem:[%s6413_s26 + $0x210] sm:$0xff] %v5380_v8  ;;  %v4360_v15 = vmul.f32 %v5380_v8, %v5380_v8 }
 0x2f2   : > { %4041 = vst [vmem:[%s6413_s26 + $0x218] sm:$0xff] %v5381_v12  ;;  %4516 = vadd.xlane.f32.xlu1 %v4515_v1  ;;  %4199 = vadd.xlane.f32.xlu0 %v4198_v13  ;;  %v4518_v16 = vadd.f32 %v4359_v14, %v4358_v11  ;;  %v4201_v17 = vadd.f32 %v5381_v12, %v5380_v8 }
 0x2f3   : > { %v4361_v18 = vmul.f32 %v5381_v12, %v5381_v12  ;;  %v3119_v19 = vpop.f32.mrb[68].mxu1 }
 0x2f4   : > { %v3825_v20 = vpop.f32.mrb[68].mxu0  ;;  %v3121_v23 = vpop.f32.mrb[69].mxu1 }
 0x2f5   : > { %v4521_v21 = vadd.f32 %v4361_v18, %v4360_v15  ;;  %v5382_v22 = vadd.f32 %v3825_v20, %v3119_v19  ;;  %v3827_v24 = vpop.f32.mrb[69].mxu0  ;;  %v3123_v27 = vpop.f32.mrb[70].mxu1 }
 0x2f6   : > { %v5383_v25 = vadd.f32 %v3827_v24, %v3121_v23  ;;  %v3829_v26 = vpop.f32.mrb[70].mxu0  ;;  %4519 = vadd.xlane.f32.xlu0 %v4518_v16  ;;  %4202 = vadd.xlane.f32.xlu1 %v4201_v17  ;;  %v3125_v29 = vpop.f32.mrb[71].mxu1 }
 0x2f7   : > { %4042 = vst [vmem:[%s6413_s26 + $0x220] sm:$0xff] %v5382_v22  ;;  %v5384_v28 = vadd.f32 %v3829_v26, %v3123_v27  ;;  %v3831_v30 = vpop.f32.mrb[71].mxu0  ;;  %v4362_v31 = vmul.f32 %v5382_v22, %v5382_v22 }
 0x2f8   : > { %4043 = vst [vmem:[%s6413_s26 + $0x228] sm:$0xff] %v5383_v25  ;;  %v5385_v32 = vadd.f32 %v3831_v30, %v3125_v29  ;;  %v4204_v33 = vadd.f32 %v5383_v25, %v5382_v22  ;;  %v4363_v34 = vmul.f32 %v5383_v25, %v5383_v25 }
 0x2f9   : > { %4044 = vst [vmem:[%s6413_s26 + $0x230] sm:$0xff] %v5384_v28  ;;  %v4364_v35 = vmul.f32 %v5384_v28, %v5384_v28 }
 0x2fa   : > { %4045 = vst [vmem:[%s6413_s26 + $0x238] sm:$0xff] %v5385_v32  ;;  %4522 = vadd.xlane.f32.xlu1 %v4521_v21  ;;  %4205 = vadd.xlane.f32.xlu0 %v4204_v33  ;;  %v4524_v36 = vadd.f32 %v4363_v34, %v4362_v31  ;;  %v4207_v37 = vadd.f32 %v5385_v32, %v5384_v28 }
 0x2fb   : > { %v4365_v38 = vmul.f32 %v5385_v32, %v5385_v32  ;;  %v3129_v39 = vpop.f32.mrb[72].mxu1 }
 0x2fc   : > { %v3835_v40 = vpop.f32.mrb[72].mxu0  ;;  %v3131_v43 = vpop.f32.mrb[73].mxu1 }
 0x2fd   : > { %v4527_v41 = vadd.f32 %v4365_v38, %v4364_v35  ;;  %v5386_v42 = vadd.f32 %v3835_v40, %v3129_v39  ;;  %v3837_v44 = vpop.f32.mrb[73].mxu0  ;;  %v3133_v47 = vpop.f32.mrb[74].mxu1 }
 0x2fe   : > { %v5387_v45 = vadd.f32 %v3837_v44, %v3131_v43  ;;  %v3839_v46 = vpop.f32.mrb[74].mxu0  ;;  %4525 = vadd.xlane.f32.xlu0 %v4524_v36  ;;  %4208 = vadd.xlane.f32.xlu1 %v4207_v37  ;;  %v3135_v52 = vpop.f32.mrb[75].mxu1 }
 0x2ff   : > { %4046 = vst [vmem:[%s6413_s26 + $0x240] sm:$0xff] %v5386_v42  ;;  %v5388_v48 = vadd.f32 %v3839_v46, %v3133_v47  ;;  %v3841_v49 = vpop.f32.mrb[75].mxu0  ;;  %v4104_v50 = vpop.xlane.xlu0 %4103  ;;  %v4366_v51 = vmul.f32 %v5386_v42, %v5386_v42 }
 0x300   : > { %4047 = vst [vmem:[%s6413_s26 + $0x248] sm:$0xff] %v5387_v45  ;;  %4615 = vst.msk [vmem:[%s6535_s6] sm:$0xff] %vm4614_vm0, %v4104_v50  ;;  %v4210_v53 = vadd.f32 %v5387_v45, %v5386_v42  ;;  %v4367_v54 = vmul.f32 %v5387_v45, %v5387_v45  ;;  %v5389_v55 = vadd.f32 %v3841_v49, %v3135_v52 }
 0x301   : > { %4048 = vst [vmem:[%s6413_s26 + $0x250] sm:$0xff] %v5388_v48  ;;  %v4368_v56 = vmul.f32 %v5388_v48, %v5388_v48 }
 0x302   : > { %4528 = vadd.xlane.f32.xlu1 %v4527_v41  ;;  %4211 = vadd.xlane.f32.xlu0 %v4210_v53  ;;  %v4530_v57 = vadd.f32 %v4367_v54, %v4366_v51  ;;  %4049 = vst [vmem:[%s6413_s26 + $0x258] sm:$0xff] %v5389_v55  ;;  %v4213_v60 = vadd.f32 %v5389_v55, %v5388_v48 }
 0x303   : > { %v4427_v58 = vpop.xlane.xlu1 %4426  ;;  %v4107_v59 = vpop.xlane.xlu0 %4106  ;;  %v4369_v61 = vmul.f32 %v5389_v55, %v5389_v55 }
 0x304   : > { %4680 = vst.msk [vmem:[%s6545_s12 + $0x8] sm:$0xff] %vm4614_vm0, %v4427_v58  ;;  %4616 = vst.msk [vmem:[%s6535_s6 + $0x8] sm:$0xff] %vm4614_vm0, %v4107_v59  ;;  %v3139_v62 = vpop.f32.mrb[76].mxu1  ;;  %v3845_v63 = vpop.f32.mrb[76].mxu0 }
 0x305   : > { %v5390_v0 = vadd.f32 %v3845_v63, %v3139_v62  ;;  %v3141_v1 = vpop.f32.mrb[77].mxu1  ;;  %v3847_v2 = vpop.f32.mrb[77].mxu0  ;;  %v4533_v3 = vadd.f32 %v4369_v61, %v4368_v56 }
 0x306   : > { %v5391_v4 = vadd.f32 %v3847_v2, %v3141_v1  ;;  %v3849_v5 = vpop.f32.mrb[78].mxu0  ;;  %4531 = vadd.xlane.f32.xlu0 %v4530_v57  ;;  %4214 = vadd.xlane.f32.xlu1 %v4213_v60  ;;  %v3143_v6 = vpop.f32.mrb[78].mxu1 }
 0x307   : > { %4050 = vst [vmem:[%s6413_s26 + $0x260] sm:$0xff] %v5390_v0  ;;  %v5392_v7 = vadd.f32 %v3849_v5, %v3143_v6  ;;  %v3851_v8 = vpop.f32.mrb[79].mxu0  ;;  %v4424_v9 = vpop.xlane.xlu0 %4423  ;;  %v4370_v10 = vmul.f32 %v5390_v0, %v5390_v0 }
 0x308   : > { %4051 = vst [vmem:[%s6413_s26 + $0x268] sm:$0xff] %v5391_v4  ;;  %4679 = vst.msk [vmem:[%s6545_s12] sm:$0xff] %vm4614_vm0, %v4424_v9  ;;  %v4110_v11 = vpop.xlane.xlu1 %4109  ;;  %v3145_v12 = vpop.f32.mrb[79].mxu1  ;;  %v4216_v13 = vadd.f32 %v5391_v4, %v5390_v0  ;;  %v4371_v14 = vmul.f32 %v5391_v4, %v5391_v4 }
 0x309   : > { %4052 = vst [vmem:[%s6413_s26 + $0x270] sm:$0xff] %v5392_v7  ;;  %4617 = vst.msk [vmem:[%s6535_s6 + $0x10] sm:$0xff] %vm4614_vm0, %v4110_v11  ;;  %v5393_v15 = vadd.f32 %v3851_v8, %v3145_v12  ;;  %v4372_v16 = vmul.f32 %v5392_v7, %v5392_v7 }
 0x30a   : > { %4534 = vadd.xlane.f32.xlu1 %v4533_v3  ;;  %4217 = vadd.xlane.f32.xlu0 %v4216_v13  ;;  %v4536_v17 = vadd.f32 %v4371_v14, %v4370_v10 }
 0x30b   : > { %4053 = vst [vmem:[%s6413_s26 + $0x278] sm:$0xff] %v5393_v15  ;;  %v4430_v18 = vpop.xlane.xlu0 %4429  ;;  %v4219_v19 = vadd.f32 %v5393_v15, %v5392_v7  ;;  %v4373_v20 = vmul.f32 %v5393_v15, %v5393_v15  ;;  %v3149_v22 = vpop.f32.mrb[80].mxu1 }
 0x30c   : > { %4681 = vst.msk [vmem:[%s6545_s12 + $0x10] sm:$0xff] %vm4614_vm0, %v4430_v18  ;;  %v4113_v21 = vpop.xlane.xlu1 %4112  ;;  %v3855_v23 = vpop.f32.mrb[80].mxu0 }
 0x30d   : > { %4618 = vst.msk [vmem:[%s6535_s6 + $0x18] sm:$0xff] %vm4614_vm0, %v4113_v21  ;;  %v3151_v24 = vpop.f32.mrb[81].mxu1  ;;  %v4539_v25 = vadd.f32 %v4373_v20, %v4372_v16  ;;  %v5394_v26 = vadd.f32 %v3855_v23, %v3149_v22  ;;  %v3857_v27 = vpop.f32.mrb[81].mxu0 }
 0x30e   : > { %4537 = vadd.xlane.f32.xlu0 %v4536_v17  ;;  %4220 = vadd.xlane.f32.xlu1 %v4219_v19  ;;  %v3153_v28 = vpop.f32.mrb[82].mxu1  ;;  %v5395_v29 = vadd.f32 %v3857_v27, %v3151_v24  ;;  %v3859_v30 = vpop.f32.mrb[82].mxu0 }
 0x30f   : > { %v4116_v31 = vpop.xlane.xlu0 %4115  ;;  %4054 = vst [vmem:[%s6413_s26 + $0x280] sm:$0xff] %v5394_v26  ;;  %v5396_v32 = vadd.f32 %v3859_v30, %v3153_v28  ;;  %v3861_v33 = vpop.f32.mrb[83].mxu0  ;;  %v4374_v35 = vmul.f32 %v5394_v26, %v5394_v26 }
 0x310   : > { %v4433_v34 = vpop.xlane.xlu1 %4432  ;;  %4619 = vst.msk [vmem:[%s6535_s6 + $0x20] sm:$0xff] %vm4614_vm0, %v4116_v31  ;;  %4055 = vst [vmem:[%s6413_s26 + $0x288] sm:$0xff] %v5395_v29  ;;  %v3155_v36 = vpop.f32.mrb[83].mxu1  ;;  %v4222_v37 = vadd.f32 %v5395_v29, %v5394_v26  ;;  %v4375_v38 = vmul.f32 %v5395_v29, %v5395_v29 }
 0x311   : > { %4682 = vst.msk [vmem:[%s6545_s12 + $0x18] sm:$0xff] %vm4614_vm0, %v4433_v34  ;;  %4056 = vst [vmem:[%s6413_s26 + $0x290] sm:$0xff] %v5396_v32  ;;  %v5397_v39 = vadd.f32 %v3861_v33, %v3155_v36  ;;  %v4376_v40 = vmul.f32 %v5396_v32, %v5396_v32 }
 0x312   : > { %4540 = vadd.xlane.f32.xlu1 %v4539_v25  ;;  %4223 = vadd.xlane.f32.xlu0 %v4222_v37  ;;  %v4542_v42 = vadd.f32 %v4375_v38, %v4374_v35 }
 0x313   : > { %v4436_v41 = vpop.xlane.xlu0 %4435  ;;  %4057 = vst [vmem:[%s6413_s26 + $0x298] sm:$0xff] %v5397_v39  ;;  %v3159_v44 = vpop.f32.mrb[84].mxu1  ;;  %v4225_v45 = vadd.f32 %v5397_v39, %v5396_v32  ;;  %v4377_v46 = vmul.f32 %v5397_v39, %v5397_v39 }
 0x314   : > { %4683 = vst.msk [vmem:[%s6545_s12 + $0x20] sm:$0xff] %vm4614_vm0, %v4436_v41  ;;  %v4119_v43 = vpop.xlane.xlu1 %4118  ;;  %v3865_v47 = vpop.f32.mrb[84].mxu0 }
 0x315   : > { %4620 = vst.msk [vmem:[%s6535_s6 + $0x28] sm:$0xff] %vm4614_vm0, %v4119_v43  ;;  %v3161_v48 = vpop.f32.mrb[85].mxu1  ;;  %v5398_v49 = vadd.f32 %v3865_v47, %v3159_v44  ;;  %v3867_v50 = vpop.f32.mrb[85].mxu0  ;;  %v4545_v52 = vadd.f32 %v4377_v46, %v4376_v40 }
 0x316   : > { %4226 = vadd.xlane.f32.xlu1 %v4225_v45  ;;  %v3163_v51 = vpop.f32.mrb[86].mxu1  ;;  %v5399_v53 = vadd.f32 %v3867_v50, %v3161_v48  ;;  %v3869_v54 = vpop.f32.mrb[86].mxu0  ;;  %4543 = vadd.xlane.f32.xlu0 %v4542_v42 }
 0x317   : > { %v4122_v55 = vpop.xlane.xlu0 %4121  ;;  %4058 = vst [vmem:[%s6413_s26 + $0x2a0] sm:$0xff] %v5398_v49  ;;  %v5400_v56 = vadd.f32 %v3869_v54, %v3163_v51  ;;  %v3871_v57 = vpop.f32.mrb[87].mxu0  ;;  %v4378_v59 = vmul.f32 %v5398_v49, %v5398_v49 }
 0x318   : > { %v4439_v58 = vpop.xlane.xlu1 %4438  ;;  %4621 = vst.msk [vmem:[%s6535_s6 + $0x30] sm:$0xff] %vm4614_vm0, %v4122_v55  ;;  %4059 = vst [vmem:[%s6413_s26 + $0x2a8] sm:$0xff] %v5399_v53  ;;  %v3165_v60 = vpop.f32.mrb[87].mxu1  ;;  %v4228_v61 = vadd.f32 %v5399_v53, %v5398_v49  ;;  %v4379_v62 = vmul.f32 %v5399_v53, %v5399_v53 }
 0x319   : > { %4684 = vst.msk [vmem:[%s6545_s12 + $0x28] sm:$0xff] %vm4614_vm0, %v4439_v58  ;;  %4060 = vst [vmem:[%s6413_s26 + $0x2b0] sm:$0xff] %v5400_v56  ;;  %v5401_v63 = vadd.f32 %v3871_v57, %v3165_v60  ;;  %v4380_v0 = vmul.f32 %v5400_v56, %v5400_v56 }
 0x31a   : > { %4546 = vadd.xlane.f32.xlu1 %v4545_v52  ;;  %4229 = vadd.xlane.f32.xlu0 %v4228_v61  ;;  %v4548_v2 = vadd.f32 %v4379_v62, %v4378_v59 }
 0x31b   : > { %v4442_v1 = vpop.xlane.xlu0 %4441  ;;  %4061 = vst [vmem:[%s6413_s26 + $0x2b8] sm:$0xff] %v5401_v63  ;;  %v3169_v4 = vpop.f32.mrb[88].mxu1  ;;  %v4231_v5 = vadd.f32 %v5401_v63, %v5400_v56  ;;  %v4381_v6 = vmul.f32 %v5401_v63, %v5401_v63 }
 0x31c   : > { %4685 = vst.msk [vmem:[%s6545_s12 + $0x30] sm:$0xff] %vm4614_vm0, %v4442_v1  ;;  %v4125_v3 = vpop.xlane.xlu1 %4124  ;;  %v3875_v7 = vpop.f32.mrb[88].mxu0 }
 0x31d   : > { %4622 = vst.msk [vmem:[%s6535_s6 + $0x38] sm:$0xff] %vm4614_vm0, %v4125_v3  ;;  %v3171_v8 = vpop.f32.mrb[89].mxu1  ;;  %v5402_v9 = vadd.f32 %v3875_v7, %v3169_v4  ;;  %v3877_v10 = vpop.f32.mrb[89].mxu0  ;;  %v4551_v12 = vadd.f32 %v4381_v6, %v4380_v0 }
 0x31e   : > { %4232 = vadd.xlane.f32.xlu1 %v4231_v5  ;;  %v3173_v11 = vpop.f32.mrb[90].mxu1  ;;  %v5403_v13 = vadd.f32 %v3877_v10, %v3171_v8  ;;  %v3879_v14 = vpop.f32.mrb[90].mxu0  ;;  %4549 = vadd.xlane.f32.xlu0 %v4548_v2 }
 0x31f   : > { %v4128_v15 = vpop.xlane.xlu0 %4127  ;;  %4062 = vst [vmem:[%s6413_s26 + $0x2c0] sm:$0xff] %v5402_v9  ;;  %v5404_v16 = vadd.f32 %v3879_v14, %v3173_v11  ;;  %v3881_v17 = vpop.f32.mrb[91].mxu0  ;;  %v4382_v19 = vmul.f32 %v5402_v9, %v5402_v9 }
 0x320   : > { %v4445_v18 = vpop.xlane.xlu1 %4444  ;;  %4623 = vst.msk [vmem:[%s6535_s6 + $0x40] sm:$0xff] %vm4614_vm0, %v4128_v15  ;;  %4063 = vst [vmem:[%s6413_s26 + $0x2c8] sm:$0xff] %v5403_v13  ;;  %v3175_v20 = vpop.f32.mrb[91].mxu1  ;;  %v4234_v21 = vadd.f32 %v5403_v13, %v5402_v9  ;;  %v4383_v22 = vmul.f32 %v5403_v13, %v5403_v13 }
 0x321   : > { %4686 = vst.msk [vmem:[%s6545_s12 + $0x38] sm:$0xff] %vm4614_vm0, %v4445_v18  ;;  %4064 = vst [vmem:[%s6413_s26 + $0x2d0] sm:$0xff] %v5404_v16  ;;  %v5405_v23 = vadd.f32 %v3881_v17, %v3175_v20  ;;  %v4384_v24 = vmul.f32 %v5404_v16, %v5404_v16 }
 0x322   : > { %4552 = vadd.xlane.f32.xlu1 %v4551_v12  ;;  %4235 = vadd.xlane.f32.xlu0 %v4234_v21  ;;  %v4554_v26 = vadd.f32 %v4383_v22, %v4382_v19 }
 0x323   : > { %v4448_v25 = vpop.xlane.xlu0 %4447  ;;  %4065 = vst [vmem:[%s6413_s26 + $0x2d8] sm:$0xff] %v5405_v23  ;;  %v3179_v28 = vpop.f32.mrb[92].mxu1  ;;  %v4237_v29 = vadd.f32 %v5405_v23, %v5404_v16  ;;  %v4385_v30 = vmul.f32 %v5405_v23, %v5405_v23 }
 0x324   : > { %4687 = vst.msk [vmem:[%s6545_s12 + $0x40] sm:$0xff] %vm4614_vm0, %v4448_v25  ;;  %v4131_v27 = vpop.xlane.xlu1 %4130  ;;  %v3885_v31 = vpop.f32.mrb[92].mxu0 }
 0x325   : > { %4624 = vst.msk [vmem:[%s6535_s6 + $0x48] sm:$0xff] %vm4614_vm0, %v4131_v27  ;;  %v3181_v32 = vpop.f32.mrb[93].mxu1  ;;  %v5406_v33 = vadd.f32 %v3885_v31, %v3179_v28  ;;  %v3887_v34 = vpop.f32.mrb[93].mxu0  ;;  %v4557_v36 = vadd.f32 %v4385_v30, %v4384_v24 }
 0x326   : > { %4238 = vadd.xlane.f32.xlu1 %v4237_v29  ;;  %v3183_v35 = vpop.f32.mrb[94].mxu1  ;;  %v5407_v37 = vadd.f32 %v3887_v34, %v3181_v32  ;;  %v3889_v38 = vpop.f32.mrb[94].mxu0  ;;  %4555 = vadd.xlane.f32.xlu0 %v4554_v26 }
 0x327   : > { %v4134_v39 = vpop.xlane.xlu0 %4133  ;;  %4066 = vst [vmem:[%s6413_s26 + $0x2e0] sm:$0xff] %v5406_v33  ;;  %v5408_v40 = vadd.f32 %v3889_v38, %v3183_v35  ;;  %v3891_v41 = vpop.f32.mrb[95].mxu0  ;;  %v4386_v43 = vmul.f32 %v5406_v33, %v5406_v33 }
 0x328   : > { %v4451_v42 = vpop.xlane.xlu1 %4450  ;;  %4625 = vst.msk [vmem:[%s6535_s6 + $0x50] sm:$0xff] %vm4614_vm0, %v4134_v39  ;;  %4067 = vst [vmem:[%s6413_s26 + $0x2e8] sm:$0xff] %v5407_v37  ;;  %v3185_v44 = vpop.f32.mrb[95].mxu1  ;;  %v4240_v45 = vadd.f32 %v5407_v37, %v5406_v33  ;;  %v4387_v46 = vmul.f32 %v5407_v37, %v5407_v37 }
 0x329   : > { %4688 = vst.msk [vmem:[%s6545_s12 + $0x48] sm:$0xff] %vm4614_vm0, %v4451_v42  ;;  %4068 = vst [vmem:[%s6413_s26 + $0x2f0] sm:$0xff] %v5408_v40  ;;  %v5409_v47 = vadd.f32 %v3891_v41, %v3185_v44  ;;  %v4388_v48 = vmul.f32 %v5408_v40, %v5408_v40 }
 0x32a   : > { %4558 = vadd.xlane.f32.xlu1 %v4557_v36  ;;  %4241 = vadd.xlane.f32.xlu0 %v4240_v45  ;;  %v4560_v50 = vadd.f32 %v4387_v46, %v4386_v43 }
 0x32b   : > { %v4454_v49 = vpop.xlane.xlu0 %4453  ;;  %4069 = vst [vmem:[%s6413_s26 + $0x2f8] sm:$0xff] %v5409_v47  ;;  %v3189_v52 = vpop.f32.mrb[96].mxu1  ;;  %v4243_v53 = vadd.f32 %v5409_v47, %v5408_v40  ;;  %v4389_v54 = vmul.f32 %v5409_v47, %v5409_v47 }
 0x32c   : > { %4689 = vst.msk [vmem:[%s6545_s12 + $0x50] sm:$0xff] %vm4614_vm0, %v4454_v49  ;;  %v4137_v51 = vpop.xlane.xlu1 %4136  ;;  %v3895_v55 = vpop.f32.mrb[96].mxu0 }
 0x32d   : > { %4626 = vst.msk [vmem:[%s6535_s6 + $0x58] sm:$0xff] %vm4614_vm0, %v4137_v51  ;;  %v3191_v56 = vpop.f32.mrb[97].mxu1  ;;  %v5410_v57 = vadd.f32 %v3895_v55, %v3189_v52  ;;  %v3897_v58 = vpop.f32.mrb[97].mxu0  ;;  %v4563_v60 = vadd.f32 %v4389_v54, %v4388_v48 }
 0x32e   : > { %4244 = vadd.xlane.f32.xlu1 %v4243_v53  ;;  %v3193_v59 = vpop.f32.mrb[98].mxu1  ;;  %v5411_v61 = vadd.f32 %v3897_v58, %v3191_v56  ;;  %v3899_v62 = vpop.f32.mrb[98].mxu0  ;;  %4561 = vadd.xlane.f32.xlu0 %v4560_v50 }
 0x32f   : > { %v4140_v63 = vpop.xlane.xlu0 %4139  ;;  %4070 = vst [vmem:[%s6413_s26 + $0x300] sm:$0xff] %v5410_v57  ;;  %v4390_v0 = vmul.f32 %v5410_v57, %v5410_v57  ;;  %v5412_v1 = vadd.f32 %v3899_v62, %v3193_v59  ;;  %v3901_v2 = vpop.f32.mrb[99].mxu0 }
 0x330   : > { %v4457_v3 = vpop.xlane.xlu1 %4456  ;;  %4627 = vst.msk [vmem:[%s6535_s6 + $0x60] sm:$0xff] %vm4614_vm0, %v4140_v63  ;;  %4071 = vst [vmem:[%s6413_s26 + $0x308] sm:$0xff] %v5411_v61  ;;  %v4391_v4 = vmul.f32 %v5411_v61, %v5411_v61  ;;  %v3195_v5 = vpop.f32.mrb[99].mxu1  ;;  %v4246_v6 = vadd.f32 %v5411_v61, %v5410_v57 }
 0x331   : > { %4690 = vst.msk [vmem:[%s6545_s12 + $0x58] sm:$0xff] %vm4614_vm0, %v4457_v3  ;;  %4072 = vst [vmem:[%s6413_s26 + $0x310] sm:$0xff] %v5412_v1  ;;  %v4392_v7 = vmul.f32 %v5412_v1, %v5412_v1  ;;  %v5413_v8 = vadd.f32 %v3901_v2, %v3195_v5 }
 0x332   : > { %4564 = vadd.xlane.f32.xlu1 %v4563_v60  ;;  %4247 = vadd.xlane.f32.xlu0 %v4246_v6  ;;  %v4566_v10 = vadd.f32 %v4391_v4, %v4390_v0 }
 0x333   : > { %v4460_v9 = vpop.xlane.xlu0 %4459  ;;  %4073 = vst [vmem:[%s6413_s26 + $0x318] sm:$0xff] %v5413_v8  ;;  %v4393_v11 = vmul.f32 %v5413_v8, %v5413_v8  ;;  %v3199_v13 = vpop.f32.mrb[100].mxu1  ;;  %v4249_v14 = vadd.f32 %v5413_v8, %v5412_v1 }
 0x334   : > { %4691 = vst.msk [vmem:[%s6545_s12 + $0x60] sm:$0xff] %vm4614_vm0, %v4460_v9  ;;  %v4143_v12 = vpop.xlane.xlu1 %4142  ;;  %v3905_v15 = vpop.f32.mrb[100].mxu0 }
 0x335   : > { %4628 = vst.msk [vmem:[%s6535_s6 + $0x68] sm:$0xff] %vm4614_vm0, %v4143_v12  ;;  %v3201_v16 = vpop.f32.mrb[101].mxu1  ;;  %v5414_v17 = vadd.f32 %v3905_v15, %v3199_v13  ;;  %v3907_v18 = vpop.f32.mrb[101].mxu0  ;;  %v4569_v20 = vadd.f32 %v4393_v11, %v4392_v7 }
 0x336   : > { %4250 = vadd.xlane.f32.xlu1 %v4249_v14  ;;  %v3203_v19 = vpop.f32.mrb[102].mxu1  ;;  %v5415_v21 = vadd.f32 %v3907_v18, %v3201_v16  ;;  %v3909_v22 = vpop.f32.mrb[102].mxu0  ;;  %4567 = vadd.xlane.f32.xlu0 %v4566_v10 }
 0x337   : > { %v4146_v23 = vpop.xlane.xlu0 %4145  ;;  %4074 = vst [vmem:[%s6413_s26 + $0x320] sm:$0xff] %v5414_v17  ;;  %v4394_v24 = vmul.f32 %v5414_v17, %v5414_v17  ;;  %v5416_v25 = vadd.f32 %v3909_v22, %v3203_v19  ;;  %v3911_v26 = vpop.f32.mrb[103].mxu0 }
 0x338   : > { %v4463_v27 = vpop.xlane.xlu1 %4462  ;;  %4629 = vst.msk [vmem:[%s6535_s6 + $0x70] sm:$0xff] %vm4614_vm0, %v4146_v23  ;;  %4075 = vst [vmem:[%s6413_s26 + $0x328] sm:$0xff] %v5415_v21  ;;  %v4395_v28 = vmul.f32 %v5415_v21, %v5415_v21  ;;  %v3205_v29 = vpop.f32.mrb[103].mxu1  ;;  %v4252_v30 = vadd.f32 %v5415_v21, %v5414_v17 }
 0x339   : > { %4692 = vst.msk [vmem:[%s6545_s12 + $0x68] sm:$0xff] %vm4614_vm0, %v4463_v27  ;;  %4076 = vst [vmem:[%s6413_s26 + $0x330] sm:$0xff] %v5416_v25  ;;  %v4396_v31 = vmul.f32 %v5416_v25, %v5416_v25  ;;  %v5417_v32 = vadd.f32 %v3911_v26, %v3205_v29 }
 0x33a   : > { %4570 = vadd.xlane.f32.xlu1 %v4569_v20  ;;  %4253 = vadd.xlane.f32.xlu0 %v4252_v30  ;;  %v4572_v34 = vadd.f32 %v4395_v28, %v4394_v24 }
 0x33b   : > { %v4466_v33 = vpop.xlane.xlu0 %4465  ;;  %4077 = vst [vmem:[%s6413_s26 + $0x338] sm:$0xff] %v5417_v32  ;;  %v4397_v35 = vmul.f32 %v5417_v32, %v5417_v32  ;;  %v3209_v37 = vpop.f32.mrb[104].mxu1  ;;  %v4255_v38 = vadd.f32 %v5417_v32, %v5416_v25 }
 0x33c   : > { %4693 = vst.msk [vmem:[%s6545_s12 + $0x70] sm:$0xff] %vm4614_vm0, %v4466_v33  ;;  %v4149_v36 = vpop.xlane.xlu1 %4148  ;;  %v3915_v39 = vpop.f32.mrb[104].mxu0 }
 0x33d   : > { %4630 = vst.msk [vmem:[%s6535_s6 + $0x78] sm:$0xff] %vm4614_vm0, %v4149_v36  ;;  %v3211_v40 = vpop.f32.mrb[105].mxu1  ;;  %v5418_v41 = vadd.f32 %v3915_v39, %v3209_v37  ;;  %v3917_v42 = vpop.f32.mrb[105].mxu0  ;;  %v4575_v44 = vadd.f32 %v4397_v35, %v4396_v31 }
 0x33e   : > { %4256 = vadd.xlane.f32.xlu1 %v4255_v38  ;;  %v3213_v43 = vpop.f32.mrb[106].mxu1  ;;  %v5419_v45 = vadd.f32 %v3917_v42, %v3211_v40  ;;  %v3919_v46 = vpop.f32.mrb[106].mxu0  ;;  %4573 = vadd.xlane.f32.xlu0 %v4572_v34 }
 0x33f   : > { %v4152_v47 = vpop.xlane.xlu0 %4151  ;;  %4078 = vst [vmem:[%s6413_s26 + $0x340] sm:$0xff] %v5418_v41  ;;  %v4398_v48 = vmul.f32 %v5418_v41, %v5418_v41  ;;  %v5420_v49 = vadd.f32 %v3919_v46, %v3213_v43  ;;  %v3921_v50 = vpop.f32.mrb[107].mxu0 }
 0x340   : > { %v4469_v51 = vpop.xlane.xlu1 %4468  ;;  %4631 = vst.msk [vmem:[%s6535_s6 + $0x80] sm:$0xff] %vm4614_vm0, %v4152_v47  ;;  %4079 = vst [vmem:[%s6413_s26 + $0x348] sm:$0xff] %v5419_v45  ;;  %v4399_v52 = vmul.f32 %v5419_v45, %v5419_v45  ;;  %v3215_v53 = vpop.f32.mrb[107].mxu1  ;;  %v4258_v54 = vadd.f32 %v5419_v45, %v5418_v41 }
 0x341   : > { %4694 = vst.msk [vmem:[%s6545_s12 + $0x78] sm:$0xff] %vm4614_vm0, %v4469_v51  ;;  %4080 = vst [vmem:[%s6413_s26 + $0x350] sm:$0xff] %v5420_v49  ;;  %v4400_v55 = vmul.f32 %v5420_v49, %v5420_v49  ;;  %v5421_v56 = vadd.f32 %v3921_v50, %v3215_v53 }
 0x342   : > { %4576 = vadd.xlane.f32.xlu1 %v4575_v44  ;;  %4259 = vadd.xlane.f32.xlu0 %v4258_v54  ;;  %v4578_v58 = vadd.f32 %v4399_v52, %v4398_v48 }
 0x343   : > { %v4472_v57 = vpop.xlane.xlu0 %4471  ;;  %4081 = vst [vmem:[%s6413_s26 + $0x358] sm:$0xff] %v5421_v56  ;;  %v4401_v59 = vmul.f32 %v5421_v56, %v5421_v56  ;;  %v3219_v61 = vpop.f32.mrb[108].mxu1  ;;  %v4261_v62 = vadd.f32 %v5421_v56, %v5420_v49 }
 0x344   : > { %4695 = vst.msk [vmem:[%s6545_s12 + $0x80] sm:$0xff] %vm4614_vm0, %v4472_v57  ;;  %v4155_v60 = vpop.xlane.xlu1 %4154  ;;  %v3925_v63 = vpop.f32.mrb[108].mxu0 }
 0x345   : > { %4632 = vst.msk [vmem:[%s6535_s6 + $0x88] sm:$0xff] %vm4614_vm0, %v4155_v60  ;;  %v3221_v0 = vpop.f32.mrb[109].mxu1  ;;  %v5422_v1 = vadd.f32 %v3925_v63, %v3219_v61  ;;  %v3927_v2 = vpop.f32.mrb[109].mxu0  ;;  %v4581_v4 = vadd.f32 %v4401_v59, %v4400_v55 }
 0x346   : > { %4262 = vadd.xlane.f32.xlu1 %v4261_v62  ;;  %v3223_v3 = vpop.f32.mrb[110].mxu1  ;;  %v5423_v5 = vadd.f32 %v3927_v2, %v3221_v0  ;;  %v3929_v6 = vpop.f32.mrb[110].mxu0  ;;  %4579 = vadd.xlane.f32.xlu0 %v4578_v58 }
 0x347   : > { %v4158_v7 = vpop.xlane.xlu0 %4157  ;;  %4082 = vst [vmem:[%s6413_s26 + $0x360] sm:$0xff] %v5422_v1  ;;  %v4402_v8 = vmul.f32 %v5422_v1, %v5422_v1  ;;  %v5424_v9 = vadd.f32 %v3929_v6, %v3223_v3  ;;  %v3931_v10 = vpop.f32.mrb[111].mxu0 }
 0x348   : > { %v4475_v11 = vpop.xlane.xlu1 %4474  ;;  %4633 = vst.msk [vmem:[%s6535_s6 + $0x90] sm:$0xff] %vm4614_vm0, %v4158_v7  ;;  %4083 = vst [vmem:[%s6413_s26 + $0x368] sm:$0xff] %v5423_v5  ;;  %v4403_v12 = vmul.f32 %v5423_v5, %v5423_v5  ;;  %v3225_v13 = vpop.f32.mrb[111].mxu1  ;;  %v4264_v14 = vadd.f32 %v5423_v5, %v5422_v1 }
 0x349   : > { %4696 = vst.msk [vmem:[%s6545_s12 + $0x88] sm:$0xff] %vm4614_vm0, %v4475_v11  ;;  %4084 = vst [vmem:[%s6413_s26 + $0x370] sm:$0xff] %v5424_v9  ;;  %v4404_v15 = vmul.f32 %v5424_v9, %v5424_v9  ;;  %v5425_v16 = vadd.f32 %v3931_v10, %v3225_v13 }
 0x34a   : > { %4582 = vadd.xlane.f32.xlu1 %v4581_v4  ;;  %4265 = vadd.xlane.f32.xlu0 %v4264_v14  ;;  %v4584_v18 = vadd.f32 %v4403_v12, %v4402_v8 }
 0x34b   : > { %v4478_v17 = vpop.xlane.xlu0 %4477  ;;  %4085 = vst [vmem:[%s6413_s26 + $0x378] sm:$0xff] %v5425_v16  ;;  %v4405_v19 = vmul.f32 %v5425_v16, %v5425_v16  ;;  %v3229_v21 = vpop.f32.mrb[112].mxu1  ;;  %v4267_v22 = vadd.f32 %v5425_v16, %v5424_v9 }
 0x34c   : > { %4697 = vst.msk [vmem:[%s6545_s12 + $0x90] sm:$0xff] %vm4614_vm0, %v4478_v17  ;;  %v4161_v20 = vpop.xlane.xlu1 %4160  ;;  %v3935_v23 = vpop.f32.mrb[112].mxu0 }
 0x34d   : > { %4634 = vst.msk [vmem:[%s6535_s6 + $0x98] sm:$0xff] %vm4614_vm0, %v4161_v20  ;;  %v3231_v24 = vpop.f32.mrb[113].mxu1  ;;  %v5426_v25 = vadd.f32 %v3935_v23, %v3229_v21  ;;  %v3937_v26 = vpop.f32.mrb[113].mxu0  ;;  %v4587_v28 = vadd.f32 %v4405_v19, %v4404_v15 }
 0x34e   : > { %4268 = vadd.xlane.f32.xlu1 %v4267_v22  ;;  %v3233_v27 = vpop.f32.mrb[114].mxu1  ;;  %v5427_v29 = vadd.f32 %v3937_v26, %v3231_v24  ;;  %v3939_v30 = vpop.f32.mrb[114].mxu0  ;;  %4585 = vadd.xlane.f32.xlu0 %v4584_v18 }
 0x34f   : > { %v4164_v31 = vpop.xlane.xlu0 %4163  ;;  %4086 = vst [vmem:[%s6413_s26 + $0x380] sm:$0xff] %v5426_v25  ;;  %v4406_v32 = vmul.f32 %v5426_v25, %v5426_v25  ;;  %v5428_v33 = vadd.f32 %v3939_v30, %v3233_v27  ;;  %v3941_v34 = vpop.f32.mrb[115].mxu0 }
 0x350   : > { %v4481_v35 = vpop.xlane.xlu1 %4480  ;;  %4635 = vst.msk [vmem:[%s6535_s6 + $0xa0] sm:$0xff] %vm4614_vm0, %v4164_v31  ;;  %4087 = vst [vmem:[%s6413_s26 + $0x388] sm:$0xff] %v5427_v29  ;;  %v4407_v36 = vmul.f32 %v5427_v29, %v5427_v29  ;;  %v3235_v37 = vpop.f32.mrb[115].mxu1  ;;  %v4270_v38 = vadd.f32 %v5427_v29, %v5426_v25 }
 0x351   : > { %4698 = vst.msk [vmem:[%s6545_s12 + $0x98] sm:$0xff] %vm4614_vm0, %v4481_v35  ;;  %4088 = vst [vmem:[%s6413_s26 + $0x390] sm:$0xff] %v5428_v33  ;;  %v4408_v39 = vmul.f32 %v5428_v33, %v5428_v33  ;;  %v5429_v40 = vadd.f32 %v3941_v34, %v3235_v37 }
 0x352   : > { %4588 = vadd.xlane.f32.xlu1 %v4587_v28  ;;  %4271 = vadd.xlane.f32.xlu0 %v4270_v38  ;;  %v4590_v42 = vadd.f32 %v4407_v36, %v4406_v32 }
 0x353   : > { %v4484_v41 = vpop.xlane.xlu0 %4483  ;;  %4089 = vst [vmem:[%s6413_s26 + $0x398] sm:$0xff] %v5429_v40  ;;  %v4409_v43 = vmul.f32 %v5429_v40, %v5429_v40  ;;  %v3239_v45 = vpop.f32.mrb[116].mxu1  ;;  %v4273_v46 = vadd.f32 %v5429_v40, %v5428_v33 }
 0x354   : > { %4699 = vst.msk [vmem:[%s6545_s12 + $0xa0] sm:$0xff] %vm4614_vm0, %v4484_v41  ;;  %v4167_v44 = vpop.xlane.xlu1 %4166  ;;  %v3945_v47 = vpop.f32.mrb[116].mxu0 }
 0x355   : > { %4636 = vst.msk [vmem:[%s6535_s6 + $0xa8] sm:$0xff] %vm4614_vm0, %v4167_v44  ;;  %v3241_v48 = vpop.f32.mrb[117].mxu1  ;;  %v5430_v49 = vadd.f32 %v3945_v47, %v3239_v45  ;;  %v3947_v50 = vpop.f32.mrb[117].mxu0  ;;  %v4593_v52 = vadd.f32 %v4409_v43, %v4408_v39 }
 0x356   : > { %4274 = vadd.xlane.f32.xlu1 %v4273_v46  ;;  %v3243_v51 = vpop.f32.mrb[118].mxu1  ;;  %v5431_v53 = vadd.f32 %v3947_v50, %v3241_v48  ;;  %v3949_v54 = vpop.f32.mrb[118].mxu0  ;;  %4591 = vadd.xlane.f32.xlu0 %v4590_v42 }
 0x357   : > { %v4170_v55 = vpop.xlane.xlu0 %4169  ;;  %4090 = vst [vmem:[%s6413_s26 + $0x3a0] sm:$0xff] %v5430_v49  ;;  %v4410_v56 = vmul.f32 %v5430_v49, %v5430_v49  ;;  %v5432_v57 = vadd.f32 %v3949_v54, %v3243_v51  ;;  %v3951_v58 = vpop.f32.mrb[119].mxu0 }
 0x358   : > { %v4487_v59 = vpop.xlane.xlu1 %4486  ;;  %4637 = vst.msk [vmem:[%s6535_s6 + $0xb0] sm:$0xff] %vm4614_vm0, %v4170_v55  ;;  %4091 = vst [vmem:[%s6413_s26 + $0x3a8] sm:$0xff] %v5431_v53  ;;  %v4411_v60 = vmul.f32 %v5431_v53, %v5431_v53  ;;  %v3245_v61 = vpop.f32.mrb[119].mxu1  ;;  %v4276_v62 = vadd.f32 %v5431_v53, %v5430_v49 }
 0x359   : > { %4700 = vst.msk [vmem:[%s6545_s12 + $0xa8] sm:$0xff] %vm4614_vm0, %v4487_v59  ;;  %4092 = vst [vmem:[%s6413_s26 + $0x3b0] sm:$0xff] %v5432_v57  ;;  %v4412_v63 = vmul.f32 %v5432_v57, %v5432_v57  ;;  %v5433_v0 = vadd.f32 %v3951_v58, %v3245_v61 }
 0x35a   : > { %4594 = vadd.xlane.f32.xlu1 %v4593_v52  ;;  %4277 = vadd.xlane.f32.xlu0 %v4276_v62  ;;  %v4596_v2 = vadd.f32 %v4411_v60, %v4410_v56 }
 0x35b   : > { %v4490_v1 = vpop.xlane.xlu0 %4489  ;;  %4093 = vst [vmem:[%s6413_s26 + $0x3b8] sm:$0xff] %v5433_v0  ;;  %v4413_v3 = vmul.f32 %v5433_v0, %v5433_v0  ;;  %v3249_v5 = vpop.f32.mrb[120].mxu1  ;;  %v4279_v6 = vadd.f32 %v5433_v0, %v5432_v57 }
 0x35c   : > { %4701 = vst.msk [vmem:[%s6545_s12 + $0xb0] sm:$0xff] %vm4614_vm0, %v4490_v1  ;;  %v4173_v4 = vpop.xlane.xlu1 %4172  ;;  %v3955_v7 = vpop.f32.mrb[120].mxu0 }
 0x35d   : > { %4638 = vst.msk [vmem:[%s6535_s6 + $0xb8] sm:$0xff] %vm4614_vm0, %v4173_v4  ;;  %v3251_v8 = vpop.f32.mrb[121].mxu1  ;;  %v5434_v9 = vadd.f32 %v3955_v7, %v3249_v5  ;;  %v3957_v10 = vpop.f32.mrb[121].mxu0  ;;  %v4599_v12 = vadd.f32 %v4413_v3, %v4412_v63 }
 0x35e   : > { %4280 = vadd.xlane.f32.xlu1 %v4279_v6  ;;  %v3253_v11 = vpop.f32.mrb[122].mxu1  ;;  %v5435_v13 = vadd.f32 %v3957_v10, %v3251_v8  ;;  %v3959_v14 = vpop.f32.mrb[122].mxu0  ;;  %4597 = vadd.xlane.f32.xlu0 %v4596_v2 }
 0x35f   : > { %v4176_v15 = vpop.xlane.xlu0 %4175  ;;  %4094 = vst [vmem:[%s6413_s26 + $0x3c0] sm:$0xff] %v5434_v9  ;;  %v4414_v16 = vmul.f32 %v5434_v9, %v5434_v9  ;;  %v5436_v17 = vadd.f32 %v3959_v14, %v3253_v11  ;;  %v3961_v18 = vpop.f32.mrb[123].mxu0 }
 0x360   : > { %v4493_v19 = vpop.xlane.xlu1 %4492  ;;  %4639 = vst.msk [vmem:[%s6535_s6 + $0xc0] sm:$0xff] %vm4614_vm0, %v4176_v15  ;;  %4095 = vst [vmem:[%s6413_s26 + $0x3c8] sm:$0xff] %v5435_v13  ;;  %v4415_v20 = vmul.f32 %v5435_v13, %v5435_v13  ;;  %v3255_v21 = vpop.f32.mrb[123].mxu1  ;;  %v4282_v22 = vadd.f32 %v5435_v13, %v5434_v9 }
 0x361   : > { %4702 = vst.msk [vmem:[%s6545_s12 + $0xb8] sm:$0xff] %vm4614_vm0, %v4493_v19  ;;  %4096 = vst [vmem:[%s6413_s26 + $0x3d0] sm:$0xff] %v5436_v17  ;;  %v4416_v23 = vmul.f32 %v5436_v17, %v5436_v17  ;;  %v5437_v24 = vadd.f32 %v3961_v18, %v3255_v21 }
 0x362   : > { %4600 = vadd.xlane.f32.xlu1 %v4599_v12  ;;  %4283 = vadd.xlane.f32.xlu0 %v4282_v22  ;;  %v4602_v26 = vadd.f32 %v4415_v20, %v4414_v16 }
 0x363   : > { %v4496_v25 = vpop.xlane.xlu0 %4495  ;;  %4097 = vst [vmem:[%s6413_s26 + $0x3d8] sm:$0xff] %v5437_v24  ;;  %v4417_v27 = vmul.f32 %v5437_v24, %v5437_v24  ;;  %v3259_v29 = vpop.f32.mrb[124].mxu1  ;;  %v4285_v30 = vadd.f32 %v5437_v24, %v5436_v17 }
 0x364   : > { %4703 = vst.msk [vmem:[%s6545_s12 + $0xc0] sm:$0xff] %vm4614_vm0, %v4496_v25  ;;  %v4179_v28 = vpop.xlane.xlu1 %4178  ;;  %v3965_v31 = vpop.f32.mrb[124].mxu0 }
 0x365   : > { %4640 = vst.msk [vmem:[%s6535_s6 + $0xc8] sm:$0xff] %vm4614_vm0, %v4179_v28  ;;  %v3261_v32 = vpop.f32.mrb[125].mxu1  ;;  %v5438_v33 = vadd.f32 %v3965_v31, %v3259_v29  ;;  %v3967_v34 = vpop.f32.mrb[125].mxu0  ;;  %v4605_v36 = vadd.f32 %v4417_v27, %v4416_v23 }
 0x366   : > { %4286 = vadd.xlane.f32.xlu1 %v4285_v30  ;;  %v3263_v35 = vpop.f32.mrb[126].mxu1  ;;  %v5439_v37 = vadd.f32 %v3967_v34, %v3261_v32  ;;  %v3969_v38 = vpop.f32.mrb[126].mxu0  ;;  %4603 = vadd.xlane.f32.xlu0 %v4602_v26 }
 0x367   : > { %v4182_v39 = vpop.xlane.xlu0 %4181  ;;  %4098 = vst [vmem:[%s6413_s26 + $0x3e0] sm:$0xff] %v5438_v33  ;;  %v4418_v40 = vmul.f32 %v5438_v33, %v5438_v33  ;;  %v5440_v41 = vadd.f32 %v3969_v38, %v3263_v35  ;;  %v3971_v42 = vpop.f32.mrb[127].mxu0 }
 0x368   : > { %v4499_v43 = vpop.xlane.xlu1 %4498  ;;  %4641 = vst.msk [vmem:[%s6535_s6 + $0xd0] sm:$0xff] %vm4614_vm0, %v4182_v39  ;;  %4099 = vst [vmem:[%s6413_s26 + $0x3e8] sm:$0xff] %v5439_v37  ;;  %v4419_v44 = vmul.f32 %v5439_v37, %v5439_v37  ;;  %v3265_v45 = vpop.f32.mrb[127].mxu1  ;;  %v4288_v46 = vadd.f32 %v5439_v37, %v5438_v33 }
 0x369   : > { %4704 = vst.msk [vmem:[%s6545_s12 + $0xc8] sm:$0xff] %vm4614_vm0, %v4499_v43  ;;  %4100 = vst [vmem:[%s6413_s26 + $0x3f0] sm:$0xff] %v5440_v41  ;;  %v4420_v47 = vmul.f32 %v5440_v41, %v5440_v41  ;;  %v5441_v48 = vadd.f32 %v3971_v42, %v3265_v45 }
 0x36a   : > { %4606 = vadd.xlane.f32.xlu1 %v4605_v36  ;;  %4289 = vadd.xlane.f32.xlu0 %v4288_v46  ;;  %v4608_v50 = vadd.f32 %v4419_v44, %v4418_v40 }
 0x36b   : > { %v4502_v49 = vpop.xlane.xlu0 %4501  ;;  %4101 = vst [vmem:[%s6413_s26 + $0x3f8] sm:$0xff] %v5441_v48  ;;  %v4421_v51 = vmul.f32 %v5441_v48, %v5441_v48  ;;  %v4291_v53 = vadd.f32 %v5441_v48, %v5440_v41  ;;  %s6017_s26 = sshll.u32 %s6092_s19, 4  ;;  %s6018_s26 = int_to_ptr.vmem [resolvable:$false] %s6017_s26 }
 0x36c   : > { %4705 = vst.msk [vmem:[%s6545_s12 + $0xd0] sm:$0xff] %vm4614_vm0, %v4502_v49  ;;  %v4185_v52 = vpop.xlane.xlu1 %4184  ;;  %s6019_s29 = scalar_lea.vmem %s6018_s26, 32768  ;;  %p6020_p7 = scmp.lt.s32.totalorder %s6735_s5, %s6018_s26 }
 0x36d   : > { %4642 = vst.msk [vmem:[%s6535_s6 + $0xd8] sm:$0xff] %vm4614_vm0, %v4185_v52  ;;  %v4611_v54 = vadd.f32 %v4421_v51, %v4420_v47  ;;  %p6021_p5 = scmp.lt.s32.totalorder %s6019_s29, %s6013_s11 }
 0x36e   : > { %4292 = vadd.xlane.f32.xlu1 %v4291_v53  ;;  %4609 = vadd.xlane.f32.xlu0 %v4608_v50 }
 0x36f   : > { %v4188_v55 = vpop.xlane.xlu0 %4187  ;;  %p6022_p11 = por %p6021_p5, %p6020_p7 }
 0x370   : > { %v4505_v56 = vpop.xlane.xlu1 %4504  ;;  %4643 = vst.msk [vmem:[%s6535_s6 + $0xe0] sm:$0xff] %vm4614_vm0, %v4188_v55 }
 0x371   : > { %4706 = vst.msk [vmem:[%s6545_s12 + $0xd8] sm:$0xff] %vm4614_vm0, %v4505_v56  ;;  %p6023_p13 = pnand %p6022_p11, %p6016_p4 }
 0x372   : > { %4612 = vadd.xlane.f32.xlu1 %v4611_v54 }
 0x373   : > { %v4508_v57 = vpop.xlane.xlu0 %4507 }
 0x374   : > { %4707 = vst.msk [vmem:[%s6545_s12 + $0xe0] sm:$0xff] %vm4614_vm0, %v4508_v57  ;;  %v4191_v58 = vpop.xlane.xlu1 %4190 }
 0x375   : > { %4644 = vst.msk [vmem:[%s6535_s6 + $0xe8] sm:$0xff] %vm4614_vm0, %v4191_v58 }
 0x377   : > { %v4194_v59 = vpop.xlane.xlu0 %4193 }
 0x378   : > { %v4511_v60 = vpop.xlane.xlu1 %4510  ;;  %4645 = vst.msk [vmem:[%s6535_s6 + $0xf0] sm:$0xff] %vm4614_vm0, %v4194_v59 }
 0x379   : > { %4708 = vst.msk [vmem:[%s6545_s12 + $0xe8] sm:$0xff] %vm4614_vm0, %v4511_v60 }
 0x37b   : > { %v4514_v61 = vpop.xlane.xlu0 %4513 }
 0x37c   : > { %4709 = vst.msk [vmem:[%s6545_s12 + $0xf0] sm:$0xff] %vm4614_vm0, %v4514_v61  ;;  %v4197_v62 = vpop.xlane.xlu1 %4196 }
 0x37d   : > { %4646 = vst.msk [vmem:[%s6535_s6 + $0xf8] sm:$0xff] %vm4614_vm0, %v4197_v62 }
 0x37f   : > { %v4200_v63 = vpop.xlane.xlu0 %4199 }
 0x380   : > { %v4517_v0 = vpop.xlane.xlu1 %4516  ;;  %4647 = vst.msk [vmem:[%s6535_s6 + $0x100] sm:$0xff] %vm4614_vm0, %v4200_v63 }
 0x381   : > { %4710 = vst.msk [vmem:[%s6545_s12 + $0xf8] sm:$0xff] %vm4614_vm0, %v4517_v0 }
 0x383   : > { %v4520_v1 = vpop.xlane.xlu0 %4519 }
 0x384   : > { %4711 = vst.msk [vmem:[%s6545_s12 + $0x100] sm:$0xff] %vm4614_vm0, %v4520_v1  ;;  %v4203_v2 = vpop.xlane.xlu1 %4202 }
 0x385   : > { %6026 = shalt.err (!%p6023_p13)
}
 0x386   : > { %s6027_s9 = scalar_lea.hbm %s6733_s30, 16384  ;;  %s6031_s7 = scalar_lea.hbm %s6907_s2, 32768 }
 0x387   : > { %p6028_p2 = scmp.ne.s32.totalorder %s6733_s30, %s6027_s9  ;;  %p6032_p0 = scmp.lt.u32.totalorder %s6733_s30, %s6907_s2 }
 0x388   : > { %p6033_p3 = scmp.lt.u32.totalorder %s6031_s7, %s6027_s9  ;;  %p6035_p9 = scmp.lt.u32.totalorder %s6027_s9, %s6733_s30 }
 0x389   : > { %p6029_p6 = pnand %p6028_p2, %p6927_p10 }
 0x38a   : > { %p6034_p8 = por %p6033_p3, %p6032_p0 }
 0x38b   : > { %p6030_p12 = pneg %p6029_p6 }
 0x38c   : > { %p6036_p1 = por %p6035_p9, %p6034_p8 }
 0x38e   : > { %p6037_p4 = pnand %p6036_p1, %p6030_p12 }
 0x390   : > { %6040 = shalt.err (!%p6037_p4)
}
 0x391   : > { %s6093_s20 = smov 256   ;;  %s6094_s22 = smov 512   ;;  %4648 = vst.msk [vmem:[%s6535_s6 + $0x108] sm:$0xff] %vm4614_vm0, %v4203_v2  ;;  %v4206_v3 = vpop.xlane.xlu0 %4205  ;;  %v4523_v4 = vpop.xlane.xlu1 %4522 }
 0x392   : > { %s6095_s11 = smov 16   ;;  %4649 = vst.msk [vmem:[%s6535_s6 + $0x110] sm:$0xff] %vm4614_vm0, %v4206_v3  ;;  %4712 = vst.msk [vmem:[%s6545_s12 + $0x108] sm:$0xff] %vm4614_vm0, %v4523_v4 }
 0x393   : > { %5704 = dma.vmem_to_hbm [thread:$0]  (%p6927_p10), %s6735_s5, 16384, %s6733_s30, %s4744_s8, %s6093_s20, %s6094_s22, %s6095_s11  }
 0x395   : > { %v4526_v5 = vpop.xlane.xlu0 %4525  ;;  %v4209_v6 = vpop.xlane.xlu1 %4208 }
 0x396   : > { %4713 = vst.msk [vmem:[%s6545_s12 + $0x110] sm:$0xff] %vm4614_vm0, %v4526_v5  ;;  %4650 = vst.msk [vmem:[%s6535_s6 + $0x118] sm:$0xff] %vm4614_vm0, %v4209_v6 }
 0x399   : > { %v4212_v7 = vpop.xlane.xlu0 %4211  ;;  %v4529_v8 = vpop.xlane.xlu1 %4528 }
 0x39a   : > { %4651 = vst.msk [vmem:[%s6535_s6 + $0x120] sm:$0xff] %vm4614_vm0, %v4212_v7  ;;  %4714 = vst.msk [vmem:[%s6545_s12 + $0x118] sm:$0xff] %vm4614_vm0, %v4529_v8 }
 0x39d   : > { %v4532_v9 = vpop.xlane.xlu0 %4531  ;;  %v4215_v10 = vpop.xlane.xlu1 %4214 }
 0x39e   : > { %4715 = vst.msk [vmem:[%s6545_s12 + $0x120] sm:$0xff] %vm4614_vm0, %v4532_v9  ;;  %4652 = vst.msk [vmem:[%s6535_s6 + $0x128] sm:$0xff] %vm4614_vm0, %v4215_v10 }
 0x3a1   : > { %v4218_v11 = vpop.xlane.xlu0 %4217  ;;  %v4535_v12 = vpop.xlane.xlu1 %4534 }
 0x3a2   : > { %4653 = vst.msk [vmem:[%s6535_s6 + $0x130] sm:$0xff] %vm4614_vm0, %v4218_v11  ;;  %4716 = vst.msk [vmem:[%s6545_s12 + $0x128] sm:$0xff] %vm4614_vm0, %v4535_v12 }
 0x3a5   : > { %v4538_v13 = vpop.xlane.xlu0 %4537  ;;  %v4221_v14 = vpop.xlane.xlu1 %4220 }
 0x3a6   : > { %4717 = vst.msk [vmem:[%s6545_s12 + $0x130] sm:$0xff] %vm4614_vm0, %v4538_v13  ;;  %4654 = vst.msk [vmem:[%s6535_s6 + $0x138] sm:$0xff] %vm4614_vm0, %v4221_v14 }
 0x3a9   : > { %v4541_v15 = vpop.xlane.xlu1 %4540  ;;  %v4224_v16 = vpop.xlane.xlu0 %4223 }
 0x3aa   : > { %4718 = vst.msk [vmem:[%s6545_s12 + $0x138] sm:$0xff] %vm4614_vm0, %v4541_v15  ;;  %4655 = vst.msk [vmem:[%s6535_s6 + $0x140] sm:$0xff] %vm4614_vm0, %v4224_v16 }
 0x3ad   : > { %v4544_v17 = vpop.xlane.xlu0 %4543  ;;  %v4227_v18 = vpop.xlane.xlu1 %4226 }
 0x3ae   : > { %4719 = vst.msk [vmem:[%s6545_s12 + $0x140] sm:$0xff] %vm4614_vm0, %v4544_v17  ;;  %4656 = vst.msk [vmem:[%s6535_s6 + $0x148] sm:$0xff] %vm4614_vm0, %v4227_v18 }
 0x3b1   : > { %v4547_v19 = vpop.xlane.xlu1 %4546  ;;  %v4230_v20 = vpop.xlane.xlu0 %4229 }
 0x3b2   : > { %4720 = vst.msk [vmem:[%s6545_s12 + $0x148] sm:$0xff] %vm4614_vm0, %v4547_v19  ;;  %4657 = vst.msk [vmem:[%s6535_s6 + $0x150] sm:$0xff] %vm4614_vm0, %v4230_v20 }
 0x3b5   : > { %v4550_v21 = vpop.xlane.xlu0 %4549  ;;  %v4233_v22 = vpop.xlane.xlu1 %4232 }
 0x3b6   : > { %4721 = vst.msk [vmem:[%s6545_s12 + $0x150] sm:$0xff] %vm4614_vm0, %v4550_v21  ;;  %4658 = vst.msk [vmem:[%s6535_s6 + $0x158] sm:$0xff] %vm4614_vm0, %v4233_v22 }
 0x3b9   : > { %v4553_v23 = vpop.xlane.xlu1 %4552  ;;  %v4236_v24 = vpop.xlane.xlu0 %4235 }
 0x3ba   : > { %4722 = vst.msk [vmem:[%s6545_s12 + $0x158] sm:$0xff] %vm4614_vm0, %v4553_v23  ;;  %4659 = vst.msk [vmem:[%s6535_s6 + $0x160] sm:$0xff] %vm4614_vm0, %v4236_v24 }
 0x3bd   : > { %v4556_v25 = vpop.xlane.xlu0 %4555  ;;  %v4239_v26 = vpop.xlane.xlu1 %4238 }
 0x3be   : > { %4723 = vst.msk [vmem:[%s6545_s12 + $0x160] sm:$0xff] %vm4614_vm0, %v4556_v25  ;;  %4660 = vst.msk [vmem:[%s6535_s6 + $0x168] sm:$0xff] %vm4614_vm0, %v4239_v26 }
 0x3c1   : > { %v4559_v27 = vpop.xlane.xlu1 %4558  ;;  %v4242_v28 = vpop.xlane.xlu0 %4241 }
 0x3c2   : > { %4724 = vst.msk [vmem:[%s6545_s12 + $0x168] sm:$0xff] %vm4614_vm0, %v4559_v27  ;;  %4661 = vst.msk [vmem:[%s6535_s6 + $0x170] sm:$0xff] %vm4614_vm0, %v4242_v28 }
 0x3c5   : > { %v4562_v29 = vpop.xlane.xlu0 %4561  ;;  %v4245_v30 = vpop.xlane.xlu1 %4244 }
 0x3c6   : > { %4725 = vst.msk [vmem:[%s6545_s12 + $0x170] sm:$0xff] %vm4614_vm0, %v4562_v29  ;;  %4662 = vst.msk [vmem:[%s6535_s6 + $0x178] sm:$0xff] %vm4614_vm0, %v4245_v30 }
 0x3c9   : > { %v4565_v31 = vpop.xlane.xlu1 %4564  ;;  %v4248_v32 = vpop.xlane.xlu0 %4247 }
 0x3ca   : > { %4726 = vst.msk [vmem:[%s6545_s12 + $0x178] sm:$0xff] %vm4614_vm0, %v4565_v31  ;;  %4663 = vst.msk [vmem:[%s6535_s6 + $0x180] sm:$0xff] %vm4614_vm0, %v4248_v32 }
 0x3cd   : > { %v4568_v33 = vpop.xlane.xlu0 %4567  ;;  %v4251_v34 = vpop.xlane.xlu1 %4250 }
 0x3ce   : > { %4727 = vst.msk [vmem:[%s6545_s12 + $0x180] sm:$0xff] %vm4614_vm0, %v4568_v33  ;;  %4664 = vst.msk [vmem:[%s6535_s6 + $0x188] sm:$0xff] %vm4614_vm0, %v4251_v34 }
 0x3d1   : > { %v4571_v35 = vpop.xlane.xlu1 %4570  ;;  %v4254_v36 = vpop.xlane.xlu0 %4253 }
 0x3d2   : > { %4728 = vst.msk [vmem:[%s6545_s12 + $0x188] sm:$0xff] %vm4614_vm0, %v4571_v35  ;;  %4665 = vst.msk [vmem:[%s6535_s6 + $0x190] sm:$0xff] %vm4614_vm0, %v4254_v36 }
 0x3d5   : > { %v4574_v37 = vpop.xlane.xlu0 %4573  ;;  %v4257_v38 = vpop.xlane.xlu1 %4256 }
 0x3d6   : > { %4729 = vst.msk [vmem:[%s6545_s12 + $0x190] sm:$0xff] %vm4614_vm0, %v4574_v37  ;;  %4666 = vst.msk [vmem:[%s6535_s6 + $0x198] sm:$0xff] %vm4614_vm0, %v4257_v38 }
 0x3d9   : > { %v4577_v39 = vpop.xlane.xlu1 %4576  ;;  %v4260_v40 = vpop.xlane.xlu0 %4259 }
 0x3da   : > { %4730 = vst.msk [vmem:[%s6545_s12 + $0x198] sm:$0xff] %vm4614_vm0, %v4577_v39  ;;  %4667 = vst.msk [vmem:[%s6535_s6 + $0x1a0] sm:$0xff] %vm4614_vm0, %v4260_v40 }
 0x3dd   : > { %v4580_v41 = vpop.xlane.xlu0 %4579  ;;  %v4263_v42 = vpop.xlane.xlu1 %4262 }
 0x3de   : > { %4731 = vst.msk [vmem:[%s6545_s12 + $0x1a0] sm:$0xff] %vm4614_vm0, %v4580_v41  ;;  %4668 = vst.msk [vmem:[%s6535_s6 + $0x1a8] sm:$0xff] %vm4614_vm0, %v4263_v42 }
 0x3e1   : > { %v4583_v43 = vpop.xlane.xlu1 %4582  ;;  %v4266_v44 = vpop.xlane.xlu0 %4265 }
 0x3e2   : > { %4732 = vst.msk [vmem:[%s6545_s12 + $0x1a8] sm:$0xff] %vm4614_vm0, %v4583_v43  ;;  %4669 = vst.msk [vmem:[%s6535_s6 + $0x1b0] sm:$0xff] %vm4614_vm0, %v4266_v44 }
 0x3e5   : > { %v4586_v45 = vpop.xlane.xlu0 %4585  ;;  %v4269_v46 = vpop.xlane.xlu1 %4268 }
 0x3e6   : > { %4733 = vst.msk [vmem:[%s6545_s12 + $0x1b0] sm:$0xff] %vm4614_vm0, %v4586_v45  ;;  %4670 = vst.msk [vmem:[%s6535_s6 + $0x1b8] sm:$0xff] %vm4614_vm0, %v4269_v46 }
 0x3e9   : > { %v4589_v47 = vpop.xlane.xlu1 %4588  ;;  %v4272_v48 = vpop.xlane.xlu0 %4271 }
 0x3ea   : > { %4734 = vst.msk [vmem:[%s6545_s12 + $0x1b8] sm:$0xff] %vm4614_vm0, %v4589_v47  ;;  %4671 = vst.msk [vmem:[%s6535_s6 + $0x1c0] sm:$0xff] %vm4614_vm0, %v4272_v48 }
 0x3ed   : > { %v4592_v49 = vpop.xlane.xlu0 %4591  ;;  %v4275_v50 = vpop.xlane.xlu1 %4274 }
 0x3ee   : > { %4735 = vst.msk [vmem:[%s6545_s12 + $0x1c0] sm:$0xff] %vm4614_vm0, %v4592_v49  ;;  %4672 = vst.msk [vmem:[%s6535_s6 + $0x1c8] sm:$0xff] %vm4614_vm0, %v4275_v50 }
 0x3f1   : > { %v4595_v51 = vpop.xlane.xlu1 %4594  ;;  %v4278_v52 = vpop.xlane.xlu0 %4277 }
 0x3f2   : > { %4736 = vst.msk [vmem:[%s6545_s12 + $0x1c8] sm:$0xff] %vm4614_vm0, %v4595_v51  ;;  %4673 = vst.msk [vmem:[%s6535_s6 + $0x1d0] sm:$0xff] %vm4614_vm0, %v4278_v52 }
 0x3f5   : > { %v4598_v53 = vpop.xlane.xlu0 %4597  ;;  %v4281_v54 = vpop.xlane.xlu1 %4280 }
 0x3f6   : > { %4737 = vst.msk [vmem:[%s6545_s12 + $0x1d0] sm:$0xff] %vm4614_vm0, %v4598_v53  ;;  %4674 = vst.msk [vmem:[%s6535_s6 + $0x1d8] sm:$0xff] %vm4614_vm0, %v4281_v54 }
 0x3f9   : > { %v4601_v55 = vpop.xlane.xlu1 %4600  ;;  %v4284_v56 = vpop.xlane.xlu0 %4283 }
 0x3fa   : > { %4738 = vst.msk [vmem:[%s6545_s12 + $0x1d8] sm:$0xff] %vm4614_vm0, %v4601_v55  ;;  %4675 = vst.msk [vmem:[%s6535_s6 + $0x1e0] sm:$0xff] %vm4614_vm0, %v4284_v56 }
 0x3fd   : > { %v4604_v57 = vpop.xlane.xlu0 %4603  ;;  %v4287_v58 = vpop.xlane.xlu1 %4286 }
 0x3fe   : > { %4739 = vst.msk [vmem:[%s6545_s12 + $0x1e0] sm:$0xff] %vm4614_vm0, %v4604_v57  ;;  %4676 = vst.msk [vmem:[%s6535_s6 + $0x1e8] sm:$0xff] %vm4614_vm0, %v4287_v58 }
 0x401   : > { %v4607_v59 = vpop.xlane.xlu1 %4606  ;;  %v4290_v60 = vpop.xlane.xlu0 %4289 }
 0x402   : > { %4740 = vst.msk [vmem:[%s6545_s12 + $0x1e8] sm:$0xff] %vm4614_vm0, %v4607_v59  ;;  %4677 = vst.msk [vmem:[%s6535_s6 + $0x1f0] sm:$0xff] %vm4614_vm0, %v4290_v60 }
 0x405   : > { %v4610_v61 = vpop.xlane.xlu0 %4609  ;;  %v4293_v62 = vpop.xlane.xlu1 %4292 }
 0x406   : > { %4741 = vst.msk [vmem:[%s6545_s12 + $0x1f0] sm:$0xff] %vm4614_vm0, %v4610_v61  ;;  %4678 = vst.msk [vmem:[%s6535_s6 + $0x1f8] sm:$0xff] %vm4614_vm0, %v4293_v62 }
 0x409   : > { %v4613_v63 = vpop.xlane.xlu1 %4612 }
 0x40a   : > { %4742 = vst.msk [vmem:[%s6545_s12 + $0x1f8] sm:$0xff] %vm4614_vm0, %v4613_v63 }
 0x40b PF: > { %s4788_s27 = sand.u32 1, %s6071_s15   ;;  %p6928_p10 = scmp.ne.s32.totalorder %s6917_s28, 0 }
 0x40c   : > { %p6929_p7 = scmp.ge.s32.totalorder %s6083_s18, 2  ;;  %s4789_s23 = scalar_lea.sflag [#allocation4], %s4788_s27 }
 0x40e   : > { %p5715_p5 = pnand %p6929_p7, %p6928_p10 }
 0x410   : > { %6066 = dma.done.wait (!%p5715_p5), %s4789_s23, 16384  }
 0x411   : > { %6068 = vsyncadd (!%p5715_p5), %s4789_s23, 4294950912  ;;  %p19_p11 = scmp.ge.s32.totalorder %s6146_s21, 4   ;;  %s6930_s15 = smov %s6075_s16 }
 0x412   : > { %s6931_s16 = smov %s6079_s17  ;;  %s6932_s17 = smov %s6158_s24 }
 0x413   : > { %s6933_s18 = smov %s6146_s21  ;;  %21 = sbr.rel (!%p19_p11) target bundleno = 6 (0x6), region = 101 }
 0x41a   :  { %4810 = vsyncpa [#allocation3], 1 }
 0x41b   :  { %4812 = vsyncpa [#allocation3 + $0x1], 1 }
 0x41c   :  { %4813 = vsyncpa [#allocation6], 1 }
 0x41d   :  { %4814 = vsyncpa [#allocation4], 1 }
 0x41e   :  { %4816 = vsyncpa [#allocation4 + $0x1], 1 }

</bundles_post_ra>
